<compile_context>
chip_gen: v5e
topology: v5e:2x2
jax: 0.10.0
libtpu: 0.0.40
codegen_flags: <defaults>
</compile_context>

<pallas_src>
import functools

import jax
import jax.numpy as jnp
from jax import lax
from jax.experimental import pallas as pl
from jax.experimental.pallas import tpu as pltpu


# ----------------------------- B-spline basis ------------------------------

def _bspline_w(t):
    t2 = t * t
    t3 = t2 * t
    w0 = (1.0 - 3.0 * t + 3.0 * t2 - t3) / 6.0
    w1 = (4.0 - 6.0 * t2 + 3.0 * t3) / 6.0
    w2 = (1.0 + 3.0 * t + 3.0 * t2 - 3.0 * t3) / 6.0
    w3 = t3 / 6.0
    return (w0, w1, w2, w3)


def _bspline_dw(t):
    t2 = t * t
    d0 = (-3.0 + 6.0 * t - 3.0 * t2) / 6.0
    d1 = (9.0 * t2 - 12.0 * t) / 6.0
    d2 = (3.0 + 6.0 * t - 9.0 * t2) / 6.0
    d3 = (3.0 * t2) / 6.0
    return (d0, d1, d2, d3)


# ------------------------------ Pallas kernel -------------------------------

def _ffd_kernel(points_ref, rhs_hi_ref, rhs_lo_ref, out_ref, *,
                origin, inv_spacing, bdims):
    """One block of TN points (channel-first) against the stacked control grid.

    points_ref: (3, TN)  f32   scene-coordinate points, channel-first
    rhs_hi_ref: (256, Gpad) bf16  stacked neighbor grid (hi part); row
                r = ((cz*4 + by)*4 + ax)*4 + ch, column g = (ix*By + iy)*Bz + iz
                over padded base corners (3-before / 3-after edge padding).
    rhs_lo_ref: (256, Gpad) bf16  bf16 residual (rhs_f32 - rhs_hi).
    out_ref:    (16, TN) f32   rows 0-3 disp (ch 3 pad), rows 4+4d+c jacobian
                d disp_c / d grid_coord_d (+ identity), ch-3 rows are pad.
    """
    bx_dim, by_dim, bz_dim = bdims
    pts = points_ref[...]                                     # (3, TN)
    tn = pts.shape[1]
    gpad = rhs_hi_ref.shape[1]

    # points_in_voxels = (points - grid_origin) / grid_spacing_in_scene_units
    px = (pts[0:1, :] - origin[0]) * inv_spacing[0]           # (1, TN)
    py = (pts[1:2, :] - origin[1]) * inv_spacing[1]
    pz = (pts[2:3, :] - origin[2]) * inv_spacing[2]

    fx = jnp.floor(px)
    fy = jnp.floor(py)
    fz = jnp.floor(pz)
    tx = px - fx
    ty = py - fy
    tz = pz - fz

    # base corner clamped to [-3, G-1]; +3 -> index into padded base grid.
    # With 3-before / 3-after edge padding this reproduces per-neighbor
    # clamping exactly, even for far out-of-domain points.
    ix = jnp.clip(fx.astype(jnp.int32) - 1, -3, bx_dim - 4) + 3
    iy = jnp.clip(fy.astype(jnp.int32) - 1, -3, by_dim - 4) + 3
    iz = jnp.clip(fz.astype(jnp.int32) - 1, -3, bz_dim - 4) + 3
    flat = (ix * by_dim + iy) * bz_dim + iz                   # (1, TN) in [0, Gbase)

    # One one-hot (Gpad, TN) selecting the base corner of each point; the
    # 4x4x4 neighborhood gather is two bf16 MXU matmuls against the
    # pre-shifted stacked RHS (hi + lo residual -> near-f32 accuracy).
    rows = lax.broadcasted_iota(jnp.int32, (gpad, tn), 0)
    oh = jnp.where(rows == flat, 1.0, 0.0).astype(jnp.bfloat16)

    g_hi = jnp.dot(rhs_hi_ref[...], oh, preferred_element_type=jnp.float32)
    g_lo = jnp.dot(rhs_lo_ref[...], oh, preferred_element_type=jnp.float32)
    gathered = g_hi + g_lo                                    # (256, TN) f32

    # All weight / reduction math stays f32 (v5e has no bf16 VPU).
    wx, wy, wz = _bspline_w(tx), _bspline_w(ty), _bspline_w(tz)
    dwx, dwy, dwz = _bspline_dw(tx), _bspline_dw(ty), _bspline_dw(tz)

    # ---- separable weighted reduction, lane-dense, 8-friendly row slabs ----
    # stage 1: reduce over z (slabs of 64 rows, z-offset major)
    s0 = gathered[0:64, :]
    rz = wz[0] * s0
    rdz = dwz[0] * s0
    for cc in range(1, 4):
        s = gathered[cc * 64:(cc + 1) * 64, :]
        rz = rz + wz[cc] * s
        rdz = rdz + dwz[cc] * s

    # stage 2: reduce over y (slabs of 16 rows)
    sz0 = rz[0:16, :]
    sdz0 = rdz[0:16, :]
    rzy = wy[0] * sz0
    rz_dy = dwy[0] * sz0
    rdz_y = wy[0] * sdz0
    for bb in range(1, 4):
        sz = rz[bb * 16:(bb + 1) * 16, :]
        sdz = rdz[bb * 16:(bb + 1) * 16, :]
        rzy = rzy + wy[bb] * sz
        rz_dy = rz_dy + dwy[bb] * sz
        rdz_y = rdz_y + wy[bb] * sdz

    # stage 3: reduce over x (slabs of 4 rows = 3 channels + zero pad channel)
    szy0 = rzy[0:4, :]
    szdy0 = rz_dy[0:4, :]
    sdzy0 = rdz_y[0:4, :]
    disp = wx[0] * szy0
    jx = dwx[0] * szy0
    jy = wx[0] * szdy0
    jz = wx[0] * sdzy0
    for aa in range(1, 4):
        szy = rzy[aa * 4:(aa + 1) * 4, :]
        szdy = rz_dy[aa * 4:(aa + 1) * 4, :]
        sdzy = rdz_y[aa * 4:(aa + 1) * 4, :]
        disp = disp + wx[aa] * szy
        jx = jx + dwx[aa] * szy
        jy = jy + wx[aa] * szdy
        jz = jz + wx[aa] * sdzy

    # identity added on the diagonal at write time; direct sub-slice stores
    # into the single packed 16-row output block (no concat / %4 mask).
    ch = lax.broadcasted_iota(jnp.int32, (4, tn), 0)
    out_ref[0:4, :] = disp
    out_ref[4:8, :] = jx + (ch == 0).astype(jnp.float32)
    out_ref[8:12, :] = jy + (ch == 1).astype(jnp.float32)
    out_ref[12:16, :] = jz + (ch == 2).astype(jnp.float32)


# --------------------------------- Module -----------------------------------

class FFD:
    def __init__(self, nvox, dvox, grid_spacing_in_voxels, nchannels=3,
                 return_jacobian=True):
        self.grid_dim = [int(nvox[i] / grid_spacing_in_voxels[i]) + 3
                         for i in range(3)]
        if return_jacobian:
            assert nchannels == 3, "Jacobian is only supported for 3 channels."
        assert nchannels == 3, "Pallas FFD kernel implements the 3-channel path."
        self.return_jacobian = return_jacobian
        self.nchannels = nchannels
        self.grid_spacing = tuple(
            float(grid_spacing_in_voxels[i] * dvox[i]) for i in range(3))
        self.grid_origin = tuple(
            float(-dvox[i] * nvox[i] / 2.0 - self.grid_spacing[i])
            for i in range(3))

    def _build_stacked_rhs(self, grid):
        """Edge-padded, neighbor-shifted control grid, split into bf16 hi/lo.

        Returns (rhs_hi, rhs_lo) of shape (64*4, Gbase_pad) bf16 plus the
        padded base-grid dims and padded column count.  Row order is
        z-offset major, then y, then x, with (zero-padded) channel innermost,
        so the in-kernel reduction slices are 64 / 16 / 4 rows.
        """
        gx, gy, gz, c = grid.shape
        bxd, byd, bzd = gx + 3, gy + 3, gz + 3
        gbase = bxd * byd * bzd
        gbase_pad = ((gbase + 127) // 128) * 128

        # edge (replication) padding 3 before / 3 after per axis bakes in the
        # per-neighbor clamp for any base corner clamped to [-3, G-1];
        # zero-pad the channel dim 3 -> 4 for 8-friendly row slabs.
        gp = jnp.pad(grid.astype(jnp.float32),
                     ((3, 3), (3, 3), (3, 3), (0, 0)), mode="edge")
        gp = jnp.pad(gp, ((0, 0), (0, 0), (0, 0), (0, 1)))
        slabs = []
        for cz in range(4):          # z offset (major)
            for by in range(4):      # y offset
                for ax in range(4):  # x offset (channel innermost)
                    slabs.append(gp[ax:ax + bxd, by:by + byd, cz:cz + bzd, :])
        stacked = jnp.stack(slabs, axis=0)                 # (64, Bx, By, Bz, 4)
        stacked = jnp.moveaxis(stacked, -1, 1)             # (64, 4, Bx, By, Bz)
        rhs = stacked.reshape(64 * 4, gbase)
        rhs = jnp.pad(rhs, ((0, 0), (0, gbase_pad - gbase)))
        rhs_hi = rhs.astype(jnp.bfloat16)
        rhs_lo = (rhs - rhs_hi.astype(jnp.float32)).astype(jnp.bfloat16)
        return rhs_hi, rhs_lo, (bxd, byd, bzd), gbase_pad

    def __call__(self, points, grid, tn=1024):
        n = points.shape[0]
        gx, gy, gz, c = grid.shape
        assert [gx, gy, gz] == self.grid_dim and c == self.nchannels

        rhs_hi, rhs_lo, bdims, gbase_pad = self._build_stacked_rhs(grid)

        # Tile width: lane-dense multiple of 128; prefer >= 4 grid steps so
        # v7x's two TensorCores each keep a pipelined stream (per-step
        # overhead is only ~0.35us), never below 128.
        tn_eff = max(128, (min(tn, 1024) // 128) * 128)
        while tn_eff > 128 and -(-n // tn_eff) < 4:
            tn_eff //= 2

        def vmem_estimate(t):
            rhs_b = 2 * 256 * gbase_pad * 2                 # hi+lo, bf16, single copy
            onehot_b = gbase_pad * t * (4 + 4 + 2)          # iota + f32 select + bf16
            work_b = (2 * 256 + 256 + 3 * 64 + 3 * 16 + 8 * 4) * t * 4
            io_b = 2 * (3 + 16) * t * 4                     # double-buffered pts/out
            return rhs_b + onehot_b + work_b + io_b

        while tn_eff > 128 and vmem_estimate(tn_eff) > 44 * 1024 * 1024:
            tn_eff //= 2

        npad = ((n + tn_eff - 1) // tn_eff) * tn_eff
        # channel-first, lane-dense points
        pts_t = jnp.pad(points.astype(jnp.float32).T, ((0, 0), (0, npad - n)))

        inv_sp = tuple(1.0 / s for s in self.grid_spacing)
        kernel = functools.partial(
            _ffd_kernel,
            origin=self.grid_origin,
            inv_spacing=inv_sp,
            bdims=bdims,
        )

        vmem_limit = int(min(max(2 * vmem_estimate(tn_eff), 32 * 1024 * 1024),
                             64 * 1024 * 1024))

        out = pl.pallas_call(
            kernel,
            out_shape=jax.ShapeDtypeStruct((16, npad), jnp.float32),
            grid=(npad // tn_eff,),
            in_specs=[
                pl.BlockSpec((3, tn_eff), lambda i: (0, i)),
                # grid-invariant RHS: whole-array VMEM residence, single copy,
                # no per-step double buffering.
                pl.BlockSpec(memory_space=pltpu.MemorySpace.VMEM),
                pl.BlockSpec(memory_space=pltpu.MemorySpace.VMEM),
            ],
            out_specs=pl.BlockSpec((16, tn_eff), lambda i: (0, i)),
            compiler_params=pltpu.CompilerParams(
                dimension_semantics=("parallel",),
                vmem_limit_bytes=vmem_limit),
        )(pts_t, rhs_hi, rhs_lo)

        disp = out[0:3, :n].T                                   # (n, 3)
        if not self.return_jacobian:
            return disp
        jac = jnp.transpose(out[4:16, :n].reshape(3, 4, n)[:, :3, :],
                            (2, 1, 0))                          # (n, c, d)
        return disp, jac


# ------------------------- pure-JAX reference check --------------------------

def ffd_reference(points, grid, origin, spacing):
    origin = jnp.array(origin, jnp.float32)
    spacing = jnp.array(spacing, jnp.float32)
    p = (points - origin) / spacing
    base = jnp.floor(p).astype(jnp.int32) - 1
    t = p - jnp.floor(p)
    gx, gy, gz, _ = grid.shape
    w = [_bspline_w(t[:, d]) for d in range(3)]
    dw = [_bspline_dw(t[:, d]) for d in range(3)]
    disp = jnp.zeros((points.shape[0], 3), jnp.float32)
    jac = jnp.zeros((points.shape[0], 3, 3), jnp.float32)
    for a in range(4):
        ia = jnp.clip(base[:, 0] + a, 0, gx - 1)
        for b in range(4):
            ib = jnp.clip(base[:, 1] + b, 0, gy - 1)
            for cc in range(4):
                ic = jnp.clip(base[:, 2] + cc, 0, gz - 1)
                g = grid[ia, ib, ic]                          # (N, 3)
                disp = disp + (w[0][a] * w[1][b] * w[2][cc])[:, None] * g
                jac = jac.at[:, :, 0].add(
                    (dw[0][a] * w[1][b] * w[2][cc])[:, None] * g)
                jac = jac.at[:, :, 1].add(
                    (w[0][a] * dw[1][b] * w[2][cc])[:, None] * g)
                jac = jac.at[:, :, 2].add(
                    (w[0][a] * w[1][b] * dw[2][cc])[:, None] * g)
    jac = jac + jnp.eye(3, dtype=jnp.float32)[None]
    return disp, jac


# ----------------------------------- main ------------------------------------

if __name__ == "__main__":
    nvox = (16, 16, 16)
    dvox = (1.0, 1.0, 1.0)
    grid_spacing_in_voxels = (4, 4, 4)

    ffd = FFD(nvox, dvox, grid_spacing_in_voxels, nchannels=3,
              return_jacobian=True)
    gx, gy, gz = ffd.grid_dim                                  # 7, 7, 7

    key = jax.random.PRNGKey(0)
    k1, k2 = jax.random.split(key)
    n_points = 200
    half = jnp.array([dvox[i] * nvox[i] / 2.0 for i in range(3)], jnp.float32)
    points = jax.random.uniform(k1, (n_points, 3), jnp.float32,
                                -0.9, 0.9) * half
    grid = 0.1 * jax.random.normal(k2, (gx, gy, gz, 3), jnp.float32)

    disp, jac = ffd(points, grid)
    jax.block_until_ready((disp, jac))

    disp_ref, jac_ref = ffd_reference(points, grid, ffd.grid_origin,
                                      ffd.grid_spacing)
    assert disp.shape == (n_points, 3) and jac.shape == (n_points, 3, 3)
    assert jnp.allclose(disp, disp_ref, atol=1e-3, rtol=1e-3)
    assert jnp.allclose(jac, jac_ref, atol=1e-3, rtol=1e-3)

    print("KERNEL_OK")
</pallas_src>

<mosaic_0001>
module attributes {stable_mosaic.version = 11 : i64} {
  func.func @_ffd_kernel(%arg0: i32, %arg1: memref<3x128xf32, #tpu.memory_space<vmem>>, %arg2: memref<256x1024xbf16, #tpu.memory_space<vmem>>, %arg3: memref<256x1024xbf16, #tpu.memory_space<vmem>>, %arg4: memref<16x128xf32, #tpu.memory_space<vmem>>) attributes {dimension_semantics = [#tpu.dimension_semantics<parallel>], iteration_bounds = array<i64: 2>, scalar_prefetch = 0 : i64, scratch_operands = 0 : i64, tpu.core_type = #tpu.core_type<tc>, window_params = [{transform_indices = @transform_0, window_bounds = array<i64: 3, 128>}, {pipeline_mode = #tpu.pipeline_mode<synchronous>, transform_indices = @transform_1, window_bounds = array<i64: 256, 1024>}, {pipeline_mode = #tpu.pipeline_mode<synchronous>, transform_indices = @transform_2, window_bounds = array<i64: 256, 1024>}, {transform_indices = @transform_3, window_bounds = array<i64: 16, 128>}]} {
    %c0 = arith.constant 0 : index
    %c0_0 = arith.constant 0 : index
    %0 = vector.load %arg1[%c0, %c0_0] : memref<3x128xf32, #tpu.memory_space<vmem>>, vector<3x128xf32>
    %1 = vector.extract_strided_slice %0 {offsets = [0, 0], sizes = [1, 128], strides = [1, 1]} : vector<3x128xf32> to vector<1x128xf32>
    %cst = arith.constant -1.200000e+01 : f32
    %2 = vector.broadcast %cst : f32 to vector<1x128xf32>
    %3 = arith.subf %1, %2 : vector<1x128xf32>
    %cst_1 = arith.constant 2.500000e-01 : f32
    %4 = vector.broadcast %cst_1 : f32 to vector<1x128xf32>
    %5 = arith.mulf %3, %4 : vector<1x128xf32>
    %6 = vector.extract_strided_slice %0 {offsets = [1, 0], sizes = [1, 128], strides = [1, 1]} : vector<3x128xf32> to vector<1x128xf32>
    %cst_2 = arith.constant -1.200000e+01 : f32
    %7 = vector.broadcast %cst_2 : f32 to vector<1x128xf32>
    %8 = arith.subf %6, %7 : vector<1x128xf32>
    %cst_3 = arith.constant 2.500000e-01 : f32
    %9 = vector.broadcast %cst_3 : f32 to vector<1x128xf32>
    %10 = arith.mulf %8, %9 : vector<1x128xf32>
    %11 = vector.extract_strided_slice %0 {offsets = [2, 0], sizes = [1, 128], strides = [1, 1]} : vector<3x128xf32> to vector<1x128xf32>
    %cst_4 = arith.constant -1.200000e+01 : f32
    %12 = vector.broadcast %cst_4 : f32 to vector<1x128xf32>
    %13 = arith.subf %11, %12 : vector<1x128xf32>
    %cst_5 = arith.constant 2.500000e-01 : f32
    %14 = vector.broadcast %cst_5 : f32 to vector<1x128xf32>
    %15 = arith.mulf %13, %14 : vector<1x128xf32>
    %16 = math.floor %5 : vector<1x128xf32>
    %17 = math.floor %10 : vector<1x128xf32>
    %18 = math.floor %15 : vector<1x128xf32>
    %19 = arith.subf %5, %16 : vector<1x128xf32>
    %20 = arith.subf %10, %17 : vector<1x128xf32>
    %21 = arith.subf %15, %18 : vector<1x128xf32>
    %22 = arith.fptosi %16 : vector<1x128xf32> to vector<1x128xi32>
    %c1_i32 = arith.constant 1 : i32
    %23 = vector.broadcast %c1_i32 : i32 to vector<1x128xi32>
    %24 = arith.subi %22, %23 : vector<1x128xi32>
    %c-3_i32 = arith.constant -3 : i32
    %c6_i32 = arith.constant 6 : i32
    %25 = vector.broadcast %c-3_i32 : i32 to vector<1x128xi32>
    %26 = arith.maxsi %25, %24 : vector<1x128xi32>
    %27 = vector.broadcast %c6_i32 : i32 to vector<1x128xi32>
    %28 = arith.minsi %27, %26 : vector<1x128xi32>
    %c3_i32 = arith.constant 3 : i32
    %29 = vector.broadcast %c3_i32 : i32 to vector<1x128xi32>
    %30 = arith.addi %28, %29 : vector<1x128xi32>
    %31 = arith.fptosi %17 : vector<1x128xf32> to vector<1x128xi32>
    %c1_i32_6 = arith.constant 1 : i32
    %32 = vector.broadcast %c1_i32_6 : i32 to vector<1x128xi32>
    %33 = arith.subi %31, %32 : vector<1x128xi32>
    %c-3_i32_7 = arith.constant -3 : i32
    %c6_i32_8 = arith.constant 6 : i32
    %34 = vector.broadcast %c-3_i32_7 : i32 to vector<1x128xi32>
    %35 = arith.maxsi %34, %33 : vector<1x128xi32>
    %36 = vector.broadcast %c6_i32_8 : i32 to vector<1x128xi32>
    %37 = arith.minsi %36, %35 : vector<1x128xi32>
    %c3_i32_9 = arith.constant 3 : i32
    %38 = vector.broadcast %c3_i32_9 : i32 to vector<1x128xi32>
    %39 = arith.addi %37, %38 : vector<1x128xi32>
    %40 = arith.fptosi %18 : vector<1x128xf32> to vector<1x128xi32>
    %c1_i32_10 = arith.constant 1 : i32
    %41 = vector.broadcast %c1_i32_10 : i32 to vector<1x128xi32>
    %42 = arith.subi %40, %41 : vector<1x128xi32>
    %c-3_i32_11 = arith.constant -3 : i32
    %c6_i32_12 = arith.constant 6 : i32
    %43 = vector.broadcast %c-3_i32_11 : i32 to vector<1x128xi32>
    %44 = arith.maxsi %43, %42 : vector<1x128xi32>
    %45 = vector.broadcast %c6_i32_12 : i32 to vector<1x128xi32>
    %46 = arith.minsi %45, %44 : vector<1x128xi32>
    %c3_i32_13 = arith.constant 3 : i32
    %47 = vector.broadcast %c3_i32_13 : i32 to vector<1x128xi32>
    %48 = arith.addi %46, %47 : vector<1x128xi32>
    %c10_i32 = arith.constant 10 : i32
    %49 = vector.broadcast %c10_i32 : i32 to vector<1x128xi32>
    %50 = arith.muli %30, %49 : vector<1x128xi32>
    %51 = arith.addi %50, %39 : vector<1x128xi32>
    %c10_i32_14 = arith.constant 10 : i32
    %52 = vector.broadcast %c10_i32_14 : i32 to vector<1x128xi32>
    %53 = arith.muli %51, %52 : vector<1x128xi32>
    %54 = arith.addi %53, %48 : vector<1x128xi32>
    %55 = tpu.iota {dimensions = array<i32: 0>} : vector<1024x128xi32>
    %56 = vector.broadcast %54 : vector<1x128xi32> to vector<1024x128xi32>
    %57 = arith.cmpi eq, %55, %56 : vector<1024x128xi32>
    %cst_15 = arith.constant 1.000000e+00 : f32
    %cst_16 = arith.constant 0.000000e+00 : f32
    %58 = vector.broadcast %cst_15 : f32 to vector<1024x128xf32>
    %59 = vector.broadcast %cst_16 : f32 to vector<1024x128xf32>
    %60 = arith.select %57, %58, %59 : vector<1024x128xi1>, vector<1024x128xf32>
    %61 = arith.truncf %60 : vector<1024x128xf32> to vector<1024x128xbf16>
    %c0_17 = arith.constant 0 : index
    %c0_18 = arith.constant 0 : index
    %62 = vector.load %arg2[%c0_17, %c0_18] : memref<256x1024xbf16, #tpu.memory_space<vmem>>, vector<256x1024xbf16>
    %cst_19 = arith.constant dense<0.000000e+00> : vector<256x128xf32>
    %63 = tpu.matmul %62, %61, %cst_19 {dimension_numbers = #tpu.dot_dimension_numbers<[1], [0], [0], [1], [0, 0, 1, 1], [], []>} : vector<256x1024xbf16>, vector<1024x128xbf16>, vector<256x128xf32> -> vector<256x128xf32>
    %c0_20 = arith.constant 0 : index
    %c0_21 = arith.constant 0 : index
    %64 = vector.load %arg3[%c0_20, %c0_21] : memref<256x1024xbf16, #tpu.memory_space<vmem>>, vector<256x1024xbf16>
    %cst_22 = arith.constant dense<0.000000e+00> : vector<256x128xf32>
    %65 = tpu.matmul %64, %61, %cst_22 {dimension_numbers = #tpu.dot_dimension_numbers<[1], [0], [0], [1], [0, 0, 1, 1], [], []>} : vector<256x1024xbf16>, vector<1024x128xbf16>, vector<256x128xf32> -> vector<256x128xf32>
    %66 = arith.addf %63, %65 : vector<256x128xf32>
    %67 = arith.mulf %19, %19 : vector<1x128xf32>
    %68 = arith.mulf %67, %19 : vector<1x128xf32>
    %cst_23 = arith.constant 3.000000e+00 : f32
    %69 = vector.broadcast %cst_23 : f32 to vector<1x128xf32>
    %70 = arith.mulf %69, %19 : vector<1x128xf32>
    %cst_24 = arith.constant 1.000000e+00 : f32
    %71 = vector.broadcast %cst_24 : f32 to vector<1x128xf32>
    %72 = arith.subf %71, %70 : vector<1x128xf32>
    %cst_25 = arith.constant 3.000000e+00 : f32
    %73 = vector.broadcast %cst_25 : f32 to vector<1x128xf32>
    %74 = arith.mulf %73, %67 : vector<1x128xf32>
    %75 = arith.addf %72, %74 : vector<1x128xf32>
    %76 = arith.subf %75, %68 : vector<1x128xf32>
    %cst_26 = arith.constant 6.000000e+00 : f32
    %77 = vector.broadcast %cst_26 : f32 to vector<1x128xf32>
    %78 = arith.divf %76, %77 : vector<1x128xf32>
    %cst_27 = arith.constant 6.000000e+00 : f32
    %79 = vector.broadcast %cst_27 : f32 to vector<1x128xf32>
    %80 = arith.mulf %79, %67 : vector<1x128xf32>
    %cst_28 = arith.constant 4.000000e+00 : f32
    %81 = vector.broadcast %cst_28 : f32 to vector<1x128xf32>
    %82 = arith.subf %81, %80 : vector<1x128xf32>
    %cst_29 = arith.constant 3.000000e+00 : f32
    %83 = vector.broadcast %cst_29 : f32 to vector<1x128xf32>
    %84 = arith.mulf %83, %68 : vector<1x128xf32>
    %85 = arith.addf %82, %84 : vector<1x128xf32>
    %cst_30 = arith.constant 6.000000e+00 : f32
    %86 = vector.broadcast %cst_30 : f32 to vector<1x128xf32>
    %87 = arith.divf %85, %86 : vector<1x128xf32>
    %cst_31 = arith.constant 3.000000e+00 : f32
    %88 = vector.broadcast %cst_31 : f32 to vector<1x128xf32>
    %89 = arith.mulf %88, %19 : vector<1x128xf32>
    %cst_32 = arith.constant 1.000000e+00 : f32
    %90 = vector.broadcast %cst_32 : f32 to vector<1x128xf32>
    %91 = arith.addf %90, %89 : vector<1x128xf32>
    %cst_33 = arith.constant 3.000000e+00 : f32
    %92 = vector.broadcast %cst_33 : f32 to vector<1x128xf32>
    %93 = arith.mulf %92, %67 : vector<1x128xf32>
    %94 = arith.addf %91, %93 : vector<1x128xf32>
    %cst_34 = arith.constant 3.000000e+00 : f32
    %95 = vector.broadcast %cst_34 : f32 to vector<1x128xf32>
    %96 = arith.mulf %95, %68 : vector<1x128xf32>
    %97 = arith.subf %94, %96 : vector<1x128xf32>
    %cst_35 = arith.constant 6.000000e+00 : f32
    %98 = vector.broadcast %cst_35 : f32 to vector<1x128xf32>
    %99 = arith.divf %97, %98 : vector<1x128xf32>
    %cst_36 = arith.constant 6.000000e+00 : f32
    %100 = vector.broadcast %cst_36 : f32 to vector<1x128xf32>
    %101 = arith.divf %68, %100 : vector<1x128xf32>
    %102 = arith.mulf %20, %20 : vector<1x128xf32>
    %103 = arith.mulf %102, %20 : vector<1x128xf32>
    %cst_37 = arith.constant 3.000000e+00 : f32
    %104 = vector.broadcast %cst_37 : f32 to vector<1x128xf32>
    %105 = arith.mulf %104, %20 : vector<1x128xf32>
    %cst_38 = arith.constant 1.000000e+00 : f32
    %106 = vector.broadcast %cst_38 : f32 to vector<1x128xf32>
    %107 = arith.subf %106, %105 : vector<1x128xf32>
    %cst_39 = arith.constant 3.000000e+00 : f32
    %108 = vector.broadcast %cst_39 : f32 to vector<1x128xf32>
    %109 = arith.mulf %108, %102 : vector<1x128xf32>
    %110 = arith.addf %107, %109 : vector<1x128xf32>
    %111 = arith.subf %110, %103 : vector<1x128xf32>
    %cst_40 = arith.constant 6.000000e+00 : f32
    %112 = vector.broadcast %cst_40 : f32 to vector<1x128xf32>
    %113 = arith.divf %111, %112 : vector<1x128xf32>
    %cst_41 = arith.constant 6.000000e+00 : f32
    %114 = vector.broadcast %cst_41 : f32 to vector<1x128xf32>
    %115 = arith.mulf %114, %102 : vector<1x128xf32>
    %cst_42 = arith.constant 4.000000e+00 : f32
    %116 = vector.broadcast %cst_42 : f32 to vector<1x128xf32>
    %117 = arith.subf %116, %115 : vector<1x128xf32>
    %cst_43 = arith.constant 3.000000e+00 : f32
    %118 = vector.broadcast %cst_43 : f32 to vector<1x128xf32>
    %119 = arith.mulf %118, %103 : vector<1x128xf32>
    %120 = arith.addf %117, %119 : vector<1x128xf32>
    %cst_44 = arith.constant 6.000000e+00 : f32
    %121 = vector.broadcast %cst_44 : f32 to vector<1x128xf32>
    %122 = arith.divf %120, %121 : vector<1x128xf32>
    %cst_45 = arith.constant 3.000000e+00 : f32
    %123 = vector.broadcast %cst_45 : f32 to vector<1x128xf32>
    %124 = arith.mulf %123, %20 : vector<1x128xf32>
    %cst_46 = arith.constant 1.000000e+00 : f32
    %125 = vector.broadcast %cst_46 : f32 to vector<1x128xf32>
    %126 = arith.addf %125, %124 : vector<1x128xf32>
    %cst_47 = arith.constant 3.000000e+00 : f32
    %127 = vector.broadcast %cst_47 : f32 to vector<1x128xf32>
    %128 = arith.mulf %127, %102 : vector<1x128xf32>
    %129 = arith.addf %126, %128 : vector<1x128xf32>
    %cst_48 = arith.constant 3.000000e+00 : f32
    %130 = vector.broadcast %cst_48 : f32 to vector<1x128xf32>
    %131 = arith.mulf %130, %103 : vector<1x128xf32>
    %132 = arith.subf %129, %131 : vector<1x128xf32>
    %cst_49 = arith.constant 6.000000e+00 : f32
    %133 = vector.broadcast %cst_49 : f32 to vector<1x128xf32>
    %134 = arith.divf %132, %133 : vector<1x128xf32>
    %cst_50 = arith.constant 6.000000e+00 : f32
    %135 = vector.broadcast %cst_50 : f32 to vector<1x128xf32>
    %136 = arith.divf %103, %135 : vector<1x128xf32>
    %137 = arith.mulf %21, %21 : vector<1x128xf32>
    %138 = arith.mulf %137, %21 : vector<1x128xf32>
    %cst_51 = arith.constant 3.000000e+00 : f32
    %139 = vector.broadcast %cst_51 : f32 to vector<1x128xf32>
    %140 = arith.mulf %139, %21 : vector<1x128xf32>
    %cst_52 = arith.constant 1.000000e+00 : f32
    %141 = vector.broadcast %cst_52 : f32 to vector<1x128xf32>
    %142 = arith.subf %141, %140 : vector<1x128xf32>
    %cst_53 = arith.constant 3.000000e+00 : f32
    %143 = vector.broadcast %cst_53 : f32 to vector<1x128xf32>
    %144 = arith.mulf %143, %137 : vector<1x128xf32>
    %145 = arith.addf %142, %144 : vector<1x128xf32>
    %146 = arith.subf %145, %138 : vector<1x128xf32>
    %cst_54 = arith.constant 6.000000e+00 : f32
    %147 = vector.broadcast %cst_54 : f32 to vector<1x128xf32>
    %148 = arith.divf %146, %147 : vector<1x128xf32>
    %cst_55 = arith.constant 6.000000e+00 : f32
    %149 = vector.broadcast %cst_55 : f32 to vector<1x128xf32>
    %150 = arith.mulf %149, %137 : vector<1x128xf32>
    %cst_56 = arith.constant 4.000000e+00 : f32
    %151 = vector.broadcast %cst_56 : f32 to vector<1x128xf32>
    %152 = arith.subf %151, %150 : vector<1x128xf32>
    %cst_57 = arith.constant 3.000000e+00 : f32
    %153 = vector.broadcast %cst_57 : f32 to vector<1x128xf32>
    %154 = arith.mulf %153, %138 : vector<1x128xf32>
    %155 = arith.addf %152, %154 : vector<1x128xf32>
    %cst_58 = arith.constant 6.000000e+00 : f32
    %156 = vector.broadcast %cst_58 : f32 to vector<1x128xf32>
    %157 = arith.divf %155, %156 : vector<1x128xf32>
    %cst_59 = arith.constant 3.000000e+00 : f32
    %158 = vector.broadcast %cst_59 : f32 to vector<1x128xf32>
    %159 = arith.mulf %158, %21 : vector<1x128xf32>
    %cst_60 = arith.constant 1.000000e+00 : f32
    %160 = vector.broadcast %cst_60 : f32 to vector<1x128xf32>
    %161 = arith.addf %160, %159 : vector<1x128xf32>
    %cst_61 = arith.constant 3.000000e+00 : f32
    %162 = vector.broadcast %cst_61 : f32 to vector<1x128xf32>
    %163 = arith.mulf %162, %137 : vector<1x128xf32>
    %164 = arith.addf %161, %163 : vector<1x128xf32>
    %cst_62 = arith.constant 3.000000e+00 : f32
    %165 = vector.broadcast %cst_62 : f32 to vector<1x128xf32>
    %166 = arith.mulf %165, %138 : vector<1x128xf32>
    %167 = arith.subf %164, %166 : vector<1x128xf32>
    %cst_63 = arith.constant 6.000000e+00 : f32
    %168 = vector.broadcast %cst_63 : f32 to vector<1x128xf32>
    %169 = arith.divf %167, %168 : vector<1x128xf32>
    %cst_64 = arith.constant 6.000000e+00 : f32
    %170 = vector.broadcast %cst_64 : f32 to vector<1x128xf32>
    %171 = arith.divf %138, %170 : vector<1x128xf32>
    %172 = arith.mulf %19, %19 : vector<1x128xf32>
    %cst_65 = arith.constant 6.000000e+00 : f32
    %173 = vector.broadcast %cst_65 : f32 to vector<1x128xf32>
    %174 = arith.mulf %173, %19 : vector<1x128xf32>
    %cst_66 = arith.constant -3.000000e+00 : f32
    %175 = vector.broadcast %cst_66 : f32 to vector<1x128xf32>
    %176 = arith.addf %175, %174 : vector<1x128xf32>
    %cst_67 = arith.constant 3.000000e+00 : f32
    %177 = vector.broadcast %cst_67 : f32 to vector<1x128xf32>
    %178 = arith.mulf %177, %172 : vector<1x128xf32>
    %179 = arith.subf %176, %178 : vector<1x128xf32>
    %cst_68 = arith.constant 6.000000e+00 : f32
    %180 = vector.broadcast %cst_68 : f32 to vector<1x128xf32>
    %181 = arith.divf %179, %180 : vector<1x128xf32>
    %cst_69 = arith.constant 9.000000e+00 : f32
    %182 = vector.broadcast %cst_69 : f32 to vector<1x128xf32>
    %183 = arith.mulf %182, %172 : vector<1x128xf32>
    %cst_70 = arith.constant 1.200000e+01 : f32
    %184 = vector.broadcast %cst_70 : f32 to vector<1x128xf32>
    %185 = arith.mulf %184, %19 : vector<1x128xf32>
    %186 = arith.subf %183, %185 : vector<1x128xf32>
    %cst_71 = arith.constant 6.000000e+00 : f32
    %187 = vector.broadcast %cst_71 : f32 to vector<1x128xf32>
    %188 = arith.divf %186, %187 : vector<1x128xf32>
    %cst_72 = arith.constant 6.000000e+00 : f32
    %189 = vector.broadcast %cst_72 : f32 to vector<1x128xf32>
    %190 = arith.mulf %189, %19 : vector<1x128xf32>
    %cst_73 = arith.constant 3.000000e+00 : f32
    %191 = vector.broadcast %cst_73 : f32 to vector<1x128xf32>
    %192 = arith.addf %191, %190 : vector<1x128xf32>
    %cst_74 = arith.constant 9.000000e+00 : f32
    %193 = vector.broadcast %cst_74 : f32 to vector<1x128xf32>
    %194 = arith.mulf %193, %172 : vector<1x128xf32>
    %195 = arith.subf %192, %194 : vector<1x128xf32>
    %cst_75 = arith.constant 6.000000e+00 : f32
    %196 = vector.broadcast %cst_75 : f32 to vector<1x128xf32>
    %197 = arith.divf %195, %196 : vector<1x128xf32>
    %cst_76 = arith.constant 3.000000e+00 : f32
    %198 = vector.broadcast %cst_76 : f32 to vector<1x128xf32>
    %199 = arith.mulf %198, %172 : vector<1x128xf32>
    %cst_77 = arith.constant 6.000000e+00 : f32
    %200 = vector.broadcast %cst_77 : f32 to vector<1x128xf32>
    %201 = arith.divf %199, %200 : vector<1x128xf32>
    %202 = arith.mulf %20, %20 : vector<1x128xf32>
    %cst_78 = arith.constant 6.000000e+00 : f32
    %203 = vector.broadcast %cst_78 : f32 to vector<1x128xf32>
    %204 = arith.mulf %203, %20 : vector<1x128xf32>
    %cst_79 = arith.constant -3.000000e+00 : f32
    %205 = vector.broadcast %cst_79 : f32 to vector<1x128xf32>
    %206 = arith.addf %205, %204 : vector<1x128xf32>
    %cst_80 = arith.constant 3.000000e+00 : f32
    %207 = vector.broadcast %cst_80 : f32 to vector<1x128xf32>
    %208 = arith.mulf %207, %202 : vector<1x128xf32>
    %209 = arith.subf %206, %208 : vector<1x128xf32>
    %cst_81 = arith.constant 6.000000e+00 : f32
    %210 = vector.broadcast %cst_81 : f32 to vector<1x128xf32>
    %211 = arith.divf %209, %210 : vector<1x128xf32>
    %cst_82 = arith.constant 9.000000e+00 : f32
    %212 = vector.broadcast %cst_82 : f32 to vector<1x128xf32>
    %213 = arith.mulf %212, %202 : vector<1x128xf32>
    %cst_83 = arith.constant 1.200000e+01 : f32
    %214 = vector.broadcast %cst_83 : f32 to vector<1x128xf32>
    %215 = arith.mulf %214, %20 : vector<1x128xf32>
    %216 = arith.subf %213, %215 : vector<1x128xf32>
    %cst_84 = arith.constant 6.000000e+00 : f32
    %217 = vector.broadcast %cst_84 : f32 to vector<1x128xf32>
    %218 = arith.divf %216, %217 : vector<1x128xf32>
    %cst_85 = arith.constant 6.000000e+00 : f32
    %219 = vector.broadcast %cst_85 : f32 to vector<1x128xf32>
    %220 = arith.mulf %219, %20 : vector<1x128xf32>
    %cst_86 = arith.constant 3.000000e+00 : f32
    %221 = vector.broadcast %cst_86 : f32 to vector<1x128xf32>
    %222 = arith.addf %221, %220 : vector<1x128xf32>
    %cst_87 = arith.constant 9.000000e+00 : f32
    %223 = vector.broadcast %cst_87 : f32 to vector<1x128xf32>
    %224 = arith.mulf %223, %202 : vector<1x128xf32>
    %225 = arith.subf %222, %224 : vector<1x128xf32>
    %cst_88 = arith.constant 6.000000e+00 : f32
    %226 = vector.broadcast %cst_88 : f32 to vector<1x128xf32>
    %227 = arith.divf %225, %226 : vector<1x128xf32>
    %cst_89 = arith.constant 3.000000e+00 : f32
    %228 = vector.broadcast %cst_89 : f32 to vector<1x128xf32>
    %229 = arith.mulf %228, %202 : vector<1x128xf32>
    %cst_90 = arith.constant 6.000000e+00 : f32
    %230 = vector.broadcast %cst_90 : f32 to vector<1x128xf32>
    %231 = arith.divf %229, %230 : vector<1x128xf32>
    %232 = arith.mulf %21, %21 : vector<1x128xf32>
    %cst_91 = arith.constant 6.000000e+00 : f32
    %233 = vector.broadcast %cst_91 : f32 to vector<1x128xf32>
    %234 = arith.mulf %233, %21 : vector<1x128xf32>
    %cst_92 = arith.constant -3.000000e+00 : f32
    %235 = vector.broadcast %cst_92 : f32 to vector<1x128xf32>
    %236 = arith.addf %235, %234 : vector<1x128xf32>
    %cst_93 = arith.constant 3.000000e+00 : f32
    %237 = vector.broadcast %cst_93 : f32 to vector<1x128xf32>
    %238 = arith.mulf %237, %232 : vector<1x128xf32>
    %239 = arith.subf %236, %238 : vector<1x128xf32>
    %cst_94 = arith.constant 6.000000e+00 : f32
    %240 = vector.broadcast %cst_94 : f32 to vector<1x128xf32>
    %241 = arith.divf %239, %240 : vector<1x128xf32>
    %cst_95 = arith.constant 9.000000e+00 : f32
    %242 = vector.broadcast %cst_95 : f32 to vector<1x128xf32>
    %243 = arith.mulf %242, %232 : vector<1x128xf32>
    %cst_96 = arith.constant 1.200000e+01 : f32
    %244 = vector.broadcast %cst_96 : f32 to vector<1x128xf32>
    %245 = arith.mulf %244, %21 : vector<1x128xf32>
    %246 = arith.subf %243, %245 : vector<1x128xf32>
    %cst_97 = arith.constant 6.000000e+00 : f32
    %247 = vector.broadcast %cst_97 : f32 to vector<1x128xf32>
    %248 = arith.divf %246, %247 : vector<1x128xf32>
    %cst_98 = arith.constant 6.000000e+00 : f32
    %249 = vector.broadcast %cst_98 : f32 to vector<1x128xf32>
    %250 = arith.mulf %249, %21 : vector<1x128xf32>
    %cst_99 = arith.constant 3.000000e+00 : f32
    %251 = vector.broadcast %cst_99 : f32 to vector<1x128xf32>
    %252 = arith.addf %251, %250 : vector<1x128xf32>
    %cst_100 = arith.constant 9.000000e+00 : f32
    %253 = vector.broadcast %cst_100 : f32 to vector<1x128xf32>
    %254 = arith.mulf %253, %232 : vector<1x128xf32>
    %255 = arith.subf %252, %254 : vector<1x128xf32>
    %cst_101 = arith.constant 6.000000e+00 : f32
    %256 = vector.broadcast %cst_101 : f32 to vector<1x128xf32>
    %257 = arith.divf %255, %256 : vector<1x128xf32>
    %cst_102 = arith.constant 3.000000e+00 : f32
    %258 = vector.broadcast %cst_102 : f32 to vector<1x128xf32>
    %259 = arith.mulf %258, %232 : vector<1x128xf32>
    %cst_103 = arith.constant 6.000000e+00 : f32
    %260 = vector.broadcast %cst_103 : f32 to vector<1x128xf32>
    %261 = arith.divf %259, %260 : vector<1x128xf32>
    %262 = vector.extract_strided_slice %66 {offsets = [0, 0], sizes = [64, 128], strides = [1, 1]} : vector<256x128xf32> to vector<64x128xf32>
    %263 = vector.broadcast %148 : vector<1x128xf32> to vector<64x128xf32>
    %264 = arith.mulf %263, %262 : vector<64x128xf32>
    %265 = vector.broadcast %241 : vector<1x128xf32> to vector<64x128xf32>
    %266 = arith.mulf %265, %262 : vector<64x128xf32>
    %267 = vector.extract_strided_slice %66 {offsets = [64, 0], sizes = [64, 128], strides = [1, 1]} : vector<256x128xf32> to vector<64x128xf32>
    %268 = vector.broadcast %157 : vector<1x128xf32> to vector<64x128xf32>
    %269 = arith.mulf %268, %267 : vector<64x128xf32>
    %270 = arith.addf %264, %269 : vector<64x128xf32>
    %271 = vector.broadcast %248 : vector<1x128xf32> to vector<64x128xf32>
    %272 = arith.mulf %271, %267 : vector<64x128xf32>
    %273 = arith.addf %266, %272 : vector<64x128xf32>
    %274 = vector.extract_strided_slice %66 {offsets = [128, 0], sizes = [64, 128], strides = [1, 1]} : vector<256x128xf32> to vector<64x128xf32>
    %275 = vector.broadcast %169 : vector<1x128xf32> to vector<64x128xf32>
    %276 = arith.mulf %275, %274 : vector<64x128xf32>
    %277 = arith.addf %270, %276 : vector<64x128xf32>
    %278 = vector.broadcast %257 : vector<1x128xf32> to vector<64x128xf32>
    %279 = arith.mulf %278, %274 : vector<64x128xf32>
    %280 = arith.addf %273, %279 : vector<64x128xf32>
    %281 = vector.extract_strided_slice %66 {offsets = [192, 0], sizes = [64, 128], strides = [1, 1]} : vector<256x128xf32> to vector<64x128xf32>
    %282 = vector.broadcast %171 : vector<1x128xf32> to vector<64x128xf32>
    %283 = arith.mulf %282, %281 : vector<64x128xf32>
    %284 = arith.addf %277, %283 : vector<64x128xf32>
    %285 = vector.broadcast %261 : vector<1x128xf32> to vector<64x128xf32>
    %286 = arith.mulf %285, %281 : vector<64x128xf32>
    %287 = arith.addf %280, %286 : vector<64x128xf32>
    %288 = vector.extract_strided_slice %284 {offsets = [0, 0], sizes = [16, 128], strides = [1, 1]} : vector<64x128xf32> to vector<16x128xf32>
    %289 = vector.extract_strided_slice %287 {offsets = [0, 0], sizes = [16, 128], strides = [1, 1]} : vector<64x128xf32> to vector<16x128xf32>
    %290 = vector.broadcast %113 : vector<1x128xf32> to vector<16x128xf32>
    %291 = arith.mulf %290, %288 : vector<16x128xf32>
    %292 = vector.broadcast %211 : vector<1x128xf32> to vector<16x128xf32>
    %293 = arith.mulf %292, %288 : vector<16x128xf32>
    %294 = vector.broadcast %113 : vector<1x128xf32> to vector<16x128xf32>
    %295 = arith.mulf %294, %289 : vector<16x128xf32>
    %296 = vector.extract_strided_slice %284 {offsets = [16, 0], sizes = [16, 128], strides = [1, 1]} : vector<64x128xf32> to vector<16x128xf32>
    %297 = vector.extract_strided_slice %287 {offsets = [16, 0], sizes = [16, 128], strides = [1, 1]} : vector<64x128xf32> to vector<16x128xf32>
    %298 = vector.broadcast %122 : vector<1x128xf32> to vector<16x128xf32>
    %299 = arith.mulf %298, %296 : vector<16x128xf32>
    %300 = arith.addf %291, %299 : vector<16x128xf32>
    %301 = vector.broadcast %218 : vector<1x128xf32> to vector<16x128xf32>
    %302 = arith.mulf %301, %296 : vector<16x128xf32>
    %303 = arith.addf %293, %302 : vector<16x128xf32>
    %304 = vector.broadcast %122 : vector<1x128xf32> to vector<16x128xf32>
    %305 = arith.mulf %304, %297 : vector<16x128xf32>
    %306 = arith.addf %295, %305 : vector<16x128xf32>
    %307 = vector.extract_strided_slice %284 {offsets = [32, 0], sizes = [16, 128], strides = [1, 1]} : vector<64x128xf32> to vector<16x128xf32>
    %308 = vector.extract_strided_slice %287 {offsets = [32, 0], sizes = [16, 128], strides = [1, 1]} : vector<64x128xf32> to vector<16x128xf32>
    %309 = vector.broadcast %134 : vector<1x128xf32> to vector<16x128xf32>
    %310 = arith.mulf %309, %307 : vector<16x128xf32>
    %311 = arith.addf %300, %310 : vector<16x128xf32>
    %312 = vector.broadcast %227 : vector<1x128xf32> to vector<16x128xf32>
    %313 = arith.mulf %312, %307 : vector<16x128xf32>
    %314 = arith.addf %303, %313 : vector<16x128xf32>
    %315 = vector.broadcast %134 : vector<1x128xf32> to vector<16x128xf32>
    %316 = arith.mulf %315, %308 : vector<16x128xf32>
    %317 = arith.addf %306, %316 : vector<16x128xf32>
    %318 = vector.extract_strided_slice %284 {offsets = [48, 0], sizes = [16, 128], strides = [1, 1]} : vector<64x128xf32> to vector<16x128xf32>
    %319 = vector.extract_strided_slice %287 {offsets = [48, 0], sizes = [16, 128], strides = [1, 1]} : vector<64x128xf32> to vector<16x128xf32>
    %320 = vector.broadcast %136 : vector<1x128xf32> to vector<16x128xf32>
    %321 = arith.mulf %320, %318 : vector<16x128xf32>
    %322 = arith.addf %311, %321 : vector<16x128xf32>
    %323 = vector.broadcast %231 : vector<1x128xf32> to vector<16x128xf32>
    %324 = arith.mulf %323, %318 : vector<16x128xf32>
    %325 = arith.addf %314, %324 : vector<16x128xf32>
    %326 = vector.broadcast %136 : vector<1x128xf32> to vector<16x128xf32>
    %327 = arith.mulf %326, %319 : vector<16x128xf32>
    %328 = arith.addf %317, %327 : vector<16x128xf32>
    %329 = vector.extract_strided_slice %322 {offsets = [0, 0], sizes = [4, 128], strides = [1, 1]} : vector<16x128xf32> to vector<4x128xf32>
    %330 = vector.extract_strided_slice %325 {offsets = [0, 0], sizes = [4, 128], strides = [1, 1]} : vector<16x128xf32> to vector<4x128xf32>
    %331 = vector.extract_strided_slice %328 {offsets = [0, 0], sizes = [4, 128], strides = [1, 1]} : vector<16x128xf32> to vector<4x128xf32>
    %332 = vector.broadcast %78 : vector<1x128xf32> to vector<4x128xf32>
    %333 = arith.mulf %332, %329 : vector<4x128xf32>
    %334 = vector.broadcast %181 : vector<1x128xf32> to vector<4x128xf32>
    %335 = arith.mulf %334, %329 : vector<4x128xf32>
    %336 = vector.broadcast %78 : vector<1x128xf32> to vector<4x128xf32>
    %337 = arith.mulf %336, %330 : vector<4x128xf32>
    %338 = vector.broadcast %78 : vector<1x128xf32> to vector<4x128xf32>
    %339 = arith.mulf %338, %331 : vector<4x128xf32>
    %340 = vector.extract_strided_slice %322 {offsets = [4, 0], sizes = [4, 128], strides = [1, 1]} : vector<16x128xf32> to vector<4x128xf32>
    %341 = vector.extract_strided_slice %325 {offsets = [4, 0], sizes = [4, 128], strides = [1, 1]} : vector<16x128xf32> to vector<4x128xf32>
    %342 = vector.extract_strided_slice %328 {offsets = [4, 0], sizes = [4, 128], strides = [1, 1]} : vector<16x128xf32> to vector<4x128xf32>
    %343 = vector.broadcast %87 : vector<1x128xf32> to vector<4x128xf32>
    %344 = arith.mulf %343, %340 : vector<4x128xf32>
    %345 = arith.addf %333, %344 : vector<4x128xf32>
    %346 = vector.broadcast %188 : vector<1x128xf32> to vector<4x128xf32>
    %347 = arith.mulf %346, %340 : vector<4x128xf32>
    %348 = arith.addf %335, %347 : vector<4x128xf32>
    %349 = vector.broadcast %87 : vector<1x128xf32> to vector<4x128xf32>
    %350 = arith.mulf %349, %341 : vector<4x128xf32>
    %351 = arith.addf %337, %350 : vector<4x128xf32>
    %352 = vector.broadcast %87 : vector<1x128xf32> to vector<4x128xf32>
    %353 = arith.mulf %352, %342 : vector<4x128xf32>
    %354 = arith.addf %339, %353 : vector<4x128xf32>
    %355 = vector.extract_strided_slice %322 {offsets = [8, 0], sizes = [4, 128], strides = [1, 1]} : vector<16x128xf32> to vector<4x128xf32>
    %356 = vector.extract_strided_slice %325 {offsets = [8, 0], sizes = [4, 128], strides = [1, 1]} : vector<16x128xf32> to vector<4x128xf32>
    %357 = vector.extract_strided_slice %328 {offsets = [8, 0], sizes = [4, 128], strides = [1, 1]} : vector<16x128xf32> to vector<4x128xf32>
    %358 = vector.broadcast %99 : vector<1x128xf32> to vector<4x128xf32>
    %359 = arith.mulf %358, %355 : vector<4x128xf32>
    %360 = arith.addf %345, %359 : vector<4x128xf32>
    %361 = vector.broadcast %197 : vector<1x128xf32> to vector<4x128xf32>
    %362 = arith.mulf %361, %355 : vector<4x128xf32>
    %363 = arith.addf %348, %362 : vector<4x128xf32>
    %364 = vector.broadcast %99 : vector<1x128xf32> to vector<4x128xf32>
    %365 = arith.mulf %364, %356 : vector<4x128xf32>
    %366 = arith.addf %351, %365 : vector<4x128xf32>
    %367 = vector.broadcast %99 : vector<1x128xf32> to vector<4x128xf32>
    %368 = arith.mulf %367, %357 : vector<4x128xf32>
    %369 = arith.addf %354, %368 : vector<4x128xf32>
    %370 = vector.extract_strided_slice %322 {offsets = [12, 0], sizes = [4, 128], strides = [1, 1]} : vector<16x128xf32> to vector<4x128xf32>
    %371 = vector.extract_strided_slice %325 {offsets = [12, 0], sizes = [4, 128], strides = [1, 1]} : vector<16x128xf32> to vector<4x128xf32>
    %372 = vector.extract_strided_slice %328 {offsets = [12, 0], sizes = [4, 128], strides = [1, 1]} : vector<16x128xf32> to vector<4x128xf32>
    %373 = vector.broadcast %101 : vector<1x128xf32> to vector<4x128xf32>
    %374 = arith.mulf %373, %370 : vector<4x128xf32>
    %375 = arith.addf %360, %374 : vector<4x128xf32>
    %376 = vector.broadcast %201 : vector<1x128xf32> to vector<4x128xf32>
    %377 = arith.mulf %376, %370 : vector<4x128xf32>
    %378 = arith.addf %363, %377 : vector<4x128xf32>
    %379 = vector.broadcast %101 : vector<1x128xf32> to vector<4x128xf32>
    %380 = arith.mulf %379, %371 : vector<4x128xf32>
    %381 = arith.addf %366, %380 : vector<4x128xf32>
    %382 = vector.broadcast %101 : vector<1x128xf32> to vector<4x128xf32>
    %383 = arith.mulf %382, %372 : vector<4x128xf32>
    %384 = arith.addf %369, %383 : vector<4x128xf32>
    %385 = tpu.iota {dimensions = array<i32: 0>} : vector<4x128xi32>
    %c0_104 = arith.constant 0 : index
    %c0_105 = arith.constant 0 : index
    %386 = vector.load %arg4[%c0_104, %c0_105] : memref<16x128xf32, #tpu.memory_space<vmem>>, vector<4x128xf32>
    tpu.vector_store %arg4[%c0_104, %c0_105], %375 {strides = array<i32>} : memref<16x128xf32, #tpu.memory_space<vmem>>, vector<4x128xf32>,
    %c0_i32 = arith.constant 0 : i32
    %387 = vector.broadcast %c0_i32 : i32 to vector<4x128xi32>
    %388 = arith.cmpi eq, %385, %387 : vector<4x128xi32>
    %389 = arith.extui %388 : vector<4x128xi1> to vector<4x128xi32>
    %390 = arith.sitofp %389 : vector<4x128xi32> to vector<4x128xf32>
    %391 = arith.addf %378, %390 : vector<4x128xf32>
    %c4 = arith.constant 4 : index
    %c0_106 = arith.constant 0 : index
    %392 = vector.load %arg4[%c4, %c0_106] : memref<16x128xf32, #tpu.memory_space<vmem>>, vector<4x128xf32>
    tpu.vector_store %arg4[%c4, %c0_106], %391 {strides = array<i32>} : memref<16x128xf32, #tpu.memory_space<vmem>>, vector<4x128xf32>,
    %c1_i32_107 = arith.constant 1 : i32
    %393 = vector.broadcast %c1_i32_107 : i32 to vector<4x128xi32>
    %394 = arith.cmpi eq, %385, %393 : vector<4x128xi32>
    %395 = arith.extui %394 : vector<4x128xi1> to vector<4x128xi32>
    %396 = arith.sitofp %395 : vector<4x128xi32> to vector<4x128xf32>
    %397 = arith.addf %381, %396 : vector<4x128xf32>
    %c8 = arith.constant 8 : index
    %c0_108 = arith.constant 0 : index
    %398 = vector.load %arg4[%c8, %c0_108] : memref<16x128xf32, #tpu.memory_space<vmem>>, vector<4x128xf32>
    tpu.vector_store %arg4[%c8, %c0_108], %397 {strides = array<i32>} : memref<16x128xf32, #tpu.memory_space<vmem>>, vector<4x128xf32>,
    %c2_i32 = arith.constant 2 : i32
    %399 = vector.broadcast %c2_i32 : i32 to vector<4x128xi32>
    %400 = arith.cmpi eq, %385, %399 : vector<4x128xi32>
    %401 = arith.extui %400 : vector<4x128xi1> to vector<4x128xi32>
    %402 = arith.sitofp %401 : vector<4x128xi32> to vector<4x128xf32>
    %403 = arith.addf %384, %402 : vector<4x128xf32>
    %c12 = arith.constant 12 : index
    %c0_109 = arith.constant 0 : index
    %404 = vector.load %arg4[%c12, %c0_109] : memref<16x128xf32, #tpu.memory_space<vmem>>, vector<4x128xf32>
    tpu.vector_store %arg4[%c12, %c0_109], %403 {strides = array<i32>} : memref<16x128xf32, #tpu.memory_space<vmem>>, vector<4x128xf32>,
    return
  }
  func.func @transform_0(%arg0: i32) -> (i32, i32) {
    %c0_i32 = arith.constant 0 : i32
    %c0_i32_0 = arith.constant 0 : i32
    return %c0_i32, %arg0 : i32, i32
  }
  func.func @transform_1(%arg0: i32) -> (i32, i32) {
    %c0_i32 = arith.constant 0 : i32
    %c0_i32_0 = arith.constant 0 : i32
    %c0_i32_1 = arith.constant 0 : i32
    return %c0_i32, %c0_i32_0 : i32, i32
  }
  func.func @transform_2(%arg0: i32) -> (i32, i32) {
    %c0_i32 = arith.constant 0 : i32
    %c0_i32_0 = arith.constant 0 : i32
    %c0_i32_1 = arith.constant 0 : i32
    return %c0_i32, %c0_i32_0 : i32, i32
  }
  func.func @transform_3(%arg0: i32) -> (i32, i32) {
    %c0_i32 = arith.constant 0 : i32
    %c0_i32_0 = arith.constant 0 : i32
    return %c0_i32, %arg0 : i32, i32
  }
}

</mosaic_0001>

<bundles_post_ra>
// kernel: tpu_custom_call.1
= control target key start
LH: loop header
LB: loop body
LE: loop exit
PB: predicated region body
PF: predicated region fallthrough
CT: control target
= control target key end

     0   :  { %8 = vsyncpa [#allocation3], 0  ;;  %s7622_s0 = inlined_call_operand.hbm [shape: f32[3,256], index: 0, kind: input, shape index: {}]   ;;  %s7623_s1 = inlined_call_operand.hbm [shape: bf16[256,1024], index: 1, kind: input, shape index: {}]   ;;  %s7624_s2 = inlined_call_operand.hbm [shape: bf16[256,1024], index: 2, kind: input, shape index: {}]   ;;  %s7625_s3 = inlined_call_operand.hbm [shape: f32[16,256], index: 3, kind: output, shape index: {}]  }
   0x1   :  { %10 = vsyncpa [#allocation3 + $0x1], 0 }
   0x2   :  { %11 = vsyncpa [#allocation6], 0 }
   0x3   :  { %12 = vsyncpa [#allocation4], 0 }
   0x4   :  { %14 = vsyncpa [#allocation4 + $0x1], 0  ;;  %s5867_s12 = smov 0   ;;  %s5869_s13 = smov 0  }
   0x5   :  { %s5871_s14 = smov 0   ;;  %s5873_s15 = smov 0  }
   0x6 LB: > { %s130_s18 = sshll.u32 %s7623_s1, 4  ;;  %s5891_s19 = sadd.s32 4294967295, %s5835_s15   ;;  %s5835_s15 = sphi %s5873_s15, %s8026_s15   ;;  %s5831_s14 = sphi %s5871_s14, %s8025_s14   ;;  %s5827_s13 = sphi %s5869_s13, %s8024_s13   ;;  %s5823_s12 = sphi %s5867_s12, %s8023_s12   ;;  %s131_s18 = int_to_ptr.hbm [resolvable:$true] %s130_s18 }
   0x7   : > { %p4040_p0 = scmp.ge.s32.totalorder %s5835_s15, 1  ;;  %p41_p1 = scmp.eq.s32.totalorder %s5891_s19, 0 }
   0x8   : > { %p119_p2 = scmp.lt.s32.totalorder %s5835_s15, 3  ;;  %s5837_s21 = smov [#allocation5]  }
   0x9   : > { %s132_s22 = sshll.u32 %s5837_s21, 4  ;;  %s144_s25 = sshll.u32 %s7624_s2, 4  ;;  %s133_s22 = int_to_ptr.vmem [resolvable:$true] %s132_s22  ;;  %s145_s25 = int_to_ptr.hbm [resolvable:$true] %s144_s25 }
   0xa   : > { %p5896_p3 = pnand %p4040_p0, %p119_p2  ;;  %s5838_s26 = smov [#allocation7]  }
   0xb   : > { %s146_s27 = sshll.u32 %s5838_s26, 4  ;;  %s5839_s28 = smov 512   ;;  %s147_s27 = int_to_ptr.vmem [resolvable:$true] %s146_s27 }
   0xc   : > { %p5610_p4 = pneg %p5896_p3  ;;  %s5840_s29 = smov 32  }
   0xd   : > { %s4039_s30 = sadd.s32 4294967294, %s5835_s15   ;;  %s5910_s4 = sadd.s32 1, %s5835_s15  }
   0xe   : > { %p5611_p6 = pnand %p5610_p4, %p41_p1  ;;  %s24_s5 = ssub.s32 %s5835_s15, %s5910_s4 }
   0xf   : > { %s27_s6 = sadd.s32 1, %s5831_s14  ;;  %p25_p7 = scmp.eq.s32.totalorder %s24_s5, 0 }
  0x10   : > { %5613 = dma.hbm_to_vmem [thread:$0]  (!%p5611_p6), %s131_s18, 16384, %s133_s22, [#allocation6], %s5839_s28, %s5839_s28, %s5840_s29  }
  0x11   : > { %5616 = dma.hbm_to_vmem [thread:$0]  (!%p5611_p6), %s145_s25, 16384, %s147_s27, [#allocation6], %s5839_s28, %s5839_s28, %s5840_s29  }
  0x12   : > { %p34_p8 = scmp.ne.s32.totalorder %s5831_s14, %s5827_s13  ;;  %p35_p9 = scmp.eq.s32.totalorder %s5835_s15, 0 }
  0x13   : > { %p40_p10 = scmp.ne.s32.totalorder %s5827_s13, %s5823_s12  ;;  %p106_p13 = scmp.eq.s32.totalorder %s5891_s19, 1 }
  0x14   : > { %s5921_s7 = scalar_select %p25_p7, %s5831_s14, %s27_s6  }
  0x15   : > { %p5923_p11 = por %p35_p9, %p34_p8  ;;  %p5929_p12 = por %p41_p1, %p40_p10 }
  0x16   : > { %p112_p0 = scmp.eq.s32.totalorder %s4039_s30, 1  ;;  %p5627_p2 = scmp.lt.s32.totalorder %s5835_s15, 2 }
  0x17   : > { %s160_s10 = sand.u32 1, %s5831_s14   ;;  %p5936_p4 = por %p106_p13, %p34_p8 }
  0x18   : > { %p5940_p6 = por %p112_p0, %p40_p10  ;;  %s4044_s17 = sshll.u32 %s160_s10, 2 }
  0x19   : > { %s4045_s18 = sshll.u32 %s5835_s15, 2  ;;  %s164_s24 = scalar_lea.vmem [#allocation2], %s4044_s17 }
  0x1a   : > { %s168_s23 = scalar_lea.hbm %s7622_s0, %s4045_s18  ;;  %s172_s25 = sshll.u32 %s164_s24, 4  ;;  %s173_s25 = int_to_ptr.vmem [resolvable:$true] %s172_s25 }
  0x1b   : > { %s170_s26 = sshll.u32 %s168_s23, 4  ;;  %p5950_p7 = pnand %p5627_p2, %p5923_p11  ;;  %s171_s26 = int_to_ptr.hbm [resolvable:$true] %s170_s26 }
  0x1c   : > { %s161_s28 = scalar_lea.sflag [#allocation3], %s160_s10  ;;  %s5735_s29 = sshra.s32 %s171_s26, 4  ;;  %s5736_s29 = int_to_ptr.hbm [resolvable:$true] %s5735_s29 }
  0x1d   : > { %s5737_s30 = scalar_lea.hbm %s5736_s29, 4  ;;  %p5739_p9 = pneg %p5950_p7 }
  0x1e   : > { %p5738_p8 = scmp.ne.s32.totalorder %s5736_s29, %s5737_s30  ;;  %s5742_s17 = scalar_lea.hbm %s7622_s0, 8 }
  0x1f   : > { %p5743_p11 = scmp.lt.s32.totalorder %s5736_s29, %s7622_s0  ;;  %p5744_p0 = scmp.lt.s32.totalorder %s5742_s17, %s5737_s30 }
  0x20   : > { %p5740_p10 = pnand %p5739_p9, %p5738_p8 }
  0x21   : > { %p5745_p2 = por %p5744_p0, %p5743_p11 }
  0x22   : > { %p5741_p13 = pneg %p5740_p10 }
  0x24   : > { %p5746_p5 = pnand %p5745_p2, %p5741_p13 }
  0x26   : > { %5749 = shalt.err (!%p5746_p5)
}
  0x27   : > { %5620 = dma.hbm_to_vmem [thread:$0]  (!%p5950_p7), %s171_s26, 64, %s173_s25, %s161_s28  }
  0x28   : > { %181 = sbr.rel (%p5896_p3) target bundleno = 1292 (0x50c), region = 32 }
  0x2d   : > { %s5967_s10 = sand.u32 1, %s5827_s13  }
  0x2e   : > { %s4047_s21 = sshll.u32 %s5967_s10, 2  ;;  %s184_s22 = scalar_lea.sflag [#allocation3], %s5967_s10 }
  0x2f   : > { %s187_s23 = scalar_lea.vmem [#allocation2], %s4047_s21 }
  0x30   : > { %5810 = dma.done.wait (%p5929_p12), %s184_s22, 64  }
  0x31   : > { %5812 = vsyncadd (%p5929_p12), %s184_s22, 4294967232 }
  0x32   : > { %5814 = dma.done.wait (%p41_p1), [#allocation6], 32768  }
  0x33   : > { %5816 = vsyncadd (%p41_p1), [#allocation6], 4294934528  ;;  %v221_v0 = vld [vmem:[%s187_s23] sm:$0x7]  ;;  %v239_v8 = vlaneseq  ;;  %v7656_v35 = vmov 1.0|1.0  }
  0x34   : > { %v4051_v1 = vadd.f32 12.0, %v221_v0  ;;  %v7731_v45 = vmov 0  ;;  %v7733_v48 = vmov 0  ;;  %v7737_v54 = vmov 0  ;;  %v4479_v39 = vld [vmem:[#allocation7 + $0x348] sm:$0xf] }
  0x35   : > { %v5984_v12 = vshrl.u32 %v239_v8, 7  ;;  %v7739_v57 = vmov 0  ;;  %v7741_v60 = vmov 0  ;;  %v7744_v63 = vmov 0  ;;  %v4481_v34 = vld [vmem:[#allocation7 + $0x368] sm:$0xf0] }
  0x36   : > { %v5979_v2 = vmul.f32 0.25, %v4051_v1  ;;  %s4050_s20 = sshll.u32 %s5967_s10, 4  ;;  %s5337_s9 = sshll.u32 %s5891_s19, 3 }
  0x37   : > { %7722 = vst [vmem:[#allocation13_spill] sm:$0xff] %v5984_v12  ;;  %v254_v16 = vadd.s32 112, %v5984_v12  ;;  %v255_v17 = vadd.s32 120, %v5984_v12  ;;  %v270_v19 = vadd.s32 240, %v5984_v12  ;;  %v271_v20 = vadd.s32 248, %v5984_v12  ;;  %s3943_s26 = scalar_lea.hbm %s7625_s3, %s5337_s9  ;;  %s220_s19 = scalar_lea.vmem [#allocation8], %s4050_s20 }
  0x38   : > { %7721 = vst [vmem:[#allocation12_spill] sm:$0xff] %v5979_v2  ;;  %v7655_v3 = vfloor.f32 %v5979_v2  ;;  %v286_v21 = vadd.s32 368, %v5984_v12  ;;  %v287_v22 = vadd.s32 376, %v5984_v12  ;;  %v302_v23 = vadd.s32 496, %v5984_v12  ;;  %s3944_s27 = sshll.u32 %s220_s19, 4  ;;  %s3946_s28 = sshll.u32 %s3943_s26, 4  ;;  %s3945_s27 = int_to_ptr.vmem [resolvable:$true] %s3944_s27  ;;  %s3947_s28 = int_to_ptr.hbm [resolvable:$true] %s3946_s28 }
  0x39   : > { %v303_v24 = vadd.s32 504, %v5984_v12  ;;  %v252_v25 = vadd.s32 96, %v5984_v12  ;;  %v253_v27 = vadd.s32 104, %v5984_v12  ;;  %v268_v28 = vadd.s32 224, %v5984_v12  ;;  %s3933_s29 = scalar_lea.sflag [#allocation4], %s5967_s10  ;;  %s5779_s30 = sshra.s32 %s3947_s28, 4  ;;  %s5780_s30 = int_to_ptr.hbm [resolvable:$true] %s5779_s30 }
  0x3a   : > { %v5597_v4 = vcvt.f32.s32 %v7655_v3  ;;  %v269_v29 = vadd.s32 232, %v5984_v12  ;;  %v284_v30 = vadd.s32 352, %v5984_v12  ;;  %v285_v31 = vadd.s32 360, %v5984_v12  ;;  %v5485_v3 = vld [vmem:[#allocation7 + $0x8c] sm:$0xf]  ;;  %s5781_s5 = scalar_lea.hbm %s5780_s30, 16  ;;  %p5786_p12 = scmp.lt.s32.totalorder %s5780_s30, %s7625_s3 }
  0x3b   : > { %v300_v32 = vadd.s32 480, %v5984_v12  ;;  %v301_v33 = vadd.s32 488, %v5984_v12  ;;  %v250_v37 = vadd.s32 80, %v5984_v12  ;;  %v251_v38 = vadd.s32 88, %v5984_v12  ;;  %p5782_p1 = scmp.ne.s32.totalorder %s5780_s30, %s5781_s5  ;;  %s5785_s18 = scalar_lea.hbm %s7625_s3, 32 }
  0x3c   : > { %v4052_v5 = vadd.s32 4294967295, %v5597_v4  ;;  %v266_v40 = vadd.s32 208, %v5984_v12  ;;  %v267_v41 = vadd.s32 216, %v5984_v12  ;;  %v282_v43 = vadd.s32 336, %v5984_v12  ;;  %p5787_p7 = scmp.lt.s32.totalorder %s5785_s18, %s5781_s5 }
  0x3d   : > { %v283_v44 = vadd.s32 344, %v5984_v12  ;;  %v298_v46 = vadd.s32 464, %v5984_v12  ;;  %v299_v47 = vadd.s32 472, %v5984_v12  ;;  %v248_v49 = vadd.s32 64, %v5984_v12  ;;  %p5783_p3 = pnand %p5782_p1, %p5936_p4 }
  0x3e   : > { %vm228_vm0 = vcmp.gt.s32.totalorder %v4052_v5, 4294967293  ;;  %v249_v50 = vadd.s32 72, %v5984_v12  ;;  %v264_v52 = vadd.s32 192, %v5984_v12  ;;  %v265_v53 = vadd.s32 200, %v5984_v12  ;;  %p5788_p8 = por %p5787_p7, %p5786_p12 }
  0x3f   : > { %v229_v6 = vsel %vm228_vm0, %v4052_v5, 4294967293  ;;  %v280_v55 = vadd.s32 320, %v5984_v12  ;;  %v281_v56 = vadd.s32 328, %v5984_v12  ;;  %v296_v58 = vadd.s32 448, %v5984_v12  ;;  %p5784_p5 = pneg %p5783_p3 }
  0x40   : > { %vm230_vm1 = vcmp.lt.s32.totalorder %v229_v6, 6  ;;  %v297_v59 = vadd.s32 456, %v5984_v12  ;;  %v246_v61 = vadd.s32 48, %v5984_v12  ;;  %v247_v62 = vadd.s32 56, %v5984_v12 }
  0x41   : > { %v231_v7 = vsel %vm230_vm1, %v229_v6, 6  ;;  %v262_v0 = vadd.s32 176, %v5984_v12  ;;  %v263_v1 = vadd.s32 184, %v5984_v12  ;;  %v7748_v4 = vmov 0  ;;  %p5789_p9 = pnand %p5788_p8, %p5784_p5 }
  0x42   : > { %v232_v9 = vadd.s32 3, %v231_v7  ;;  %v278_v5 = vadd.s32 304, %v5984_v12  ;;  %v279_v6 = vadd.s32 312, %v5984_v12  ;;  %v7752_v7 = vmov 0 }
  0x43   : > { %v294_v8 = vadd.s32 432, %v5984_v12 }
  0x44   : > { %v233_v10 = vmul.u32 10, %v232_v9  ;;  %v234_v11 = vrot.slane %v232_v9, 1  ;;  %v237_v14 = vrot.slane %v232_v9, 2  ;;  %v295_v9 = vadd.s32 440, %v5984_v12 }
  0x46   : > { %v235_v13 = vadd.s32 %v234_v11, %v233_v10  ;;  %v7756_v10 = vmov 0  ;;  %v244_v11 = vadd.s32 32, %v5984_v12 }
  0x48   : > { %v236_v15 = vmul.u32 10, %v235_v13  ;;  %v245_v13 = vadd.s32 40, %v5984_v12 }
  0x4a   : > { %v238_v18 = vadd.s32 %v237_v14, %v236_v15  ;;  %v7760_v14 = vmov 0  ;;  %v260_v15 = vadd.s32 160, %v5984_v12 }
  0x4c   : > { %v5995_v26 = vperm.slane %v238_v18, 0  ;;  %v276_v18 = vadd.s32 288, %v5984_v12 }
  0x4e   : > { %vm383_vm2 = vcmp.eq.s32.totalorder %v254_v16, %v5995_v26  ;;  %vm384_vm3 = vcmp.eq.s32.totalorder %v255_v17, %v5995_v26  ;;  %vm399_vm4 = vcmp.eq.s32.totalorder %v270_v19, %v5995_v26  ;;  %vm400_vm5 = vcmp.eq.s32.totalorder %v271_v20, %v5995_v26 }
  0x4f   : > { %vm6008_vm6 = vmpackc.low %vm384_vm3, %vm383_vm2  ;;  %vm415_vm7 = vcmp.eq.s32.totalorder %v286_v21, %v5995_v26  ;;  %vm416_vm8 = vcmp.eq.s32.totalorder %v287_v22, %v5995_v26  ;;  %vm431_vm9 = vcmp.eq.s32.totalorder %v302_v23, %v5995_v26  ;;  %vm432_vm10 = vcmp.eq.s32.totalorder %v303_v24, %v5995_v26 }
  0x50   : > { %4566 = vmatpush.bf16.msk.msra.mxu0 %vm6008_vm6, %v7656_v35  ;;  %vm6019_vm11 = vmpackc.low %vm400_vm5, %vm399_vm4  ;;  %vm381_vm12 = vcmp.eq.s32.totalorder %v252_v25, %v5995_v26  ;;  %vm382_vm13 = vcmp.eq.s32.totalorder %v253_v27, %v5995_v26  ;;  %vm397_vm15 = vcmp.eq.s32.totalorder %v268_v28, %v5995_v26  ;;  %vm398_vm0 = vcmp.eq.s32.totalorder %v269_v29, %v5995_v26 }
  0x51   : > { %4582 = vmatpush.bf16.msk.msra.mxu1 %vm6019_vm11, %v7656_v35  ;;  %vm6030_vm14 = vmpackc.low %vm416_vm8, %vm415_vm7  ;;  %vm413_vm2 = vcmp.eq.s32.totalorder %v284_v30, %v5995_v26  ;;  %vm414_vm3 = vcmp.eq.s32.totalorder %v285_v31, %v5995_v26  ;;  %vm429_vm5 = vcmp.eq.s32.totalorder %v300_v32, %v5995_v26  ;;  %vm430_vm7 = vcmp.eq.s32.totalorder %v301_v33, %v5995_v26 }
  0x52   : > { %4598 = vmatpush.bf16.msk.msra.mxu2 %vm6030_vm14, %v7656_v35  ;;  %vm6045_vm1 = vmpackc.low %vm432_vm10, %vm431_vm9  ;;  %vm379_vm9 = vcmp.eq.s32.totalorder %v250_v37, %v5995_v26  ;;  %vm380_vm10 = vcmp.eq.s32.totalorder %v251_v38, %v5995_v26  ;;  %v261_v16 = vadd.s32 168, %v5984_v12  ;;  %v7764_v17 = vmov 0 }
  0x53   : > { %4614 = vmatpush.bf16.msk.msra.mxu3 %vm6045_vm1, %v7656_v35  ;;  %vm6060_vm4 = vmpackc.low %vm382_vm13, %vm381_vm12  ;;  %vm395_vm13 = vcmp.eq.s32.totalorder %v266_v40, %v5995_v26  ;;  %v277_v19 = vadd.s32 296, %v5984_v12  ;;  %v7768_v20 = vmov 0  ;;  %v292_v21 = vadd.s32 416, %v5984_v12 }
  0x54   : > { %v7732_v45 = vsel %vm6060_vm4, 4294967295, %v7731_v45  ;;  %4568 = vmatpush.bf16.msk.msra.mxu0 %vm6060_vm4, %v7656_v35  ;;  %vm6075_vm8 = vmpackc.low %vm398_vm0, %vm397_vm15  ;;  %vm396_vm15 = vcmp.eq.s32.totalorder %v267_v41, %v5995_v26  ;;  %v293_v22 = vadd.s32 424, %v5984_v12  ;;  %v7772_v23 = vmov 0 }
  0x55   : > { %v7734_v48 = vsel %vm6075_vm8, 4294967295, %v7733_v48  ;;  %4584 = vmatpush.bf16.msk.msra.mxu1 %vm6075_vm8, %v7656_v35  ;;  %vm6090_vm12 = vmpackc.low %vm414_vm3, %vm413_vm2  ;;  %vm411_vm2 = vcmp.eq.s32.totalorder %v282_v43, %v5995_v26  ;;  %vm7751_vm8 = vcmp.eq.s32.totalorder %v249_v50, %v5995_v26  ;;  %v242_v24 = vadd.s32 16, %v5984_v12 }
  0x56   : > { %4600 = vmatpush.bf16.msk.msra.mxu2 %vm6090_vm12, %v7656_v35  ;;  %vm6105_vm0 = vmpackc.low %vm430_vm7, %vm429_vm5  ;;  %vm7743_vm7 = vcmp.eq.s32.totalorder %v283_v44, %v5995_v26  ;;  %v243_v25 = vadd.s32 24, %v5984_v12  ;;  %v7776_v27 = vmov 0  ;;  %v258_v28 = vadd.s32 144, %v5984_v12 }
  0x57   : > { %v7738_v54 = vsel %vm6105_vm0, 4294967295, %v7737_v54  ;;  %4616 = vmatpush.bf16.msk.msra.mxu3 %vm6105_vm0, %v7656_v35  ;;  %vm6120_vm5 = vmpackc.low %vm380_vm10, %vm379_vm9  ;;  %vm7746_vm10 = vcmp.eq.s32.totalorder %v298_v46, %v5995_v26  ;;  %v259_v29 = vadd.s32 152, %v5984_v12  ;;  %v7780_v30 = vmov 0 }
  0x58   : > { %v7740_v57 = vsel %vm6120_vm5, 4294967295, %v7739_v57  ;;  %4570 = vmatpush.bf16.msk.msra.mxu0 %vm6120_vm5, %v7656_v35  ;;  %vm6135_vm9 = vmpackc.low %vm396_vm15, %vm395_vm13  ;;  %vm7750_vm15 = vcmp.eq.s32.totalorder %v248_v49, %v5995_v26  ;;  %v274_v31 = vadd.s32 272, %v5984_v12  ;;  %v275_v32 = vadd.s32 280, %v5984_v12 }
  0x59   : > { %v7742_v60 = vsel %vm6135_vm9, 4294967295, %v7741_v60  ;;  %4586 = vmatpush.bf16.msk.msra.mxu1 %vm6135_vm9, %v7656_v35  ;;  %vm6150_vm13 = vmpackc.low %vm7743_vm7, %vm411_vm2  ;;  %vm7747_vm9 = vcmp.eq.s32.totalorder %v299_v47, %v5995_v26  ;;  %vm7754_vm7 = vcmp.eq.s32.totalorder %v264_v52, %v5995_v26  ;;  %v7784_v33 = vmov 0 }
  0x5a   : > { %v7745_v63 = vsel %vm6150_vm13, 4294967295, %v7744_v63  ;;  %4602 = vmatpush.bf16.msk.msra.mxu2 %vm6150_vm13, %v7656_v35  ;;  %vm6165_vm2 = vmpackc.low %vm7747_vm9, %vm7746_vm10  ;;  %vm7758_vm10 = vcmp.eq.s32.totalorder %v280_v55, %v5995_v26  ;;  %v290_v37 = vadd.s32 400, %v5984_v12  ;;  %v291_v38 = vadd.s32 408, %v5984_v12 }
  0x5b   : > { %v7749_v4 = vsel %vm6165_vm2, 4294967295, %v7748_v4  ;;  %4618 = vmatpush.bf16.msk.msra.mxu3 %vm6165_vm2, %v7656_v35  ;;  %vm6180_vm9 = vmpackc.low %vm7751_vm8, %vm7750_vm15  ;;  %vm7755_vm2 = vcmp.eq.s32.totalorder %v265_v53, %v5995_v26  ;;  %vm7762_vm15 = vcmp.eq.s32.totalorder %v296_v58, %v5995_v26  ;;  %v7788_v40 = vmov 0  ;;  %v4055_v58 = vld [vmem:[#allocation7] sm:$0xf] }
  0x5c   : > { %v7753_v7 = vsel %vm6180_vm9, 4294967295, %v7752_v7  ;;  %4572 = vmatpush.bf16.msk.msra.mxu0 %vm6180_vm9, %v7656_v35  ;;  %vm6195_vm8 = vmpackc.low %vm7755_vm2, %vm7754_vm7  ;;  %vm7759_vm9 = vcmp.eq.s32.totalorder %v281_v56, %v5995_v26  ;;  %vm7766_vm7 = vcmp.eq.s32.totalorder %v246_v61, %v5995_v26  ;;  %v241_v41 = vadd.s32 8, %v5984_v12 }
  0x5d   : > { %v7757_v10 = vsel %vm6195_vm8, 4294967295, %v7756_v10  ;;  %4588 = vmatpush.bf16.msk.msra.mxu1 %vm6195_vm8, %v7656_v35  ;;  %vm6210_vm2 = vmpackc.low %vm7759_vm9, %vm7758_vm10  ;;  %vm7763_vm8 = vcmp.eq.s32.totalorder %v297_v59, %v5995_v26  ;;  %vm7770_vm10 = vcmp.eq.s32.totalorder %v262_v0, %v5995_v26  ;;  %v256_v43 = vadd.s32 128, %v5984_v12  ;;  %v5472_v59 = vld [vmem:[#allocation7 + $0x1c] sm:$0xf0] }
  0x5e   : > { %v7761_v14 = vsel %vm6210_vm2, 4294967295, %v7760_v14  ;;  %4604 = vmatpush.bf16.msk.msra.mxu2 %vm6210_vm2, %v7656_v35  ;;  %vm6225_vm9 = vmpackc.low %vm7763_vm8, %vm7762_vm15  ;;  %vm7767_vm2 = vcmp.eq.s32.totalorder %v247_v62, %v5995_v26  ;;  %vm7774_vm15 = vcmp.eq.s32.totalorder %v278_v5, %v5995_v26  ;;  %v7792_v44 = vmov 0  ;;  %v4057_v5 = vld [vmem:[#allocation7 + $0x20] sm:$0xf0] }
  0x5f   : > { %v7765_v17 = vsel %vm6225_vm9, 4294967295, %v7764_v17  ;;  %4620 = vmatpush.bf16.msk.msra.mxu3 %vm6225_vm9, %v7656_v35  ;;  %vm6240_vm8 = vmpackc.low %vm7767_vm2, %vm7766_vm7  ;;  %vm7771_vm9 = vcmp.eq.s32.totalorder %v263_v1, %v5995_v26  ;;  %vm7778_vm7 = vcmp.eq.s32.totalorder %v294_v8, %v5995_v26  ;;  %v257_v46 = vadd.s32 136, %v5984_v12  ;;  %v5468_v1 = vld [vmem:[#allocation7 + $0x4] sm:$0xf] }
  0x60   : > { %v7769_v20 = vsel %vm6240_vm8, 4294967295, %v7768_v20  ;;  %4574 = vmatpush.bf16.msk.msra.mxu0 %vm6240_vm8, %v7656_v35  ;;  %vm6255_vm2 = vmpackc.low %vm7771_vm9, %vm7770_vm10  ;;  %vm7775_vm8 = vcmp.eq.s32.totalorder %v279_v6, %v5995_v26  ;;  %vm7782_vm10 = vcmp.eq.s32.totalorder %v244_v11, %v5995_v26  ;;  %v272_v47 = vadd.s32 256, %v5984_v12  ;;  %v4063_v11 = vld [vmem:[#allocation7 + $0x8] sm:$0xf] }
  0x61   : > { %v7773_v23 = vsel %vm6255_vm2, 4294967295, %v7772_v23  ;;  %4590 = vmatpush.bf16.msk.msra.mxu1 %vm6255_vm2, %v7656_v35  ;;  %vm6270_vm9 = vmpackc.low %vm7775_vm8, %vm7774_vm15  ;;  %vm7779_vm2 = vcmp.eq.s32.totalorder %v295_v9, %v5995_v26  ;;  %vm7786_vm15 = vcmp.eq.s32.totalorder %v260_v15, %v5995_v26  ;;  %v7796_v49 = vmov 0 }
  0x62   : > { %v7777_v27 = vsel %vm6270_vm9, 4294967295, %v7776_v27  ;;  %4606 = vmatpush.bf16.msk.msra.mxu2 %vm6270_vm9, %v7656_v35  ;;  %vm6285_vm8 = vmpackc.low %vm7779_vm2, %vm7778_vm7  ;;  %vm7783_vm9 = vcmp.eq.s32.totalorder %v245_v13, %v5995_v26  ;;  %vm7790_vm7 = vcmp.eq.s32.totalorder %v276_v18, %v5995_v26  ;;  %v273_v50 = vadd.s32 264, %v5984_v12  ;;  %v5473_v13 = vld [vmem:[#allocation7 + $0x24] sm:$0xf0] }
  0x63   : > { %v7781_v30 = vsel %vm6285_vm8, 4294967295, %v7780_v30  ;;  %4622 = vmatpush.bf16.msk.msra.mxu3 %vm6285_vm8, %v7656_v35  ;;  %vm6300_vm2 = vmpackc.low %vm7783_vm9, %vm7782_vm10  ;;  %vm7787_vm8 = vcmp.eq.s32.totalorder %v261_v16, %v5995_v26  ;;  %vm7794_vm10 = vcmp.eq.s32.totalorder %v292_v21, %v5995_v26  ;;  %v288_v52 = vadd.s32 384, %v5984_v12  ;;  %v5469_v21 = vld [vmem:[#allocation7 + $0xc] sm:$0xf] }
  0x64   : > { %v7785_v33 = vsel %vm6300_vm2, 4294967295, %v7784_v33  ;;  %4576 = vmatpush.bf16.msk.msra.mxu0 %vm6300_vm2, %v7656_v35  ;;  %vm6315_vm9 = vmpackc.low %vm7787_vm8, %vm7786_vm15  ;;  %vm7791_vm2 = vcmp.eq.s32.totalorder %v277_v19, %v5995_v26  ;;  %vm7798_vm15 = vcmp.eq.s32.totalorder %v242_v24, %v5995_v26  ;;  %v7800_v53 = vmov 0 }
  0x65   : > { %v7789_v40 = vsel %vm6315_vm9, 4294967295, %v7788_v40  ;;  %4592 = vmatpush.bf16.msk.msra.mxu1 %vm6315_vm9, %v7656_v35  ;;  %vm6330_vm8 = vmpackc.low %vm7791_vm2, %vm7790_vm7  ;;  %vm7795_vm9 = vcmp.eq.s32.totalorder %v293_v22, %v5995_v26  ;;  %v289_v55 = vadd.s32 392, %v5984_v12  ;;  %v7804_v56 = vmov 0  ;;  %v4065_v22 = vld [vmem:[#allocation7 + $0x28] sm:$0xf0] }
  0x66   : > { %v7793_v44 = vsel %vm6330_vm8, 4294967295, %v7792_v44  ;;  %4608 = vmatpush.bf16.msk.msra.mxu2 %vm6330_vm8, %v7656_v35  ;;  %vm6345_vm2 = vmpackc.low %vm7795_vm9, %vm7794_vm10  ;;  %vm7799_vm8 = vcmp.eq.s32.totalorder %v243_v25, %v5995_v26  ;;  %v350_v61 = vadd.s32 880, %v5984_v12  ;;  %v351_v62 = vadd.s32 888, %v5984_v12 }
  0x67   : > { %v7797_v49 = vsel %vm6345_vm2, 4294967295, %v7796_v49  ;;  %4624 = vmatpush.bf16.msk.msra.mxu3 %vm6345_vm2, %v7656_v35  ;;  %vm6360_vm9 = vmpackc.low %vm7799_vm8, %vm7798_vm15  ;;  %vm7802_vm2 = vcmp.eq.s32.totalorder %v258_v28, %v5995_v26  ;;  %vm7803_vm8 = vcmp.eq.s32.totalorder %v259_v29, %v5995_v26  ;;  %vm7806_vm7 = vcmp.eq.s32.totalorder %v274_v31, %v5995_v26 }
  0x68   : > { %v7801_v53 = vsel %vm6360_vm9, 4294967295, %v7800_v53  ;;  %4578 = vmatpush.bf16.msk.msra.mxu0 %vm6360_vm9, %v7656_v35  ;;  %vm6376_vm15 = vmpackc.low %vm7803_vm8, %vm7802_vm2  ;;  %vm7807_vm2 = vcmp.eq.s32.totalorder %v275_v32, %v5995_v26  ;;  %v7808_v0 = vmov 0  ;;  %v318_v6 = vadd.s32 624, %v5984_v12 }
  0x69   : > { %v7805_v56 = vsel %vm6376_vm15, 4294967295, %v7804_v56  ;;  %4594 = vmatpush.bf16.msk.msra.mxu1 %vm6376_vm15, %v7656_v35  ;;  %vm6391_vm8 = vmpackc.low %vm7807_vm2, %vm7806_vm7  ;;  %v319_v8 = vadd.s32 632, %v5984_v12  ;;  %vm7810_vm15 = vcmp.eq.s32.totalorder %v290_v37, %v5995_v26  ;;  %vm7811_vm7 = vcmp.eq.s32.totalorder %v291_v38, %v5995_v26 }
  0x6a   : > { %v7809_v0 = vsel %vm6391_vm8, 4294967295, %v7808_v0  ;;  %4610 = vmatpush.bf16.msk.msra.mxu2 %vm6391_vm8, %v7656_v35  ;;  %vm6406_vm2 = vmpackc.low %vm7811_vm7, %vm7810_vm15  ;;  %v7812_v9 = vmov 0  ;;  %v366_v15 = vadd.s32 1008, %v5984_v12  ;;  %v367_v16 = vadd.s32 1016, %v5984_v12 }
  0x6b   : > { %v7813_v9 = vsel %vm6406_vm2, 4294967295, %v7812_v9  ;;  %4626 = vmatpush.bf16.msk.msra.mxu3 %vm6406_vm2, %v7656_v35  ;;  %vm7814_vm15 = vcmp.eq.s32.totalorder %v5984_v12, %v5995_v26  ;;  %vm7815_vm7 = vcmp.eq.s32.totalorder %v241_v41, %v5995_v26  ;;  %v7816_v18 = vmov 0 }
  0x6c   : > { %vm6422_vm9 = vmpackc.low %vm7815_vm7, %vm7814_vm15  ;;  %v4056_v19 = vor.u32 %v5472_v59, %v4055_v58  ;;  %v334_v24 = vadd.s32 752, %v5984_v12  ;;  %v335_v25 = vadd.s32 760, %v5984_v12  ;;  %vm7818_vm10 = vcmp.eq.s32.totalorder %v256_v43, %v5995_v26 }
  0x6d   : > { %v7817_v18 = vsel %vm6422_vm9, 4294967295, %v7816_v18  ;;  %4580 = vmatpush.bf16.msk.msra.mxu0 %vm6422_vm9, %v7656_v35  ;;  %vm7819_vm15 = vcmp.eq.s32.totalorder %v257_v46, %v5995_v26  ;;  %v7820_v28 = vmov 0  ;;  %v4060_v29 = vor.u32 %v5468_v1, %v4057_v5 }
  0x6e   : > { %vm6436_vm7 = vmpackc.low %vm7819_vm15, %vm7818_vm10  ;;  %vm479_vm3 = vcmp.eq.s32.totalorder %v350_v61, %v5995_v26  ;;  %vm480_vm2 = vcmp.eq.s32.totalorder %v351_v62, %v5995_v26  ;;  %vm7822_vm8 = vcmp.eq.s32.totalorder %v272_v47, %v5995_v26  ;;  %vm7823_vm9 = vcmp.eq.s32.totalorder %v273_v50, %v5995_v26 }
  0x6f   : > { %v7821_v28 = vsel %vm6436_vm7, 4294967295, %v7820_v28  ;;  %4596 = vmatpush.bf16.msk.msra.mxu1 %vm6436_vm7, %v7656_v35  ;;  %vm6449_vm5 = vmpackc.low %vm7823_vm9, %vm7822_vm8  ;;  %v7824_v31 = vmov 0  ;;  %v4064_v32 = vor.u32 %v5473_v13, %v4063_v11  ;;  %vm447_vm10 = vcmp.eq.s32.totalorder %v318_v6, %v5995_v26  ;;  %v4087_v11 = vld [vmem:[#allocation7 + $0x40] sm:$0xf] }
  0x70   : > { %v7825_v31 = vsel %vm6449_vm5, 4294967295, %v7824_v31  ;;  %vm448_vm15 = vcmp.eq.s32.totalorder %v319_v8, %v5995_v26  ;;  %4612 = vmatpush.bf16.msk.msra.mxu2 %vm6449_vm5, %v7656_v35  ;;  %vm7826_vm13 = vcmp.eq.s32.totalorder %v288_v52, %v5995_v26  ;;  %vm7827_vm7 = vcmp.eq.s32.totalorder %v289_v55, %v5995_v26  ;;  %1593 = vmatmul.bf16.vlgmr.msra.gmra.mxu0 %v4056_v19  ;;  %vm6471_vm4 = vmpackc.low %vm480_vm2, %vm479_vm3  ;;  %v5480_v13 = vld [vmem:[#allocation7 + $0x5c] sm:$0xf0]  ;;  %v4089_v19 = vld [vmem:[#allocation7 + $0x60] sm:$0xf0] }
  0x71   : > { %vm6462_vm0 = vmpackc.low %vm7827_vm7, %vm7826_vm13  ;;  %v4068_v38 = vor.u32 %v5469_v21, %v4065_v22  ;;  %vm495_vm9 = vcmp.eq.s32.totalorder %v366_v15, %v5995_v26  ;;  %vm496_vm8 = vcmp.eq.s32.totalorder %v367_v16, %v5995_v26  ;;  %v7830_v41 = vmov 0  ;;  %v5476_v16 = vld [vmem:[#allocation7 + $0x44] sm:$0xf]  ;;  %v4095_v21 = vld [vmem:[#allocation7 + $0x48] sm:$0xf] }
  0x72   : > { %4628 = vmatpush.bf16.msk.msra.mxu3 %vm6462_vm0, %v7656_v35  ;;  %v7831_v41 = vsel %vm6471_vm4, 4294967295, %v7830_v41  ;;  %vm463_vm5 = vcmp.eq.s32.totalorder %v334_v24, %v5995_v26  ;;  %vm464_vm13 = vcmp.eq.s32.totalorder %v335_v25, %v5995_v26  ;;  %1682 = vmatmul.bf16.vlgmr.msra.gmra.mxu1 %v4060_v29  ;;  %vm6480_vm7 = vmpackc.low %vm448_vm15, %vm447_vm10  ;;  %v7832_v43 = vmov 0  ;;  %v5481_v22 = vld [vmem:[#allocation7 + $0x64] sm:$0xf0]  ;;  %v5477_v25 = vld [vmem:[#allocation7 + $0x4c] sm:$0xf] }
  0x73   : > { %v7833_v43 = vsel %vm6480_vm7, 4294967295, %v7832_v43  ;;  %1771 = vmatmul.bf16.vlgmr.msra.gmra.mxu2 %v4064_v32  ;;  %4630 = vmatpush.bf16.msk.msrb.mxu0 %vm6480_vm7, %v7656_v35  ;;  %vm6487_vm3 = vmpackc.low %vm496_vm8, %vm495_vm9  ;;  %v7834_v46 = vmov 0  ;;  %v7836_v47 = vmov 0  ;;  %v348_v50 = vadd.s32 864, %v5984_v12  ;;  %v4097_v29 = vld [vmem:[#allocation7 + $0x68] sm:$0xf0] }
  0x74   : > { %4662 = vmatpush.bf16.msk.msrb.mxu2 %vm6471_vm4, %v7656_v35  ;;  %v7835_v46 = vsel %vm6487_vm3, 4294967295, %v7834_v46  ;;  %vm6491_vm2 = vmpackc.low %vm464_vm13, %vm463_vm5  ;;  %v349_v52 = vadd.s32 872, %v5984_v12  ;;  %v316_v55 = vadd.s32 608, %v5984_v12  ;;  %v317_v58 = vadd.s32 616, %v5984_v12 }
  0x75   : > { %1860 = vmatmul.bf16.vlgmr.msra.gmra.mxu3 %v4068_v38  ;;  %v7837_v47 = vsel %vm6491_vm2, 4294967295, %v7836_v47  ;;  %4646 = vmatpush.bf16.msk.msrb.mxu1 %vm6491_vm2, %v7656_v35  ;;  %v364_v59 = vadd.s32 992, %v5984_v12  ;;  %v365_v61 = vadd.s32 1000, %v5984_v12  ;;  %v332_v62 = vadd.s32 736, %v5984_v12 }
  0x76   : > { %4678 = vmatpush.bf16.msk.msrb.mxu3 %vm6487_vm3, %v7656_v35  ;;  %vm477_vm5 = vcmp.eq.s32.totalorder %v348_v50, %v5995_v26  ;;  %vm478_vm10 = vcmp.eq.s32.totalorder %v349_v52, %v5995_v26  ;;  %vm445_vm15 = vcmp.eq.s32.totalorder %v316_v55, %v5995_v26  ;;  %v333_v1 = vadd.s32 744, %v5984_v12  ;;  %v4119_v52 = vld [vmem:[#allocation7 + $0x80] sm:$0xf] }
  0x77   : > { %vm6512_vm9 = vmpackc.low %vm478_vm10, %vm477_vm5  ;;  %v7838_v5 = vmov 0  ;;  %vm446_vm8 = vcmp.eq.s32.totalorder %v317_v58, %v5995_v26  ;;  %vm493_vm13 = vcmp.eq.s32.totalorder %v364_v59, %v5995_v26  ;;  %vm494_vm3 = vcmp.eq.s32.totalorder %v365_v61, %v5995_v26  ;;  %v5488_v55 = vld [vmem:[#allocation7 + $0x9c] sm:$0xf0]  ;;  %v5484_v58 = vld [vmem:[#allocation7 + $0x84] sm:$0xf] }
  0x78   : > { %v7839_v5 = vsel %vm6512_vm9, 4294967295, %v7838_v5  ;;  %vm461_vm4 = vcmp.eq.s32.totalorder %v332_v62, %v5995_v26  ;;  %4664 = vmatpush.bf16.msk.msrb.mxu2 %vm6512_vm9, %v7656_v35  ;;  %vm6523_vm2 = vmpackc.low %vm446_vm8, %vm445_vm15  ;;  %v7841_v6 = vmov 0  ;;  %vm462_vm5 = vcmp.eq.s32.totalorder %v333_v1, %v5995_v26  ;;  %v4121_v59 = vld [vmem:[#allocation7 + $0xa0] sm:$0xf0]  ;;  %v4127_v61 = vld [vmem:[#allocation7 + $0x88] sm:$0xf] }
  0x79   : > { %7840 = vst [vmem:[#allocation14_spill] sm:$0xff] %v7839_v5  ;;  %v7842_v6 = vsel %vm6523_vm2, 4294967295, %v7841_v6  ;;  %4632 = vmatpush.bf16.msk.msrb.mxu0 %vm6523_vm2, %v7656_v35  ;;  %vm6531_vm10 = vmpackc.low %vm494_vm3, %vm493_vm13  ;;  %v7844_v8 = vmov 0  ;;  %v7847_v15 = vmov 0  ;;  %v4088_v24 = vor.u32 %v5480_v13, %v4087_v11  ;;  %v5489_v62 = vld [vmem:[#allocation7 + $0xa4] sm:$0xf0] }
  0x7a   : > { %7843 = vst [vmem:[#allocation15_spill] sm:$0xff] %v7842_v6  ;;  %v7845_v8 = vsel %vm6531_vm10, 4294967295, %v7844_v8  ;;  %4680 = vmatpush.bf16.msk.msrb.mxu3 %vm6531_vm10, %v7656_v35  ;;  %vm6538_vm15 = vmpackc.low %vm462_vm5, %vm461_vm4  ;;  %v4092_v32 = vor.u32 %v5476_v16, %v4089_v19  ;;  %v4096_v38 = vor.u32 %v5481_v22, %v4095_v21  ;;  %v4100_v50 = vor.u32 %v5477_v25, %v4097_v29 }
  0x7b   : > { %7846 = vst [vmem:[#allocation16_spill] sm:$0xff] %v7845_v8  ;;  %v7848_v15 = vsel %vm6538_vm15, 4294967295, %v7847_v15  ;;  %4648 = vmatpush.bf16.msk.msrb.mxu1 %vm6538_vm15, %v7656_v35  ;;  %v4120_v1 = vor.u32 %v5488_v55, %v4119_v52  ;;  %v4129_v35 = vld [vmem:[#allocation7 + $0xa8] sm:$0xf0]  ;;  %v4124_v2 = vor.u32 %v5484_v58, %v4121_v59  ;;  %v4128_v11 = vor.u32 %v5489_v62, %v4127_v61  ;;  %v5496_v52 = vld [vmem:[#allocation7 + $0xdc] sm:$0xf0] }
  0x7c   : > { %7849 = vst [vmem:[#allocation17_spill] sm:$0xff] %v7848_v15  ;;  %v4132_v13 = vor.u32 %v5485_v3, %v4129_v35  ;;  %v346_v16 = vadd.s32 848, %v5984_v12  ;;  %v347_v19 = vadd.s32 856, %v5984_v12  ;;  %v314_v21 = vadd.s32 592, %v5984_v12  ;;  %v5492_v58 = vld [vmem:[#allocation7 + $0xc4] sm:$0xf] }
  0x7d   : > { %v315_v22 = vadd.s32 600, %v5984_v12  ;;  %v363_v25 = vadd.s32 984, %v5984_v12  ;;  %v330_v29 = vadd.s32 720, %v5984_v12  ;;  %v331_v3 = vadd.s32 728, %v5984_v12  ;;  %v4153_v59 = vld [vmem:[#allocation7 + $0xe0] sm:$0xf0] }
  0x7e   : > { %vm475_vm4 = vcmp.eq.s32.totalorder %v346_v16, %v5995_v26  ;;  %vm476_vm3 = vcmp.eq.s32.totalorder %v347_v19, %v5995_v26  ;;  %vm443_vm8 = vcmp.eq.s32.totalorder %v314_v21, %v5995_v26  ;;  %v7853_v35 = vmov 1.0|1.0   ;;  %v4159_v61 = vld [vmem:[#allocation7 + $0xc8] sm:$0xf] }
  0x7f   : > { %vm444_vm13 = vcmp.eq.s32.totalorder %v315_v22, %v5995_v26  ;;  %vm6557_vm5 = vmpackc.low %vm476_vm3, %vm475_vm4  ;;  %vm492_vm9 = vcmp.eq.s32.totalorder %v363_v25, %v5995_v26  ;;  %vm459_vm15 = vcmp.eq.s32.totalorder %v330_v29, %v5995_v26  ;;  %vm460_vm2 = vcmp.eq.s32.totalorder %v331_v3, %v5995_v26  ;;  %v5497_v62 = vld [vmem:[#allocation7 + $0xe4] sm:$0xf0]  ;;  %v4183_v22 = vld [vmem:[#allocation7 + $0x100] sm:$0xf] }
  0x80   : > { %1598 = vmatmul.bf16.gmra.mxu0 %v4088_v24  ;;  %v362_v24 = vadd.s32 976, %v5984_v12  ;;  %4666 = vmatpush.bf16.msk.msrb.mxu2 %vm6557_vm5, %v7853_v35  ;;  %vm6568_vm7 = vmpackc.low %vm444_vm13, %vm443_vm8  ;;  %v7860_v55 = vmov 0  ;;  %v4156_v16 = vor.u32 %v5492_v58, %v4153_v59  ;;  %v4160_v19 = vor.u32 %v5497_v62, %v4159_v61  ;;  %v5500_v25 = vld [vmem:[#allocation7 + $0x104] sm:$0xf]  ;;  %v4191_v3 = vld [vmem:[#allocation7 + $0x108] sm:$0xf] }
  0x81   : > { %4634 = vmatpush.bf16.msk.msrb.mxu0 %vm6568_vm7, %v7853_v35  ;;  %vm6582_vm3 = vmpackc.low %vm460_vm2, %vm459_vm15  ;;  %v4185_v29 = vld [vmem:[#allocation7 + $0x120] sm:$0xf0]  ;;  %v344_v58 = vadd.s32 832, %v5984_v12  ;;  %v345_v59 = vadd.s32 840, %v5984_v12  ;;  %v312_v61 = vadd.s32 576, %v5984_v12  ;;  %v313_v62 = vadd.s32 584, %v5984_v12 }
  0x82   : > { %1687 = vmatmul.bf16.gmra.mxu1 %v4092_v32  ;;  %vm491_vm10 = vcmp.eq.s32.totalorder %v362_v24, %v5995_v26  ;;  %v7854_v32 = vmov 0  ;;  %v7861_v55 = vsel %vm6582_vm3, 4294967295, %v7860_v55  ;;  %v5504_v24 = vld [vmem:[#allocation7 + $0x11c] sm:$0xf0]  ;;  %v4188_v8 = vor.u32 %v5500_v25, %v4185_v29  ;;  %v5513_v25 = vld [vmem:[#allocation7 + $0x164] sm:$0xf0] }
  0x83   : > { %1776 = vmatmul.bf16.gmra.mxu2 %v4096_v38  ;;  %v7855_v32 = vsel %vm6568_vm7, 4294967295, %v7854_v32  ;;  %vm6575_vm4 = vmpackc.low %vm492_vm9, %vm491_vm10  ;;  %v7857_v38 = vmov 0  ;;  %7862 = vst [vmem:[#allocation21_spill] sm:$0xff] %v7861_v55  ;;  %4650 = vmatpush.bf16.msk.msrb.mxu1 %vm6582_vm3, %v7853_v35  ;;  %v5501_v55 = vld [vmem:[#allocation7 + $0x10c] sm:$0xf]  ;;  %vm473_vm2 = vcmp.eq.s32.totalorder %v344_v58, %v5995_v26  ;;  %vm474_vm9 = vcmp.eq.s32.totalorder %v345_v59, %v5995_v26 }
  0x84   : > { %7856 = vst [vmem:[#allocation19_spill] sm:$0xff] %v7855_v32  ;;  %v7858_v38 = vsel %vm6575_vm4, 4294967295, %v7857_v38  ;;  %4682 = vmatpush.bf16.msk.msrb.mxu3 %vm6575_vm4, %v7853_v35  ;;  %v4193_v32 = vld [vmem:[#allocation7 + $0x128] sm:$0xf0]  ;;  %vm441_vm10 = vcmp.eq.s32.totalorder %v312_v61, %v5995_v26  ;;  %vm442_vm15 = vcmp.eq.s32.totalorder %v313_v62, %v5995_v26  ;;  %vm6601_vm8 = vmpackc.low %vm474_vm9, %vm473_vm2  ;;  %v4247_v61 = vld [vmem:[#allocation7 + $0x180] sm:$0xf] }
  0x85   : > { %1865 = vmatmul.bf16.gmra.mxu3 %v4100_v50  ;;  %7859 = vst [vmem:[#allocation20_spill] sm:$0xff] %v7858_v38  ;;  %v4151_v50 = vld [vmem:[#allocation7 + $0xc0] sm:$0xf]  ;;  %v5505_v38 = vld [vmem:[#allocation7 + $0x124] sm:$0xf0]  ;;  %4668 = vmatpush.bf16.msk.msrb.mxu2 %vm6601_vm8, %v7853_v35  ;;  %vm6612_vm7 = vmpackc.low %vm442_vm15, %vm441_vm10 }
  0x86   : > { %4636 = vmatpush.bf16.msk.msrb.mxu0 %vm6612_vm7, %v7853_v35  ;;  %v5520_v62 = vld [vmem:[#allocation7 + $0x19c] sm:$0xf0] }
  0x90   : > { %1603 = vmatmul.bf16.gmra.mxu0 %v4120_v1  ;;  %v4152_v1 = vor.u32 %v5496_v52, %v4151_v50  ;;  %v4192_v50 = vor.u32 %v5505_v38, %v4191_v3  ;;  %v4196_v52 = vor.u32 %v5501_v55, %v4193_v32  ;;  %v329_v32 = vadd.s32 712, %v5984_v12  ;;  %v4215_v55 = vld [vmem:[#allocation7 + $0x140] sm:$0xf]  ;;  %v5509_v3 = vld [vmem:[#allocation7 + $0x14c] sm:$0xf] }
  0x91   : > { %v7869_v38 = vmov 0 }
  0x92   : > { %1692 = vmatmul.bf16.gmra.mxu1 %v4124_v2  ;;  %v7850_v2 = vmov 0  ;;  %vm458_vm3 = vcmp.eq.s32.totalorder %v329_v32, %v5995_v26  ;;  %v5521_v32 = vld [vmem:[#allocation7 + $0x1a4] sm:$0xf0] }
  0x93   : > { %1781 = vmatmul.bf16.gmra.mxu2 %v4128_v11  ;;  %v7851_v2 = vsel %vm6557_vm5, 4294967295, %v7850_v2  ;;  %v5493_v11 = vld [vmem:[#allocation7 + $0xcc] sm:$0xf] }
  0x94   : > { %7852 = vst [vmem:[#allocation18_spill] sm:$0xff] %v7851_v2  ;;  %v4184_v2 = vor.u32 %v5504_v24, %v4183_v22  ;;  %v4217_v22 = vld [vmem:[#allocation7 + $0x160] sm:$0xf0]  ;;  %v4223_v24 = vld [vmem:[#allocation7 + $0x148] sm:$0xf] }
  0x95   : > { %1870 = vmatmul.bf16.gmra.mxu3 %v4132_v13  ;;  %v4161_v13 = vld [vmem:[#allocation7 + $0xe8] sm:$0xf0]  ;;  %v4224_v58 = vor.u32 %v5513_v25, %v4223_v24  ;;  %v310_v24 = vadd.s32 560, %v5984_v12  ;;  %v311_v25 = vadd.s32 568, %v5984_v12 }
  0x96   : > { %v4164_v21 = vor.u32 %v5493_v11, %v4161_v13  ;;  %v361_v11 = vadd.s32 968, %v5984_v12  ;;  %v328_v13 = vadd.s32 704, %v5984_v12 }
  0x97   : > { %vm440_vm10 = vcmp.eq.s32.totalorder %v311_v25, %v5995_v26  ;;  %v5536_v25 = vld [vmem:[#allocation7 + $0x21c] sm:$0xf0] }
  0x98   : > { %vm490_vm4 = vcmp.eq.s32.totalorder %v361_v11, %v5995_v26  ;;  %vm457_vm5 = vcmp.eq.s32.totalorder %v328_v13, %v5995_v26  ;;  %v4249_v11 = vld [vmem:[#allocation7 + $0x1a0] sm:$0xf0]  ;;  %v4255_v13 = vld [vmem:[#allocation7 + $0x188] sm:$0xf] }
  0x99   : > { %vm6626_vm9 = vmpackc.low %vm458_vm3, %vm457_vm5  ;;  %vm439_vm3 = vcmp.eq.s32.totalorder %v310_v24, %v5995_v26  ;;  %v4311_v24 = vld [vmem:[#allocation7 + $0x200] sm:$0xf] }
  0x9a   : > { %4652 = vmatpush.bf16.msk.msrb.mxu1 %vm6626_vm9, %v7853_v35 }
  0xa0   : > { %1608 = vmatmul.bf16.gmra.mxu0 %v4152_v1  ;;  %v360_v1 = vadd.s32 960, %v5984_v12 }
  0xa2   : > { %1697 = vmatmul.bf16.gmra.mxu1 %v4156_v16  ;;  %vm489_vm13 = vcmp.eq.s32.totalorder %v360_v1, %v5995_v26  ;;  %v5512_v16 = vld [vmem:[#allocation7 + $0x15c] sm:$0xf0]  ;;  %v5516_v1 = vld [vmem:[#allocation7 + $0x184] sm:$0xf] }
  0xa3   : > { %1786 = vmatmul.bf16.gmra.mxu2 %v4160_v19  ;;  %vm6619_vm2 = vmpackc.low %vm490_vm4, %vm489_vm13  ;;  %v7872_v19 = vmov 0  ;;  %v4216_v29 = vor.u32 %v5512_v16, %v4215_v55  ;;  %v4256_v55 = vor.u32 %v5521_v32, %v4255_v13  ;;  %v5525_v32 = vld [vmem:[#allocation7 + $0x1cc] sm:$0xf] }
  0xa4   : > { %v7870_v38 = vsel %vm6619_vm2, 4294967295, %v7869_v38  ;;  %4684 = vmatpush.bf16.msk.msrb.mxu3 %vm6619_vm2, %v7853_v35  ;;  %v7873_v19 = vsel %vm6626_vm9, 4294967295, %v7872_v19 }
  0xa5   : > { %1875 = vmatmul.bf16.gmra.mxu3 %v4164_v21  ;;  %7871 = vst [vmem:[#allocation24_spill] sm:$0xff] %v7870_v38  ;;  %v5508_v21 = vld [vmem:[#allocation7 + $0x144] sm:$0xf]  ;;  %v4248_v38 = vor.u32 %v5520_v62, %v4247_v61  ;;  %v4287_v62 = vld [vmem:[#allocation7 + $0x1c8] sm:$0xf] }
  0xa6   : > { %7874 = vst [vmem:[#allocation25_spill] sm:$0xff] %v7873_v19  ;;  %v4257_v19 = vld [vmem:[#allocation7 + $0x1a8] sm:$0xf0]  ;;  %v4281_v61 = vld [vmem:[#allocation7 + $0x1e0] sm:$0xf0] }
  0xb0   : > { %1613 = vmatmul.bf16.gmra.mxu0 %v4184_v2  ;;  %v7866_v2 = vmov 0 }
  0xb1   : > { %v7867_v2 = vsel %vm6612_vm7, 4294967295, %v7866_v2 }
  0xb2   : > { %1702 = vmatmul.bf16.gmra.mxu1 %v4188_v8  ;;  %v7863_v8 = vmov 0  ;;  %7868 = vst [vmem:[#allocation23_spill] sm:$0xff] %v7867_v2  ;;  %v4252_v2 = vor.u32 %v5516_v1, %v4249_v11  ;;  %v5529_v1 = vld [vmem:[#allocation7 + $0x1e4] sm:$0xf0]  ;;  %v7884_v11 = vmov 0 }
  0xb3   : > { %1791 = vmatmul.bf16.gmra.mxu2 %v4192_v50  ;;  %v7864_v8 = vsel %vm6601_vm8, 4294967295, %v7863_v8  ;;  %v4225_v50 = vld [vmem:[#allocation7 + $0x168] sm:$0xf0]  ;;  %vm6652_vm8 = vmpackc.low %vm440_vm10, %vm439_vm3 }
  0xb4   : > { %7865 = vst [vmem:[#allocation22_spill] sm:$0xff] %v7864_v8  ;;  %v4228_v59 = vor.u32 %v5509_v3, %v4225_v50  ;;  %v5517_v8 = vld [vmem:[#allocation7 + $0x18c] sm:$0xf]  ;;  %v359_v3 = vadd.s32 952, %v5984_v12  ;;  %4638 = vmatpush.bf16.msk.msrb.mxu0 %vm6652_vm8, %v7853_v35  ;;  %v327_v50 = vadd.s32 696, %v5984_v12 }
  0xb5   : > { %1880 = vmatmul.bf16.gmra.mxu3 %v4196_v52  ;;  %v4220_v52 = vor.u32 %v5508_v21, %v4217_v22  ;;  %v4260_v16 = vor.u32 %v5517_v8, %v4257_v19  ;;  %v342_v21 = vadd.s32 816, %v5984_v12  ;;  %v343_v22 = vadd.s32 824, %v5984_v12 }
  0xb6   : > { %v7875_v8 = vmov 0  ;;  %vm488_vm2 = vcmp.eq.s32.totalorder %v359_v3, %v5995_v26  ;;  %v326_v19 = vadd.s32 688, %v5984_v12  ;;  %vm456_vm3 = vcmp.eq.s32.totalorder %v327_v50, %v5995_v26  ;;  %v4313_v3 = vld [vmem:[#allocation7 + $0x220] sm:$0xf0]  ;;  %v5537_v50 = vld [vmem:[#allocation7 + $0x224] sm:$0xf0] }
  0xb7   : > { %vm471_vm5 = vcmp.eq.s32.totalorder %v342_v21, %v5995_v26  ;;  %vm472_vm4 = vcmp.eq.s32.totalorder %v343_v22, %v5995_v26  ;;  %v4288_v21 = vor.u32 %v5529_v1, %v4287_v62  ;;  %v340_v62 = vadd.s32 800, %v5984_v12 }
  0xb8   : > { %vm6643_vm15 = vmpackc.low %vm472_vm4, %vm471_vm5  ;;  %vm455_vm4 = vcmp.eq.s32.totalorder %v326_v19, %v5995_v26  ;;  %v4319_v19 = vld [vmem:[#allocation7 + $0x208] sm:$0xf]  ;;  %v341_v1 = vadd.s32 808, %v5984_v12 }
  0xb9   : > { %v7876_v8 = vsel %vm6643_vm15, 4294967295, %v7875_v8  ;;  %4670 = vmatpush.bf16.msk.msrb.mxu2 %vm6643_vm15, %v7853_v35  ;;  %v4320_v5 = vor.u32 %v5537_v50, %v4319_v19  ;;  %vm469_vm10 = vcmp.eq.s32.totalorder %v340_v62, %v5995_v26  ;;  %v325_v19 = vadd.s32 680, %v5984_v12  ;;  %v4343_v50 = vld [vmem:[#allocation7 + $0x240] sm:$0xf]  ;;  %v5545_v62 = vld [vmem:[#allocation7 + $0x264] sm:$0xf0] }
  0xba   : > { %7877 = vst [vmem:[#allocation26_spill] sm:$0xff] %v7876_v8 }
  0xc0   : > { %1618 = vmatmul.bf16.gmra.mxu0 %v4216_v29  ;;  %v358_v29 = vadd.s32 944, %v5984_v12 }
  0xc2   : > { %1707 = vmatmul.bf16.gmra.mxu1 %v4220_v52  ;;  %vm487_vm13 = vcmp.eq.s32.totalorder %v358_v29, %v5995_v26  ;;  %v4279_v52 = vld [vmem:[#allocation7 + $0x1c0] sm:$0xf]  ;;  %v5532_v29 = vld [vmem:[#allocation7 + $0x204] sm:$0xf] }
  0xc3   : > { %1796 = vmatmul.bf16.gmra.mxu2 %v4224_v58  ;;  %vm6659_vm5 = vmpackc.low %vm488_vm2, %vm487_vm13  ;;  %v5528_v58 = vld [vmem:[#allocation7 + $0x1dc] sm:$0xf0]  ;;  %vm470_vm13 = vcmp.eq.s32.totalorder %v341_v1, %v5995_v26  ;;  %v7897_v1 = vmov 0 }
  0xc4   : > { %4686 = vmatpush.bf16.msk.msrb.mxu3 %vm6659_vm5, %v7853_v35  ;;  %vm6670_vm2 = vmpackc.low %vm456_vm3, %vm455_vm4  ;;  %v4280_v13 = vor.u32 %v5528_v58, %v4279_v52  ;;  %v4312_v52 = vor.u32 %v5536_v25, %v4311_v24  ;;  %v5533_v58 = vld [vmem:[#allocation7 + $0x20c] sm:$0xf]  ;;  %v7890_v24 = vmov 0 }
  0xc5   : > { %1885 = vmatmul.bf16.gmra.mxu3 %v4228_v59  ;;  %v5524_v59 = vld [vmem:[#allocation7 + $0x1c4] sm:$0xf]  ;;  %v7885_v11 = vsel %vm6670_vm2, 4294967295, %v7884_v11  ;;  %4654 = vmatpush.bf16.msk.msrb.mxu1 %vm6670_vm2, %v7853_v35  ;;  %vm6686_vm3 = vmpackc.low %vm470_vm13, %vm469_vm10  ;;  %vm454_vm13 = vcmp.eq.s32.totalorder %v325_v19, %v5995_v26 }
  0xc6   : > { %7886 = vst [vmem:[#allocation29_spill] sm:$0xff] %v7885_v11  ;;  %4672 = vmatpush.bf16.msk.msrb.mxu2 %vm6686_vm3, %v7853_v35 }
  0xd0   : > { %1623 = vmatmul.bf16.gmra.mxu0 %v4248_v38  ;;  %v7881_v38 = vmov 0 }
  0xd1   : > { %v7882_v38 = vsel %vm6659_vm5, 4294967295, %v7881_v38 }
  0xd2   : > { %1712 = vmatmul.bf16.gmra.mxu1 %v4252_v2  ;;  %v7878_v2 = vmov 0  ;;  %7883 = vst [vmem:[#allocation28_spill] sm:$0xff] %v7882_v38  ;;  %v4321_v38 = vld [vmem:[#allocation7 + $0x228] sm:$0xf0] }
  0xd3   : > { %1801 = vmatmul.bf16.gmra.mxu2 %v4256_v55  ;;  %v7879_v2 = vsel %vm6652_vm8, 4294967295, %v7878_v2  ;;  %v4289_v55 = vld [vmem:[#allocation7 + $0x1e8] sm:$0xf0] }
  0xd4   : > { %7880 = vst [vmem:[#allocation27_spill] sm:$0xff] %v7879_v2  ;;  %v4292_v22 = vor.u32 %v5525_v32, %v4289_v55  ;;  %v4316_v2 = vor.u32 %v5532_v29, %v4313_v3  ;;  %v309_v32 = vadd.s32 552, %v5984_v12  ;;  %v356_v55 = vadd.s32 928, %v5984_v12 }
  0xd5   : > { %1890 = vmatmul.bf16.gmra.mxu3 %v4260_v16  ;;  %v4284_v16 = vor.u32 %v5524_v59, %v4281_v61  ;;  %v4324_v61 = vor.u32 %v5533_v58, %v4321_v38  ;;  %v7887_v38 = vmov 0  ;;  %v7894_v29 = vmov 0  ;;  %v5540_v58 = vld [vmem:[#allocation7 + $0x244] sm:$0xf] }
  0xd6   : > { %v7888_v38 = vsel %vm6686_vm3, 4294967295, %v7887_v38  ;;  %vm438_vm5 = vcmp.eq.s32.totalorder %v309_v32, %v5995_v26  ;;  %vm485_vm15 = vcmp.eq.s32.totalorder %v356_v55, %v5995_v26  ;;  %v324_v3 = vadd.s32 672, %v5984_v12  ;;  %v5541_v32 = vld [vmem:[#allocation7 + $0x24c] sm:$0xf] }
  0xd7   : > { %7889 = vst [vmem:[#allocation30_spill] sm:$0xff] %v7888_v38  ;;  %v4353_v55 = vld [vmem:[#allocation7 + $0x268] sm:$0xf0] }
  0xe0   : > { %1628 = vmatmul.bf16.gmra.mxu0 %v4280_v13  ;;  %v308_v13 = vadd.s32 544, %v5984_v12 }
  0xe2   : > { %1717 = vmatmul.bf16.gmra.mxu1 %v4284_v16  ;;  %v357_v16 = vadd.s32 936, %v5984_v12  ;;  %vm437_vm4 = vcmp.eq.s32.totalorder %v308_v13, %v5995_v26 }
  0xe3   : > { %1806 = vmatmul.bf16.gmra.mxu2 %v4288_v21  ;;  %vm6696_vm8 = vmpackc.low %vm438_vm5, %vm437_vm4  ;;  %vm453_vm5 = vcmp.eq.s32.totalorder %v324_v3, %v5995_v26 }
  0xe4   : > { %vm486_vm2 = vcmp.eq.s32.totalorder %v357_v16, %v5995_v26  ;;  %v7891_v24 = vsel %vm6696_vm8, 4294967295, %v7890_v24  ;;  %4640 = vmatpush.bf16.msk.msrb.mxu0 %vm6696_vm8, %v7853_v35 }
  0xe5   : > { %1895 = vmatmul.bf16.gmra.mxu3 %v4292_v22  ;;  %7892 = vst [vmem:[#allocation31_spill] sm:$0xff] %v7891_v24  ;;  %vm6705_vm10 = vmpackc.low %vm486_vm2, %vm485_vm15 }
  0xe6   : > { %v7895_v29 = vsel %vm6705_vm10, 4294967295, %v7894_v29  ;;  %4688 = vmatpush.bf16.msk.msrb.mxu3 %vm6705_vm10, %v7853_v35  ;;  %vm6716_vm15 = vmpackc.low %vm454_vm13, %vm453_vm5 }
  0xe7   : > { %7896 = vst [vmem:[#allocation33_spill] sm:$0xff] %v7895_v29  ;;  %v7898_v1 = vsel %vm6716_vm15, 4294967295, %v7897_v1  ;;  %4656 = vmatpush.bf16.msk.msrb.mxu1 %vm6716_vm15, %v7853_v35 }
  0xe8   : > { %7899 = vst [vmem:[#allocation34_spill] sm:$0xff] %v7898_v1 }
  0xed   : > { %v1594_v8 = vpop.f32.mrf.mxu0 }
  0xef   : > { %v1683_v11 = vpop.f32.mrf.mxu1 }
  0xf0   : > { %v1684_v59 = vadd.f32 %v1683_v11, %v1594_v8  ;;  %1633 = vmatmul.bf16.gmra.mxu0 %v4312_v52  ;;  %v5544_v52 = vld [vmem:[#allocation7 + $0x25c] sm:$0xf0] }
  0xf1   : > { %v4344_v13 = vor.u32 %v5544_v52, %v4343_v50 }
  0xf2   : > { %1722 = vmatmul.bf16.gmra.mxu1 %v4316_v2 }
  0xf3   : > { %1811 = vmatmul.bf16.gmra.mxu2 %v4320_v5 }
  0xf5   : > { %1900 = vmatmul.bf16.gmra.mxu3 %v4324_v61  ;;  %v1596_v22 = vpop.f32.mrf.mxu0  ;;  %v4351_v61 = vld [vmem:[#allocation7 + $0x248] sm:$0xf] }
  0xf6   : > { %v1772_v21 = vpop.f32.mrf.mxu2  ;;  %v4352_v3 = vor.u32 %v5545_v62, %v4351_v61  ;;  %v4377_v61 = vld [vmem:[#allocation7 + $0x2a0] sm:$0xf0]  ;;  %v4383_v62 = vld [vmem:[#allocation7 + $0x288] sm:$0xf] }
  0xf7   : > { %v1773_v5 = vadd.f32 %v1772_v21, %v1684_v59  ;;  %v1685_v2 = vpop.f32.mrf.mxu1  ;;  %v4345_v59 = vld [vmem:[#allocation7 + $0x260] sm:$0xf0] }
  0xf8   : > { %v1861_v8 = vpop.f32.mrf.mxu3  ;;  %v1686_v11 = vadd.f32 %v1685_v2, %v1596_v22  ;;  %v4348_v22 = vor.u32 %v5540_v58, %v4345_v59  ;;  %v5552_v58 = vld [vmem:[#allocation7 + $0x29c] sm:$0xf0]  ;;  %v5548_v59 = vld [vmem:[#allocation7 + $0x284] sm:$0xf] }
  0xf9   : > { %v6700_v25 = vadd.f32 %v1861_v8, %v1773_v5 }
  0xfb   : > { %7893 = vst [vmem:[#allocation32_spill] sm:$0xff] %v6700_v25  ;;  %v4356_v25 = vor.u32 %v5541_v32, %v4353_v55  ;;  %v5553_v32 = vld [vmem:[#allocation7 + $0x2a4] sm:$0xf0] }
  0xfd   : > { %v1599_v21 = vpop.f32.mrf.mxu0 }
  0xfe   : > { %v1774_v16 = vpop.f32.mrf.mxu2 }
  0xff   : > { %v1775_v5 = vadd.f32 %v1774_v16, %v1686_v11  ;;  %v1688_v2 = vpop.f32.mrf.mxu1  ;;  %v4375_v11 = vld [vmem:[#allocation7 + $0x280] sm:$0xf]  ;;  %v5549_v16 = vld [vmem:[#allocation7 + $0x28c] sm:$0xf] }
 0x100   : > { %v1863_v8 = vpop.f32.mrf.mxu3  ;;  %v1689_v19 = vadd.f32 %v1688_v2, %v1599_v21  ;;  %1638 = vmatmul.bf16.gmra.mxu0 %v4344_v13  ;;  %v4376_v55 = vor.u32 %v5552_v58, %v4375_v11  ;;  %v4385_v13 = vld [vmem:[#allocation7 + $0x2a8] sm:$0xf0]  ;;  %v307_v11 = vadd.s32 536, %v5984_v12  ;;  %v355_v58 = vadd.s32 920, %v5984_v12 }
 0x101   : > { %v6723_v29 = vadd.f32 %v1863_v8, %v1775_v5 }
 0x102   : > { %1727 = vmatmul.bf16.gmra.mxu1 %v4348_v22  ;;  %vm436_vm10 = vcmp.eq.s32.totalorder %v307_v11, %v5995_v26  ;;  %vm484_vm15 = vcmp.eq.s32.totalorder %v355_v58, %v5995_v26  ;;  %v4417_v58 = vld [vmem:[#allocation7 + $0x2e8] sm:$0xf0] }
 0x103   : > { %7900 = vst [vmem:[#allocation35_spill] sm:$0xff] %v6723_v29  ;;  %1816 = vmatmul.bf16.gmra.mxu2 %v4352_v3  ;;  %v4384_v3 = vor.u32 %v5553_v32, %v4383_v62 }
 0x105   : > { %1905 = vmatmul.bf16.gmra.mxu3 %v4356_v25  ;;  %v1601_v52 = vpop.f32.mrf.mxu0  ;;  %v4380_v25 = vor.u32 %v5548_v59, %v4377_v61 }
 0x106   : > { %v1777_v50 = vpop.f32.mrf.mxu2 }
 0x107   : > { %v1778_v38 = vadd.f32 %v1777_v50, %v1689_v19  ;;  %v1690_v24 = vpop.f32.mrf.mxu1  ;;  %v339_v50 = vadd.s32 792, %v5984_v12 }
 0x108   : > { %v1866_v1 = vpop.f32.mrf.mxu3  ;;  %v1691_v15 = vadd.f32 %v1690_v24, %v1601_v52  ;;  %v4388_v24 = vor.u32 %v5549_v16, %v4385_v13  ;;  %v306_v52 = vadd.s32 528, %v5984_v12  ;;  %v7903_v16 = vmov 0 }
 0x109   : > { %v6725_v6 = vadd.f32 %v1866_v1, %v1778_v38  ;;  %v338_v1 = vadd.s32 784, %v5984_v12  ;;  %vm468_vm4 = vcmp.eq.s32.totalorder %v339_v50, %v5995_v26  ;;  %v5561_v50 = vld [vmem:[#allocation7 + $0x2e4] sm:$0xf0] }
 0x10a   : > { %vm435_vm5 = vcmp.eq.s32.totalorder %v306_v52, %v5995_v26  ;;  %v7913_v52 = vmov 0 }
 0x10b   : > { %7901 = vst [vmem:[#allocation36_spill] sm:$0xff] %v6725_v6  ;;  %vm467_vm2 = vcmp.eq.s32.totalorder %v338_v1, %v5995_v26  ;;  %vm6748_vm8 = vmpackc.low %vm436_vm10, %vm435_vm5  ;;  %v4415_v1 = vld [vmem:[#allocation7 + $0x2c8] sm:$0xf] }
 0x10c   : > { %vm6738_vm13 = vmpackc.low %vm468_vm4, %vm467_vm2  ;;  %4642 = vmatpush.bf16.msk.msrb.mxu0 %vm6748_vm8, %v7853_v35 }
 0x10d   : > { %v1604_v22 = vpop.f32.mrf.mxu0  ;;  %v7904_v16 = vsel %vm6738_vm13, 4294967295, %v7903_v16  ;;  %4674 = vmatpush.bf16.msk.msrb.mxu2 %vm6738_vm13, %v7853_v35 }
 0x10e   : > { %v1779_v21 = vpop.f32.mrf.mxu2  ;;  %7905 = vst [vmem:[#allocation38_spill] sm:$0xff] %v7904_v16 }
 0x10f   : > { %v1780_v5 = vadd.f32 %v1779_v21, %v1691_v15  ;;  %v1693_v2 = vpop.f32.mrf.mxu1  ;;  %v354_v15 = vadd.s32 912, %v5984_v12  ;;  %v7906_v21 = vmov 0 }
 0x110   : > { %v1868_v8 = vpop.f32.mrf.mxu3  ;;  %v1694_v19 = vadd.f32 %v1693_v2, %v1604_v22  ;;  %1643 = vmatmul.bf16.gmra.mxu0 %v4376_v55  ;;  %v7907_v21 = vsel %vm6748_vm8, 4294967295, %v7906_v21  ;;  %v4407_v2 = vld [vmem:[#allocation7 + $0x2c0] sm:$0xf] }
 0x111   : > { %v6727_v38 = vadd.f32 %v1868_v8, %v1780_v5  ;;  %vm483_vm3 = vcmp.eq.s32.totalorder %v354_v15, %v5995_v26  ;;  %7908 = vst [vmem:[#allocation39_spill] sm:$0xff] %v7907_v21  ;;  %v322_v5 = vadd.s32 656, %v5984_v12  ;;  %v323_v8 = vadd.s32 664, %v5984_v12  ;;  %v5557_v15 = vld [vmem:[#allocation7 + $0x2cc] sm:$0xf] }
 0x112   : > { %1732 = vmatmul.bf16.gmra.mxu1 %v4380_v25  ;;  %vm6757_vm2 = vmpackc.low %vm484_vm15, %vm483_vm3  ;;  %v7910_v25 = vmov 0 }
 0x113   : > { %7902 = vst [vmem:[#allocation37_spill] sm:$0xff] %v6727_v38  ;;  %1821 = vmatmul.bf16.gmra.mxu2 %v4384_v3  ;;  %v7911_v25 = vsel %vm6757_vm2, 4294967295, %v7910_v25  ;;  %v5560_v3 = vld [vmem:[#allocation7 + $0x2dc] sm:$0xf0]  ;;  %4690 = vmatpush.bf16.msk.msrb.mxu3 %vm6757_vm2, %v7853_v35  ;;  %vm451_vm10 = vcmp.eq.s32.totalorder %v322_v5, %v5995_v26  ;;  %vm452_vm4 = vcmp.eq.s32.totalorder %v323_v8, %v5995_v26 }
 0x114   : > { %7912 = vst [vmem:[#allocation41_spill] sm:$0xff] %v7911_v25  ;;  %vm6768_vm3 = vmpackc.low %vm452_vm4, %vm451_vm10  ;;  %v4408_v11 = vor.u32 %v5560_v3, %v4407_v2  ;;  %v4416_v8 = vor.u32 %v5561_v50, %v4415_v1  ;;  %v4420_v38 = vor.u32 %v5557_v15, %v4417_v58  ;;  %v4441_v1 = vld [vmem:[#allocation7 + $0x320] sm:$0xf0]  ;;  %v4447_v50 = vld [vmem:[#allocation7 + $0x308] sm:$0xf] }
 0x115   : > { %1910 = vmatmul.bf16.gmra.mxu3 %v4388_v24  ;;  %v1606_v61 = vpop.f32.mrf.mxu0  ;;  %v4409_v24 = vld [vmem:[#allocation7 + $0x2e0] sm:$0xf0]  ;;  %v7914_v52 = vsel %vm6768_vm3, 4294967295, %v7913_v52  ;;  %4658 = vmatpush.bf16.msk.msrb.mxu1 %vm6768_vm3, %v7853_v35  ;;  %v5569_v15 = vld [vmem:[#allocation7 + $0x324] sm:$0xf0] }
 0x116   : > { %v1782_v59 = vpop.f32.mrf.mxu2  ;;  %7915 = vst [vmem:[#allocation42_spill] sm:$0xff] %v7914_v52 }
 0x117   : > { %v1783_v62 = vadd.f32 %v1782_v59, %v1694_v19  ;;  %v1695_v55 = vpop.f32.mrf.mxu1  ;;  %v5556_v19 = vld [vmem:[#allocation7 + $0x2c4] sm:$0xf] }
 0x118   : > { %v1871_v32 = vpop.f32.mrf.mxu3  ;;  %v1696_v13 = vadd.f32 %v1695_v55, %v1606_v61 }
 0x119   : > { %v6752_v22 = vadd.f32 %v1871_v32, %v1783_v62  ;;  %v4412_v62 = vor.u32 %v5556_v19, %v4409_v24  ;;  %v5568_v19 = vld [vmem:[#allocation7 + $0x31c] sm:$0xf0]  ;;  %v5564_v24 = vld [vmem:[#allocation7 + $0x304] sm:$0xf] }
 0x11b   : > { %7909 = vst [vmem:[#allocation40_spill] sm:$0xff] %v6752_v22 }
 0x11d   : > { %v1609_v61 = vpop.f32.mrf.mxu0 }
 0x11e   : > { %v1784_v59 = vpop.f32.mrf.mxu2 }
 0x11f   : > { %v1785_v32 = vadd.f32 %v1784_v59, %v1696_v13  ;;  %v1698_v5 = vpop.f32.mrf.mxu1  ;;  %v4439_v13 = vld [vmem:[#allocation7 + $0x300] sm:$0xf]  ;;  %v5565_v59 = vld [vmem:[#allocation7 + $0x30c] sm:$0xf] }
 0x120   : > { %v1873_v55 = vpop.f32.mrf.mxu3  ;;  %v1699_v22 = vadd.f32 %v1698_v5, %v1609_v61  ;;  %1648 = vmatmul.bf16.gmra.mxu0 %v4408_v11  ;;  %v4440_v58 = vor.u32 %v5568_v19, %v4439_v13  ;;  %v4449_v11 = vld [vmem:[#allocation7 + $0x328] sm:$0xf0]  ;;  %v4448_v5 = vor.u32 %v5569_v15, %v4447_v50  ;;  %v305_v13 = vadd.s32 520, %v5984_v12 }
 0x121   : > { %v6775_v6 = vadd.f32 %v1873_v55, %v1785_v32  ;;  %v353_v19 = vadd.s32 904, %v5984_v12 }
 0x122   : > { %1737 = vmatmul.bf16.gmra.mxu1 %v4412_v62  ;;  %vm434_vm2 = vcmp.eq.s32.totalorder %v305_v13, %v5995_v26  ;;  %v5573_v13 = vld [vmem:[#allocation7 + $0x34c] sm:$0xf] }
 0x123   : > { %1826 = vmatmul.bf16.gmra.mxu2 %v4416_v8  ;;  %vm482_vm3 = vcmp.eq.s32.totalorder %v353_v19, %v5995_v26 }
 0x125   : > { %1915 = vmatmul.bf16.gmra.mxu3 %v4420_v38  ;;  %v1611_v3 = vpop.f32.mrf.mxu0  ;;  %v4444_v38 = vor.u32 %v5564_v24, %v4441_v1 }
 0x126   : > { %v1787_v2 = vpop.f32.mrf.mxu2 }
 0x127   : > { %v1788_v29 = vadd.f32 %v1787_v2, %v1699_v22  ;;  %v1700_v16 = vpop.f32.mrf.mxu1  ;;  %v337_v2 = vadd.s32 776, %v5984_v12 }
 0x128   : > { %v1876_v25 = vpop.f32.mrf.mxu3  ;;  %v1701_v52 = vadd.f32 %v1700_v16, %v1611_v3  ;;  %v4452_v16 = vor.u32 %v5565_v59, %v4449_v11  ;;  %v304_v3 = vadd.s32 512, %v5984_v12  ;;  %v4167_v59 = vld [vmem:[#allocation7 + $0xd0] sm:$0xf] }
 0x129   : > { %v6777_v21 = vadd.f32 %v1876_v25, %v1788_v29  ;;  %v336_v25 = vadd.s32 768, %v5984_v12  ;;  %vm466_vm5 = vcmp.eq.s32.totalorder %v337_v2, %v5995_v26 }
 0x12a   : > { %vm433_vm10 = vcmp.eq.s32.totalorder %v304_v3, %v5995_v26 }
 0x12b   : > { %vm465_vm15 = vcmp.eq.s32.totalorder %v336_v25, %v5995_v26  ;;  %vm6800_vm8 = vmpackc.low %vm434_vm2, %vm433_vm10  ;;  %v5577_v25 = vld [vmem:[#allocation7 + $0x364] sm:$0xf0]  ;;  %vm7930_vm10 = vnez %v7761_v14  ;;  %v5584_v14 = vld [vmem:[#allocation7 + $0x39c] sm:$0xf0] }
 0x12c   : > { %vm6790_vm4 = vmpackc.low %vm466_vm5, %vm465_vm15  ;;  %4644 = vmatpush.bf16.msk.msrb.mxu0 %vm6800_vm8, %v7853_v35  ;;  %vm7929_vm5 = vnez %v7749_v4 }
 0x12d   : > { %v1614_v62 = vpop.f32.mrf.mxu0  ;;  %4676 = vmatpush.bf16.msk.msrb.mxu2 %vm6790_vm4, %v7853_v35 }
 0x12e   : > { %v1789_v61 = vpop.f32.mrf.mxu2 }
 0x12f   : > { %v1790_v32 = vadd.f32 %v1789_v61, %v1701_v52  ;;  %v1703_v22 = vpop.f32.mrf.mxu1  ;;  %v352_v52 = vadd.s32 896, %v5984_v12 }
 0x130   : > { %v1878_v55 = vpop.f32.mrf.mxu3  ;;  %v1704_v8 = vadd.f32 %v1703_v22, %v1614_v62  ;;  %1653 = vmatmul.bf16.gmra.mxu0 %v4440_v58  ;;  %v4471_v22 = vld [vmem:[#allocation7 + $0x340] sm:$0xf] }
 0x131   : > { %v6779_v29 = vadd.f32 %v1878_v55, %v1790_v32  ;;  %vm481_vm13 = vcmp.eq.s32.totalorder %v352_v52, %v5995_v26  ;;  %v320_v32 = vadd.s32 640, %v5984_v12  ;;  %v321_v55 = vadd.s32 648, %v5984_v12  ;;  %5238 = vmatpush.bf16.msk.msra.mxu2 %vm6030_vm14, %v7853_v35  ;;  %5206 = vmatpush.bf16.msk.msra.mxu0 %vm6008_vm6, %v7853_v35 }
 0x132   : > { %1742 = vmatmul.bf16.gmra.mxu1 %v4444_v38  ;;  %vm6809_vm15 = vmpackc.low %vm482_vm3, %vm481_vm13  ;;  %vm7924_vm6 = vnez %v7732_v45  ;;  %vm7928_vm3 = vnez %v7734_v48  ;;  %v5495_v38 = vld [vmem:[#allocation7 + $0xdc] sm:$0xf] }
 0x133   : > { %1831 = vmatmul.bf16.gmra.mxu2 %v4448_v5  ;;  %v5576_v5 = vld [vmem:[#allocation7 + $0x35c] sm:$0xf0]  ;;  %4692 = vmatpush.bf16.msk.msrb.mxu3 %vm6809_vm15, %v7853_v35  ;;  %vm449_vm13 = vcmp.eq.s32.totalorder %v320_v32, %v5995_v26  ;;  %vm450_vm2 = vcmp.eq.s32.totalorder %v321_v55, %v5995_v26  ;;  %v4511_v32 = vld [vmem:[#allocation7 + $0x388] sm:$0xf] }
 0x134   : > { %vm6829_vm14 = vmpackc.low %vm450_vm2, %vm449_vm13  ;;  %v4472_v3 = vor.u32 %v5576_v5, %v4471_v22  ;;  %vm7931_vm13 = vnez %v7753_v7  ;;  %vm7932_vm2 = vnez %v7742_v60  ;;  %v4503_v7 = vld [vmem:[#allocation7 + $0x380] sm:$0xf]  ;;  %v4505_v60 = vld [vmem:[#allocation7 + $0x3a0] sm:$0xf0] }
 0x135   : > { %1920 = vmatmul.bf16.gmra.mxu3 %v4452_v16  ;;  %v1616_v1 = vpop.f32.mrf.mxu0  ;;  %v4473_v16 = vld [vmem:[#allocation7 + $0x360] sm:$0xf0]  ;;  %4660 = vmatpush.bf16.msk.msrb.mxu1 %vm6829_vm14, %v7853_v35  ;;  %v5585_v55 = vld [vmem:[#allocation7 + $0x3a4] sm:$0xf0]  ;;  %v5581_v22 = vld [vmem:[#allocation7 + $0x38c] sm:$0xf] }
 0x136   : > { %v1792_v24 = vpop.f32.mrf.mxu2  ;;  %5240 = vmatpush.bf16.msk.msra.mxu2 %vm6090_vm12, %v7853_v35  ;;  %5208 = vmatpush.bf16.msk.msra.mxu0 %vm7924_vm6, %v7853_v35  ;;  %vm7927_vm12 = vnez %v7740_v57  ;;  %vm7933_vm6 = vnez %v7765_v17  ;;  %v4504_v17 = vor.u32 %v5584_v14, %v4503_v7  ;;  %v4513_v5 = vld [vmem:[#allocation7 + $0x3a8] sm:$0xf0] }
 0x137   : > { %v1793_v50 = vadd.f32 %v1792_v24, %v1704_v8  ;;  %v1705_v58 = vpop.f32.mrf.mxu1  ;;  %v5572_v8 = vld [vmem:[#allocation7 + $0x344] sm:$0xf]  ;;  %5254 = vmatpush.bf16.msk.msra.mxu3 %vm6045_vm1, %v7853_v35  ;;  %vm7925_vm1 = vnez %v7738_v54 }
 0x138   : > { %v1881_v15 = vpop.f32.mrf.mxu3  ;;  %v1706_v11 = vadd.f32 %v1705_v58, %v1616_v1  ;;  %v4476_v52 = vor.u32 %v5572_v8, %v4473_v16 }
 0x139   : > { %v6804_v62 = vadd.f32 %v1881_v15, %v1793_v50  ;;  %5222 = vmatpush.bf16.msk.msra.mxu1 %vm6019_vm11, %v7853_v35  ;;  %v4480_v50 = vor.u32 %v5577_v25, %v4479_v39  ;;  %v4484_v15 = vor.u32 %v5573_v13, %v4481_v34  ;;  %vm7926_vm11 = vnez %v7745_v63  ;;  %v5588_v34 = vld [vmem:[#allocation7 + $0x3c4] sm:$0xf] }
 0x13a   : > { %5242 = vmatpush.bf16.msk.msra.mxu2 %vm7926_vm11, %v7853_v35  ;;  %5210 = vmatpush.bf16.msk.msra.mxu0 %vm7927_vm12, %v7853_v35  ;;  %vm7935_vm11 = vnez %v7769_v20  ;;  %vm7936_vm12 = vnez %v7757_v10  ;;  %v4512_v25 = vor.u32 %v5585_v55, %v4511_v32  ;;  %v4071_v32 = vld [vmem:[#allocation7 + $0x10] sm:$0xf] }
 0x13b   : > { %5256 = vmatpush.bf16.msk.msra.mxu3 %vm7925_vm1, %v7853_v35  ;;  %vm7934_vm1 = vnez %v7777_v27  ;;  %v5474_v55 = vld [vmem:[#allocation7 + $0x2c] sm:$0xf0] }
 0x13d   : > { %v1619_v42 = vpop.f32.mrf.mxu0  ;;  %5224 = vmatpush.bf16.msk.msra.mxu1 %vm7928_vm3, %v7853_v35  ;;  %vm7937_vm3 = vnez %v7781_v30 }
 0x13e   : > { %v1794_v26 = vpop.f32.mrf.mxu2  ;;  %5244 = vmatpush.bf16.msk.msra.mxu2 %vm7930_vm10, %v7853_v35  ;;  %5212 = vmatpush.bf16.msk.msra.mxu0 %vm7931_vm13, %v7853_v35  ;;  %vm7939_vm10 = vnez %v7785_v33  ;;  %vm7940_vm13 = vnez %v7773_v23 }
 0x13f   : > { %v1795_v19 = vadd.f32 %v1794_v26, %v1706_v11  ;;  %v1708_v1 = vpop.f32.mrf.mxu1  ;;  %5258 = vmatpush.bf16.msk.msra.mxu3 %vm7929_vm5, %v7853_v35  ;;  %v5580_v11 = vld [vmem:[#allocation7 + $0x384] sm:$0xf]  ;;  %vm7938_vm5 = vnez %v7793_v44 }
 0x140   : > { %v1883_v24 = vpop.f32.mrf.mxu3  ;;  %v1709_v51 = vadd.f32 %v1708_v1, %v1619_v42  ;;  %1658 = vmatmul.bf16.gmra.mxu0 %v4472_v3  ;;  %v4508_v8 = vor.u32 %v5580_v11, %v4505_v60  ;;  %v4516_v3 = vor.u32 %v5581_v22, %v4513_v5  ;;  %v4537_v26 = vld [vmem:[#allocation7 + $0x3e0] sm:$0xf0]  ;;  %v5593_v42 = vld [vmem:[#allocation7 + $0x3e4] sm:$0xf0]  ;;  %v4073_v22 = vld [vmem:[#allocation7 + $0x30] sm:$0xf0] }
 0x141   : > { %v6848_v58 = vadd.f32 %v1883_v24, %v1795_v19  ;;  %5226 = vmatpush.bf16.msk.msra.mxu1 %vm7932_vm2, %v7853_v35  ;;  %vm7941_vm2 = vnez %v7797_v49  ;;  %v5589_v19 = vld [vmem:[#allocation7 + $0x3cc] sm:$0xf]  ;;  %v4079_v5 = vld [vmem:[#allocation7 + $0x18] sm:$0xf] }
 0x142   : > { %1747 = vmatmul.bf16.gmra.mxu1 %v4476_v52  ;;  %5246 = vmatpush.bf16.msk.msra.mxu2 %vm7934_vm1, %v7853_v35  ;;  %vm7943_vm1 = vnez %v7789_v40 }
 0x143   : > { %1836 = vmatmul.bf16.gmra.mxu2 %v4480_v50  ;;  %5260 = vmatpush.bf16.msk.msra.mxu3 %vm7933_vm6, %v7853_v35  ;;  %vm7942_vm6 = vnez %v7809_v0  ;;  %v4540_v50 = vor.u32 %v5588_v34, %v4537_v26 }
 0x144   : > { %5214 = vmatpush.bf16.msk.msra.mxu0 %vm7935_vm11, %v7853_v35  ;;  %vm7944_vm11 = vnez %v7801_v53 }
 0x145   : > { %1925 = vmatmul.bf16.gmra.mxu3 %v4484_v15  ;;  %v1621_v45 = vpop.f32.mrf.mxu0  ;;  %5228 = vmatpush.bf16.msk.msra.mxu1 %vm7936_vm12, %v7853_v35  ;;  %vm7945_vm12 = vnez %v7813_v9  ;;  %v4535_v9 = vld [vmem:[#allocation7 + $0x3c0] sm:$0xf] }
 0x146   : > { %v1797_v36 = vpop.f32.mrf.mxu2  ;;  %5248 = vmatpush.bf16.msk.msra.mxu2 %vm7938_vm5, %v7853_v35  ;;  %vm7947_vm5 = vnez %v7805_v56  ;;  %v4543_v56 = vld [vmem:[#allocation7 + $0x3c8] sm:$0xf] }
 0x147   : > { %v1798_v54 = vadd.f32 %v1797_v36, %v1709_v51  ;;  %v1710_v63 = vpop.f32.mrf.mxu1  ;;  %5262 = vmatpush.bf16.msk.msra.mxu3 %vm7937_vm3, %v7853_v35  ;;  %vm7946_vm3 = vnez %v7825_v31  ;;  %v5592_v31 = vld [vmem:[#allocation7 + $0x3dc] sm:$0xf0]  ;;  %v4544_v36 = vor.u32 %v5593_v42, %v4543_v56 }
 0x148   : > { %v1886_v57 = vpop.f32.mrf.mxu3  ;;  %v1711_v48 = vadd.f32 %v1710_v63, %v1621_v45  ;;  %5216 = vmatpush.bf16.msk.msra.mxu0 %vm7939_vm10, %v7853_v35  ;;  %vm7948_vm10 = vnez %v7817_v18  ;;  %v4536_v52 = vor.u32 %v5592_v31, %v4535_v9  ;;  %v4545_v18 = vld [vmem:[#allocation7 + $0x3e8] sm:$0xf0]  ;;  %v7954_v31 = vld [vmem:[#allocation15_spill] sm:$0xff]  ;;  %v7960_v42 = vld [vmem:[#allocation16_spill] sm:$0xff] }
 0x149   : > { %v6871_v4 = vadd.f32 %v1886_v57, %v1798_v54  ;;  %5230 = vmatpush.bf16.msk.msra.mxu1 %vm7940_vm13, %v7853_v35  ;;  %vm7949_vm13 = vnez %v7821_v28  ;;  %v4548_v54 = vor.u32 %v5589_v19, %v4545_v18  ;;  %v5482_v19 = vld [vmem:[#allocation7 + $0x6c] sm:$0xf0]  ;;  %v7962_v18 = vld [vmem:[#allocation19_spill] sm:$0xff] }
 0x14a   : > { %5250 = vmatpush.bf16.msk.msra.mxu2 %vm7942_vm6, %v7853_v35  ;;  %vm7952_vm6 = vnez %v7831_v41  ;;  %v7958_v41 = vld [vmem:[#allocation14_spill] sm:$0xff] }
 0x14b   : > { %5264 = vmatpush.bf16.msk.msra.mxu3 %vm7941_vm2, %v7853_v35  ;;  %vm7951_vm2 = vnez %v7837_v47  ;;  %v7956_v47 = vld [vmem:[#allocation17_spill] sm:$0xff] }
 0x14c   : > { %5218 = vmatpush.bf16.msk.msra.mxu0 %vm7944_vm11, %v7853_v35  ;;  %vm7955_vm11 = vnez %v7954_v31 }
 0x14d   : > { %v1624_v27 = vpop.f32.mrf.mxu0  ;;  %5232 = vmatpush.bf16.msk.msra.mxu1 %vm7943_vm1, %v7853_v35  ;;  %vm7953_vm1 = vnez %v7835_v46 }
 0x14e   : > { %v1799_v20 = vpop.f32.mrf.mxu2  ;;  %5252 = vmatpush.bf16.msk.msra.mxu2 %vm7946_vm3, %v7853_v35  ;;  %vm7959_vm3 = vnez %v7958_v41  ;;  %v7992_v41 = vld [vmem:[#allocation39_spill] sm:$0xff] }
 0x14f   : > { %v1800_v10 = vadd.f32 %v1799_v20, %v1711_v48  ;;  %v1713_v39 = vpop.f32.mrf.mxu1  ;;  %5266 = vmatpush.bf16.msk.msra.mxu3 %vm7945_vm12, %v7853_v35  ;;  %v5475_v20 = vld [vmem:[#allocation7 + $0x34] sm:$0xf0]  ;;  %vm7957_vm12 = vnez %v7956_v47  ;;  %v4135_v47 = vld [vmem:[#allocation7 + $0x90] sm:$0xf] }
 0x150   : > { %v1888_v16 = vpop.f32.mrf.mxu3  ;;  %v1714_v30 = vadd.f32 %v1713_v39, %v1624_v27  ;;  %1663 = vmatmul.bf16.gmra.mxu0 %v4504_v17  ;;  %v5470_v17 = vld [vmem:[#allocation7 + $0x14] sm:$0xf]  ;;  %v4072_v27 = vor.u32 %v5474_v55, %v4071_v32 }
 0x151   : > { %v6897_v13 = vadd.f32 %v1888_v16, %v1800_v10  ;;  %5234 = vmatpush.bf16.msk.msra.mxu1 %vm7947_vm5, %v7853_v35  ;;  %5220 = vmatpush.bf16.msk.msra.mxu0 %vm7948_vm10, %v7853_v35  ;;  %v4081_v10 = vld [vmem:[#allocation7 + $0x38] sm:$0xf0]  ;;  %vm7961_vm5 = vnez %v7960_v42  ;;  %vm7963_vm10 = vnez %v7962_v18  ;;  %v5486_v42 = vld [vmem:[#allocation7 + $0x94] sm:$0xf]  ;;  %v4143_v18 = vld [vmem:[#allocation7 + $0x98] sm:$0xf] }
 0x152   : > { %1752 = vmatmul.bf16.gmra.mxu1 %v4508_v8  ;;  %v5471_v8 = vld [vmem:[#allocation7 + $0x1c] sm:$0xf] }
 0x153   : > { %1841 = vmatmul.bf16.gmra.mxu2 %v4512_v25  ;;  %5268 = vmatpush.bf16.msk.msra.mxu3 %vm6462_vm0, %v7853_v35  ;;  %v4076_v25 = vor.u32 %v5470_v17, %v4073_v22  ;;  %vm7950_vm0 = vnez %v7833_v43 }
 0x155   : > { %1930 = vmatmul.bf16.gmra.mxu3 %v4516_v3  ;;  %v1626_v33 = vpop.f32.mrf.mxu0  ;;  %5236 = vmatpush.bf16.msk.msra.mxu1 %vm7949_vm13, %v7853_v35 }
 0x156   : > { %v1802_v23 = vpop.f32.mrf.mxu2 }
 0x157   : > { %v1803_v44 = vadd.f32 %v1802_v23, %v1714_v30  ;;  %v1715_v0 = vpop.f32.mrf.mxu1 }
 0x158   : > { %v1891_v49 = vpop.f32.mrf.mxu3  ;;  %v1716_v40 = vadd.f32 %v1715_v0, %v1626_v33  ;;  %v4080_v33 = vor.u32 %v5475_v20, %v4079_v5 }
 0x159   : > { %v6923_v53 = vadd.f32 %v1891_v49, %v1803_v44  ;;  %v4084_v49 = vor.u32 %v5471_v8, %v4081_v10  ;;  %v7974_v10 = vld [vmem:[#allocation24_spill] sm:$0xff] }
 0x15d   : > { %v1629_v1 = vpop.f32.mrf.mxu0 }
 0x15e   : > { %v1804_v24 = vpop.f32.mrf.mxu2 }
 0x15f   : > { %v1805_v51 = vadd.f32 %v1804_v24, %v1716_v40  ;;  %v1718_v37 = vpop.f32.mrf.mxu1  ;;  %v5478_v24 = vld [vmem:[#allocation7 + $0x54] sm:$0xf] }
 0x160   : > { %v1893_v15 = vpop.f32.mrf.mxu3  ;;  %v1719_v45 = vadd.f32 %v1718_v37, %v1629_v1  ;;  %1668 = vmatmul.bf16.gmra.mxu0 %v4536_v52  ;;  %v4103_v52 = vld [vmem:[#allocation7 + $0x50] sm:$0xf]  ;;  %v4105_v1 = vld [vmem:[#allocation7 + $0x70] sm:$0xf0] }
 0x161   : > { %v6931_v57 = vadd.f32 %v1893_v15, %v1805_v51  ;;  %v4111_v51 = vld [vmem:[#allocation7 + $0x58] sm:$0xf]  ;;  %v7966_v37 = vld [vmem:[#allocation18_spill] sm:$0xff] }
 0x162   : > { %1757 = vmatmul.bf16.gmra.mxu1 %v4540_v50  ;;  %v7964_v50 = vld [vmem:[#allocation21_spill] sm:$0xff]  ;;  %v5483_v15 = vld [vmem:[#allocation7 + $0x74] sm:$0xf0] }
 0x163   : > { %1846 = vmatmul.bf16.gmra.mxu2 %v4544_v36  ;;  %vm7965_vm13 = vnez %v7964_v50  ;;  %v4104_v36 = vor.u32 %v5482_v19, %v4103_v52  ;;  %v4112_v17 = vor.u32 %v5483_v15, %v4111_v51  ;;  %v4137_v52 = vld [vmem:[#allocation7 + $0xb0] sm:$0xf0]  ;;  %v5487_v51 = vld [vmem:[#allocation7 + $0x9c] sm:$0xf] }
 0x164   : > { %v7994_v19 = vld [vmem:[#allocation42_spill] sm:$0xff]  ;;  %v4145_v15 = vld [vmem:[#allocation7 + $0xb8] sm:$0xf0] }
 0x165   : > { %1935 = vmatmul.bf16.gmra.mxu3 %v4548_v54  ;;  %v1631_v63 = vpop.f32.mrf.mxu0  ;;  %v4113_v54 = vld [vmem:[#allocation7 + $0x78] sm:$0xf0] }
 0x166   : > { %v1807_v28 = vpop.f32.mrf.mxu2 }
 0x167   : > { %v1808_v48 = vadd.f32 %v1807_v28, %v1719_v45  ;;  %v1720_v14 = vpop.f32.mrf.mxu1  ;;  %v5479_v45 = vld [vmem:[#allocation7 + $0x5c] sm:$0xf]  ;;  %v7968_v28 = vld [vmem:[#allocation20_spill] sm:$0xff] }
 0x168   : > { %v1896_v7 = vpop.f32.mrf.mxu3  ;;  %v1721_v11 = vadd.f32 %v1720_v14, %v1631_v63  ;;  %v4116_v20 = vor.u32 %v5479_v45, %v4113_v54  ;;  %v4140_v54 = vor.u32 %v5486_v42, %v4137_v52 }
 0x169   : > { %v6933_v60 = vadd.f32 %v1896_v7, %v1808_v48  ;;  %v4108_v7 = vor.u32 %v5478_v24, %v4105_v1  ;;  %v5491_v24 = vld [vmem:[#allocation7 + $0xb4] sm:$0xf0]  ;;  %v7996_v1 = vld [vmem:[#allocation38_spill] sm:$0xff] }
 0x16d   : > { %v1634_v39 = vpop.f32.mrf.mxu0 }
 0x16e   : > { %v1809_v16 = vpop.f32.mrf.mxu2 }
 0x16f   : > { %v1810_v30 = vadd.f32 %v1809_v16, %v1721_v11  ;;  %v1723_v23 = vpop.f32.mrf.mxu1  ;;  %v7976_v16 = vld [vmem:[#allocation27_spill] sm:$0xff] }
 0x170   : > { %v1898_v3 = vpop.f32.mrf.mxu3  ;;  %v1724_v44 = vadd.f32 %v1723_v23, %v1634_v39  ;;  %1949 = vmatmul.bf16.vlgmr.msrb.gmra.mxu0 %v4072_v27  ;;  %v7972_v27 = vld [vmem:[#allocation22_spill] sm:$0xff]  ;;  %v7978_v39 = vld [vmem:[#allocation29_spill] sm:$0xff] }
 0x171   : > { %v6935_v0 = vadd.f32 %v1898_v3, %v1810_v30  ;;  %5270 = vmatpush.bf16.msk.msrb.mxu0 %vm7950_vm0, %v7853_v35  ;;  %vm7967_vm0 = vnez %v7966_v37  ;;  %v7982_v30 = vld [vmem:[#allocation28_spill] sm:$0xff]  ;;  %v7998_v37 = vld [vmem:[#allocation41_spill] sm:$0xff] }
 0x172   : > { %2038 = vmatmul.bf16.vlgmr.msrb.gmra.mxu1 %v4076_v25  ;;  %v7980_v25 = vld [vmem:[#allocation26_spill] sm:$0xff] }
 0x173   : > { %2127 = vmatmul.bf16.vlgmr.msrb.gmra.mxu2 %v4080_v33  ;;  %5286 = vmatpush.bf16.msk.msrb.mxu1 %vm7951_vm2, %v7853_v35  ;;  %vm7969_vm2 = vnez %v7968_v28  ;;  %v7984_v33 = vld [vmem:[#allocation31_spill] sm:$0xff] }
 0x174   : > { %5302 = vmatpush.bf16.msk.msrb.mxu2 %vm7952_vm6, %v7853_v35  ;;  %vm7973_vm6 = vnez %v7972_v27  ;;  %v5498_v27 = vld [vmem:[#allocation7 + $0xec] sm:$0xf0] }
 0x175   : > { %2216 = vmatmul.bf16.vlgmr.msrb.gmra.mxu3 %v4084_v49  ;;  %v1636_v9 = vpop.f32.mrf.mxu0  ;;  %5272 = vmatpush.bf16.msk.msrb.mxu0 %vm7955_vm11, %v7853_v35  ;;  %vm7981_vm11 = vnez %v7980_v25  ;;  %v5499_v25 = vld [vmem:[#allocation7 + $0xf4] sm:$0xf0] }
 0x176   : > { %5318 = vmatpush.bf16.msk.msrb.mxu3 %vm7953_vm1, %v7853_v35  ;;  %v1812_v40 = vpop.f32.mrf.mxu2  ;;  %vm7977_vm1 = vnez %v7976_v16  ;;  %v4169_v16 = vld [vmem:[#allocation7 + $0xf0] sm:$0xf0] }
 0x177   : > { %v1813_v43 = vadd.f32 %v1812_v40, %v1724_v44  ;;  %v1725_v26 = vpop.f32.mrf.mxu1  ;;  %5288 = vmatpush.bf16.msk.msrb.mxu1 %vm7957_vm12, %v7853_v35  ;;  %vm7983_vm12 = vnez %v7982_v30  ;;  %v4168_v30 = vor.u32 %v5498_v27, %v4167_v59 }
 0x178   : > { %v1901_v34 = vpop.f32.mrf.mxu3  ;;  %v1726_v56 = vadd.f32 %v1725_v26, %v1636_v9  ;;  %5304 = vmatpush.bf16.msk.msrb.mxu2 %vm7959_vm3, %v7853_v35  ;;  %vm7985_vm3 = vnez %v7984_v33  ;;  %v7986_v9 = vld [vmem:[#allocation34_spill] sm:$0xff]  ;;  %v7990_v26 = vld [vmem:[#allocation33_spill] sm:$0xff] }
 0x179   : > { %v6958_v46 = vadd.f32 %v1901_v34, %v1813_v43  ;;  %5274 = vmatpush.bf16.msk.msrb.mxu0 %vm7963_vm10, %v7853_v35  ;;  %v7988_v43 = vld [vmem:[#allocation30_spill] sm:$0xff] }
 0x17a   : > { %5320 = vmatpush.bf16.msk.msrb.mxu3 %vm7961_vm5, %v7853_v35  ;;  %vm7987_vm5 = vnez %v7986_v9  ;;  %vm7989_vm10 = vnez %v7988_v43 }
 0x17b   : > { %5290 = vmatpush.bf16.msk.msrb.mxu1 %vm7965_vm13, %v7853_v35  ;;  %vm7991_vm13 = vnez %v7990_v26 }
 0x17c   : > { %5306 = vmatpush.bf16.msk.msrb.mxu2 %vm7967_vm0, %v7853_v35  ;;  %vm7993_vm0 = vnez %v7992_v41 }
 0x17d   : > { %v1639_v48 = vpop.f32.mrf.mxu0  ;;  %5276 = vmatpush.bf16.msk.msrb.mxu0 %vm6612_vm7, %v7853_v35  ;;  %vm7975_vm7 = vnez %v7974_v10  ;;  %v5494_v10 = vld [vmem:[#allocation7 + $0xd4] sm:$0xf] }
 0x17e   : > { %5322 = vmatpush.bf16.msk.msrb.mxu3 %vm7969_vm2, %v7853_v35  ;;  %v1814_v63 = vpop.f32.mrf.mxu2  ;;  %vm7995_vm2 = vnez %v7994_v19  ;;  %v4172_v33 = vor.u32 %v5494_v10, %v4169_v16 }
 0x17f   : > { %v1815_v11 = vadd.f32 %v1814_v63, %v1726_v56  ;;  %v1728_v55 = vpop.f32.mrf.mxu1  ;;  %5292 = vmatpush.bf16.msk.msrb.mxu1 %vm6626_vm9, %v7853_v35  ;;  %vm7979_vm9 = vnez %v7978_v39  ;;  %v5490_v56 = vld [vmem:[#allocation7 + $0xac] sm:$0xf0]  ;;  %v4175_v39 = vld [vmem:[#allocation7 + $0xd8] sm:$0xf] }
 0x180   : > { %v1903_v32 = vpop.f32.mrf.mxu3  ;;  %v1729_v5 = vadd.f32 %v1728_v55, %v1639_v48  ;;  %5308 = vmatpush.bf16.msk.msrb.mxu2 %vm7973_vm6, %v7853_v35  ;;  %1954 = vmatmul.bf16.gmra.mxu0 %v4104_v36  ;;  %vm7997_vm6 = vnez %v7996_v1  ;;  %v4136_v50 = vor.u32 %v5490_v56, %v4135_v47  ;;  %v4176_v9 = vor.u32 %v5499_v25, %v4175_v39  ;;  %v5506_v1 = vld [vmem:[#allocation7 + $0x12c] sm:$0xf0] }
 0x181   : > { %v6984_v8 = vadd.f32 %v1903_v32, %v1815_v11  ;;  %5278 = vmatpush.bf16.msk.msrb.mxu0 %vm7977_vm1, %v7853_v35  ;;  %v4148_v11 = vor.u32 %v5487_v51, %v4145_v15  ;;  %v4201_v51 = vld [vmem:[#allocation7 + $0x130] sm:$0xf0]  ;;  %v4207_v15 = vld [vmem:[#allocation7 + $0x118] sm:$0xf]  ;;  %v4231_v25 = vld [vmem:[#allocation7 + $0x150] sm:$0xf] }
 0x182   : > { %5324 = vmatpush.bf16.msk.msrb.mxu3 %vm7975_vm7, %v7853_v35  ;;  %2043 = vmatmul.bf16.gmra.mxu1 %v4108_v7  ;;  %vm7999_vm7 = vnez %v7998_v37  ;;  %v4144_v7 = vor.u32 %v5491_v24, %v4143_v18  ;;  %v4199_v24 = vld [vmem:[#allocation7 + $0x110] sm:$0xf]  ;;  %v5507_v37 = vld [vmem:[#allocation7 + $0x134] sm:$0xf0] }
 0x183   : > { %2132 = vmatmul.bf16.gmra.mxu2 %v4112_v17  ;;  %5294 = vmatpush.bf16.msk.msrb.mxu1 %vm7979_vm9, %v7853_v35 }
 0x184   : > { %5310 = vmatpush.bf16.msk.msrb.mxu2 %vm7981_vm11, %v7853_v35 }
 0x185   : > { %2221 = vmatmul.bf16.gmra.mxu3 %v4116_v20  ;;  %v1641_v23 = vpop.f32.mrf.mxu0  ;;  %5280 = vmatpush.bf16.msk.msrb.mxu0 %vm7985_vm3, %v7853_v35 }
 0x186   : > { %5326 = vmatpush.bf16.msk.msrb.mxu3 %vm7983_vm12, %v7853_v35  ;;  %v1817_v3 = vpop.f32.mrf.mxu2 }
 0x187   : > { %v1818_v44 = vadd.f32 %v1817_v3, %v1729_v5  ;;  %v1730_v40 = vpop.f32.mrf.mxu1  ;;  %5296 = vmatpush.bf16.msk.msrb.mxu1 %vm7987_vm5, %v7853_v35 }
 0x188   : > { %v1906_v49 = vpop.f32.mrf.mxu3  ;;  %v1731_v31 = vadd.f32 %v1730_v40, %v1641_v23  ;;  %5312 = vmatpush.bf16.msk.msrb.mxu2 %vm7989_vm10, %v7853_v35 }
 0x189   : > { %v7010_v34 = vadd.f32 %v1906_v49, %v1818_v44  ;;  %5282 = vmatpush.bf16.msk.msrb.mxu0 %vm7993_vm0, %v7853_v35 }
 0x18a   : > { %5328 = vmatpush.bf16.msk.msrb.mxu3 %vm7991_vm13, %v7853_v35 }
 0x18b   : > { %5298 = vmatpush.bf16.msk.msrb.mxu1 %vm7995_vm2, %v7853_v35 }
 0x18c   : > { %5314 = vmatpush.bf16.msk.msrb.mxu2 %vm7997_vm6, %v7853_v35 }
 0x18d   : > { %v1644_v45 = vpop.f32.mrf.mxu0  ;;  %5284 = vmatpush.bf16.msk.msrb.mxu0 %vm6800_vm8, %v7853_v35 }
 0x18e   : > { %5330 = vmatpush.bf16.msk.msrb.mxu3 %vm7999_vm7, %v7853_v35  ;;  %v1819_v36 = vpop.f32.mrf.mxu2 }
 0x18f   : > { %v1820_v28 = vadd.f32 %v1819_v36, %v1731_v31  ;;  %v1733_v48 = vpop.f32.mrf.mxu1  ;;  %5300 = vmatpush.bf16.msk.msrb.mxu1 %vm6829_vm14, %v7853_v35  ;;  %v4200_v36 = vor.u32 %v5506_v1, %v4199_v24 }
 0x190   : > { %v1908_v63 = vpop.f32.mrf.mxu3  ;;  %v1734_v14 = vadd.f32 %v1733_v48, %v1644_v45  ;;  %5316 = vmatpush.bf16.msk.msrb.mxu2 %vm6790_vm4, %v7853_v35  ;;  %1959 = vmatmul.bf16.gmra.mxu0 %v4136_v50  ;;  %v5502_v50 = vld [vmem:[#allocation7 + $0x114] sm:$0xf]  ;;  %v5503_v45 = vld [vmem:[#allocation7 + $0x11c] sm:$0xf] }
 0x191   : > { %v7036_v32 = vadd.f32 %v1908_v63, %v1820_v28  ;;  %v4204_v48 = vor.u32 %v5502_v50, %v4201_v51 }
 0x192   : > { %5332 = vmatpush.bf16.msk.msrb.mxu3 %vm6809_vm15, %v7853_v35  ;;  %2048 = vmatmul.bf16.gmra.mxu1 %v4140_v54  ;;  %v4177_v35 = vld [vmem:[#allocation7 + $0xf8] sm:$0xf0] }
 0x193   : > { %2137 = vmatmul.bf16.gmra.mxu2 %v4144_v7  ;;  %v4180_v43 = vor.u32 %v5495_v38, %v4177_v35  ;;  %v4209_v54 = vld [vmem:[#allocation7 + $0x138] sm:$0xf0]  ;;  %v5510_v38 = vld [vmem:[#allocation7 + $0x154] sm:$0xf] }
 0x194   : > { %v4233_v35 = vld [vmem:[#allocation7 + $0x170] sm:$0xf0] }
 0x195   : > { %2226 = vmatmul.bf16.gmra.mxu3 %v4148_v11  ;;  %v1646_v55 = vpop.f32.mrf.mxu0 }
 0x196   : > { %v1822_v61 = vpop.f32.mrf.mxu2 }
 0x197   : > { %v1823_v2 = vadd.f32 %v1822_v61, %v1734_v14  ;;  %v1735_v22 = vpop.f32.mrf.mxu1  ;;  %v4208_v61 = vor.u32 %v5507_v37, %v4207_v15 }
 0x198   : > { %v1911_v17 = vpop.f32.mrf.mxu3  ;;  %v1736_v5 = vadd.f32 %v1735_v22, %v1646_v55 }
 0x199   : > { %v7041_v20 = vadd.f32 %v1911_v17, %v1823_v2  ;;  %v4212_v2 = vor.u32 %v5503_v45, %v4209_v54  ;;  %v4263_v45 = vld [vmem:[#allocation7 + $0x190] sm:$0xf] }
 0x19a   : > { %v5522_v54 = vld [vmem:[#allocation7 + $0x1ac] sm:$0xf0] }
 0x19d   : > { %v1649_v23 = vpop.f32.mrf.mxu0 }
 0x19e   : > { %v1824_v3 = vpop.f32.mrf.mxu2 }
 0x19f   : > { %v1825_v44 = vadd.f32 %v1824_v3, %v1736_v5  ;;  %v1738_v40 = vpop.f32.mrf.mxu1  ;;  %v4239_v3 = vld [vmem:[#allocation7 + $0x158] sm:$0xf] }
 0x1a0   : > { %v1913_v49 = vpop.f32.mrf.mxu3  ;;  %v1739_v31 = vadd.f32 %v1738_v40, %v1649_v23  ;;  %1964 = vmatmul.bf16.gmra.mxu0 %v4168_v30  ;;  %v5514_v30 = vld [vmem:[#allocation7 + $0x16c] sm:$0xf0]  ;;  %v5515_v23 = vld [vmem:[#allocation7 + $0x174] sm:$0xf0] }
 0x1a1   : > { %v7043_v26 = vadd.f32 %v1913_v49, %v1825_v44  ;;  %v5511_v44 = vld [vmem:[#allocation7 + $0x15c] sm:$0xf] }
 0x1a2   : > { %2053 = vmatmul.bf16.gmra.mxu1 %v4172_v33  ;;  %v4232_v33 = vor.u32 %v5514_v30, %v4231_v25  ;;  %v4241_v49 = vld [vmem:[#allocation7 + $0x178] sm:$0xf0] }
 0x1a3   : > { %2142 = vmatmul.bf16.gmra.mxu2 %v4176_v9 }
 0x1a5   : > { %2231 = vmatmul.bf16.gmra.mxu3 %v4180_v43  ;;  %v1651_v56 = vpop.f32.mrf.mxu0 }
 0x1a6   : > { %v1827_v47 = vpop.f32.mrf.mxu2 }
 0x1a7   : > { %v1828_v41 = vadd.f32 %v1827_v47, %v1739_v31  ;;  %v1740_v52 = vpop.f32.mrf.mxu1  ;;  %v4236_v31 = vor.u32 %v5510_v38, %v4233_v35 }
 0x1a8   : > { %v1916_v42 = vpop.f32.mrf.mxu3  ;;  %v1741_v19 = vadd.f32 %v1740_v52, %v1651_v56  ;;  %v4244_v52 = vor.u32 %v5511_v44, %v4241_v49 }
 0x1a9   : > { %v7045_v18 = vadd.f32 %v1916_v42, %v1828_v41  ;;  %v4240_v41 = vor.u32 %v5515_v23, %v4239_v3 }
 0x1ad   : > { %v1654_v63 = vpop.f32.mrf.mxu0 }
 0x1ae   : > { %v1829_v28 = vpop.f32.mrf.mxu2 }
 0x1af   : > { %v1830_v7 = vadd.f32 %v1829_v28, %v1741_v19  ;;  %v1743_v11 = vpop.f32.mrf.mxu1  ;;  %v5518_v28 = vld [vmem:[#allocation7 + $0x194] sm:$0xf] }
 0x1b0   : > { %v1918_v14 = vpop.f32.mrf.mxu3  ;;  %v1744_v55 = vadd.f32 %v1743_v11, %v1654_v63  ;;  %1969 = vmatmul.bf16.gmra.mxu0 %v4200_v36  ;;  %v4265_v63 = vld [vmem:[#allocation7 + $0x1b0] sm:$0xf0]  ;;  %v5519_v11 = vld [vmem:[#allocation7 + $0x19c] sm:$0xf] }
 0x1b1   : > { %v7047_v17 = vadd.f32 %v1918_v14, %v1830_v7  ;;  %v5523_v7 = vld [vmem:[#allocation7 + $0x1b4] sm:$0xf0]  ;;  %v4264_v14 = vor.u32 %v5522_v54, %v4263_v45 }
 0x1b2   : > { %2058 = vmatmul.bf16.gmra.mxu1 %v4204_v48  ;;  %v4271_v48 = vld [vmem:[#allocation7 + $0x198] sm:$0xf] }
 0x1b3   : > { %2147 = vmatmul.bf16.gmra.mxu2 %v4208_v61  ;;  %v4273_v61 = vld [vmem:[#allocation7 + $0x1b8] sm:$0xf0] }
 0x1b4   : > { %v4276_v25 = vor.u32 %v5519_v11, %v4273_v61 }
 0x1b5   : > { %2236 = vmatmul.bf16.gmra.mxu3 %v4212_v2  ;;  %v1656_v5 = vpop.f32.mrf.mxu0 }
 0x1b6   : > { %v1832_v22 = vpop.f32.mrf.mxu2 }
 0x1b7   : > { %v1833_v59 = vadd.f32 %v1832_v22, %v1744_v55  ;;  %v1745_v10 = vpop.f32.mrf.mxu1  ;;  %v4268_v22 = vor.u32 %v5518_v28, %v4265_v63 }
 0x1b8   : > { %v1921_v27 = vpop.f32.mrf.mxu3  ;;  %v1746_v16 = vadd.f32 %v1745_v10, %v1656_v5  ;;  %v4272_v10 = vor.u32 %v5523_v7, %v4271_v48 }
 0x1b9   : > { %v7049_v39 = vadd.f32 %v1921_v27, %v1833_v59 }
 0x1bd   : > { %v1659_v9 = vpop.f32.mrf.mxu0 }
 0x1be   : > { %v1834_v40 = vpop.f32.mrf.mxu2 }
 0x1bf   : > { %v1835_v43 = vadd.f32 %v1834_v40, %v1746_v16  ;;  %v1748_v56 = vpop.f32.mrf.mxu1  ;;  %v4295_v40 = vld [vmem:[#allocation7 + $0x1d0] sm:$0xf] }
 0x1c0   : > { %v1923_v47 = vpop.f32.mrf.mxu3  ;;  %v1749_v42 = vadd.f32 %v1748_v56, %v1659_v9  ;;  %1974 = vmatmul.bf16.gmra.mxu0 %v4232_v33  ;;  %v5530_v9 = vld [vmem:[#allocation7 + $0x1ec] sm:$0xf0]  ;;  %v5531_v56 = vld [vmem:[#allocation7 + $0x1f4] sm:$0xf0] }
 0x1c1   : > { %v7051_v19 = vadd.f32 %v1923_v47, %v1835_v43  ;;  %v4297_v43 = vld [vmem:[#allocation7 + $0x1f0] sm:$0xf0]  ;;  %v4303_v47 = vld [vmem:[#allocation7 + $0x1d8] sm:$0xf] }
 0x1c2   : > { %2063 = vmatmul.bf16.gmra.mxu1 %v4236_v31  ;;  %v5526_v31 = vld [vmem:[#allocation7 + $0x1d4] sm:$0xf]  ;;  %v4304_v45 = vor.u32 %v5531_v56, %v4303_v47 }
 0x1c3   : > { %2152 = vmatmul.bf16.gmra.mxu2 %v4240_v41  ;;  %v4296_v41 = vor.u32 %v5530_v9, %v4295_v40  ;;  %v8000_v9 = vld [vmem:[#allocation32_spill] sm:$0xff] }
 0x1c5   : > { %2241 = vmatmul.bf16.gmra.mxu3 %v4244_v52  ;;  %v1661_v1 = vpop.f32.mrf.mxu0  ;;  %v4305_v52 = vld [vmem:[#allocation7 + $0x1f8] sm:$0xf0] }
 0x1c6   : > { %v1837_v24 = vpop.f32.mrf.mxu2 }
 0x1c7   : > { %v1838_v50 = vadd.f32 %v1837_v24, %v1749_v42  ;;  %v1750_v15 = vpop.f32.mrf.mxu1  ;;  %v5527_v42 = vld [vmem:[#allocation7 + $0x1dc] sm:$0xf] }
 0x1c8   : > { %v1926_v51 = vpop.f32.mrf.mxu3  ;;  %v1751_v37 = vadd.f32 %v1750_v15, %v1661_v1  ;;  %v4308_v28 = vor.u32 %v5527_v42, %v4305_v52 }
 0x1c9   : > { %v7053_v36 = vadd.f32 %v1926_v51, %v1838_v50  ;;  %v4300_v50 = vor.u32 %v5526_v31, %v4297_v43 }
 0x1cd   : > { %v1664_v2 = vpop.f32.mrf.mxu0 }
 0x1ce   : > { %v1839_v55 = vpop.f32.mrf.mxu2 }
 0x1cf   : > { %v1840_v5 = vadd.f32 %v1839_v55, %v1751_v37  ;;  %v1753_v27 = vpop.f32.mrf.mxu1 }
 0x1d0   : > { %v1928_v59 = vpop.f32.mrf.mxu3  ;;  %v1754_v16 = vadd.f32 %v1753_v27, %v1664_v2  ;;  %1979 = vmatmul.bf16.gmra.mxu0 %v4264_v14  ;;  %v4329_v27 = vld [vmem:[#allocation7 + $0x230] sm:$0xf0] }
 0x1d1   : > { %v7055_v30 = vadd.f32 %v1928_v59, %v1840_v5  ;;  %v5538_v5 = vld [vmem:[#allocation7 + $0x22c] sm:$0xf0]  ;;  %v5534_v59 = vld [vmem:[#allocation7 + $0x214] sm:$0xf] }
 0x1d2   : > { %2068 = vmatmul.bf16.gmra.mxu1 %v4268_v22  ;;  %v4327_v22 = vld [vmem:[#allocation7 + $0x210] sm:$0xf] }
 0x1d3   : > { %2157 = vmatmul.bf16.gmra.mxu2 %v4272_v10  ;;  %v4335_v10 = vld [vmem:[#allocation7 + $0x218] sm:$0xf] }
 0x1d5   : > { %2246 = vmatmul.bf16.gmra.mxu3 %v4276_v25  ;;  %v1666_v35 = vpop.f32.mrf.mxu0  ;;  %v4328_v25 = vor.u32 %v5538_v5, %v4327_v22  ;;  %v5543_v22 = vld [vmem:[#allocation7 + $0x25c] sm:$0xf] }
 0x1d6   : > { %v1842_v38 = vpop.f32.mrf.mxu2  ;;  %v4369_v5 = vld [vmem:[#allocation7 + $0x278] sm:$0xf0] }
 0x1d7   : > { %v1843_v3 = vadd.f32 %v1842_v38, %v1754_v16  ;;  %v1755_v33 = vpop.f32.mrf.mxu1  ;;  %v5539_v16 = vld [vmem:[#allocation7 + $0x234] sm:$0xf0]  ;;  %v5535_v38 = vld [vmem:[#allocation7 + $0x21c] sm:$0xf] }
 0x1d8   : > { %v1931_v23 = vpop.f32.mrf.mxu3  ;;  %v1756_v44 = vadd.f32 %v1755_v33, %v1666_v35  ;;  %v4337_v35 = vld [vmem:[#allocation7 + $0x238] sm:$0xf0]  ;;  %v4332_v33 = vor.u32 %v5534_v59, %v4329_v27  ;;  %v4336_v47 = vor.u32 %v5539_v16, %v4335_v10 }
 0x1d9   : > { %v7057_v49 = vadd.f32 %v1931_v23, %v1843_v3  ;;  %v4340_v56 = vor.u32 %v5535_v38, %v4337_v35  ;;  %v8002_v38 = vld [vmem:[#allocation36_spill] sm:$0xff] }
 0x1dd   : > { %v1669_v1 = vpop.f32.mrf.mxu0 }
 0x1de   : > { %v1844_v24 = vpop.f32.mrf.mxu2 }
 0x1df   : > { %v1845_v51 = vadd.f32 %v1844_v24, %v1756_v44  ;;  %v1758_v37 = vpop.f32.mrf.mxu1 }
 0x1e0   : > { %v1933_v15 = vpop.f32.mrf.mxu3  ;;  %v1759_v54 = vadd.f32 %v1758_v37, %v1669_v1  ;;  %1984 = vmatmul.bf16.gmra.mxu0 %v4296_v41 }
 0x1e1   : > { %v7059_v63 = vadd.f32 %v1933_v15, %v1845_v51  ;;  %v8001_v51 = vld [vmem:[#allocation35_spill] sm:$0xff] }
 0x1e2   : > { %2073 = vmatmul.bf16.gmra.mxu1 %v4300_v50 }
 0x1e3   : > { %2162 = vmatmul.bf16.gmra.mxu2 %v4304_v45 }
 0x1e5   : > { %2251 = vmatmul.bf16.gmra.mxu3 %v4308_v28  ;;  %v1671_v7 = vpop.f32.mrf.mxu0  ;;  %v4359_v28 = vld [vmem:[#allocation7 + $0x250] sm:$0xf] }
 0x1e6   : > { %v1847_v48 = vpop.f32.mrf.mxu2 }
 0x1e7   : > { %v1848_v14 = vadd.f32 %v1847_v48, %v1759_v54  ;;  %v1760_v61 = vpop.f32.mrf.mxu1  ;;  %v5546_v48 = vld [vmem:[#allocation7 + $0x26c] sm:$0xf0] }
 0x1e8   : > { %v1936_v11 = vpop.f32.mrf.mxu3  ;;  %v1761_v55 = vadd.f32 %v1760_v61, %v1671_v7  ;;  %v5542_v7 = vld [vmem:[#allocation7 + $0x254] sm:$0xf]  ;;  %v5547_v61 = vld [vmem:[#allocation7 + $0x274] sm:$0xf0] }
 0x1e9   : > { %v7061_v2 = vadd.f32 %v1936_v11, %v1848_v14  ;;  %v4361_v14 = vld [vmem:[#allocation7 + $0x270] sm:$0xf0]  ;;  %v4367_v11 = vld [vmem:[#allocation7 + $0x258] sm:$0xf] }
 0x1ea   : > { %v4364_v10 = vor.u32 %v5542_v7, %v4361_v14  ;;  %v5551_v7 = vld [vmem:[#allocation7 + $0x29c] sm:$0xf] }
 0x1eb   : > { %v4401_v14 = vld [vmem:[#allocation7 + $0x2b8] sm:$0xf0] }
 0x1ed   : > { %v1950_v23 = vpop.f32.mrf.mxu0 }
 0x1ee   : > { %v1849_v3 = vpop.f32.mrf.mxu2  ;;  %v1951_v31 = vadd.f32 %v1950_v23, %v8000_v9  ;;  %v4368_v23 = vor.u32 %v5547_v61, %v4367_v11 }
 0x1ef   : > { %v1850_v44 = vadd.f32 %v1849_v3, %v1761_v55  ;;  %v2039_v43 = vpop.f32.mrf.mxu1  ;;  %v4360_v55 = vor.u32 %v5546_v48, %v4359_v28  ;;  %v5555_v28 = vld [vmem:[#allocation7 + $0x2b4] sm:$0xf0] }
 0x1f0   : > { %v1938_v40 = vpop.f32.mrf.mxu3  ;;  %v2040_v42 = vadd.f32 %v2039_v43, %v1951_v31  ;;  %1989 = vmatmul.bf16.gmra.mxu0 %v4328_v25 }
 0x1f1   : > { %v7064_v41 = vadd.f32 %v1938_v40, %v1850_v44 }
 0x1f2   : > { %2078 = vmatmul.bf16.gmra.mxu1 %v4332_v33  ;;  %v4372_v33 = vor.u32 %v5543_v22, %v4369_v5 }
 0x1f3   : > { %2167 = vmatmul.bf16.gmra.mxu2 %v4336_v47 }
 0x1f5   : > { %2256 = vmatmul.bf16.gmra.mxu3 %v4340_v56  ;;  %v1952_v24 = vpop.f32.mrf.mxu0  ;;  %v8003_v56 = vld [vmem:[#allocation37_spill] sm:$0xff] }
 0x1f6   : > { %v2128_v52 = vpop.f32.mrf.mxu2  ;;  %v1953_v15 = vadd.f32 %v1952_v24, %v8001_v51  ;;  %v5554_v51 = vld [vmem:[#allocation7 + $0x2ac] sm:$0xf0] }
 0x1f7   : > { %v2129_v1 = vadd.f32 %v2128_v52, %v2040_v42  ;;  %v2041_v37 = vpop.f32.mrf.mxu1 }
 0x1f8   : > { %v2217_v50 = vpop.f32.mrf.mxu3  ;;  %v2042_v54 = vadd.f32 %v2041_v37, %v1953_v15  ;;  %v5550_v15 = vld [vmem:[#allocation7 + $0x294] sm:$0xf] }
 0x1f9   : > { %v7067_v45 = vadd.f32 %v2217_v50, %v2129_v1  ;;  %v4391_v50 = vld [vmem:[#allocation7 + $0x290] sm:$0xf]  ;;  %v4393_v37 = vld [vmem:[#allocation7 + $0x2b0] sm:$0xf0] }
 0x1fa   : > { %v4392_v48 = vor.u32 %v5554_v51, %v4391_v50  ;;  %v4431_v50 = vld [vmem:[#allocation7 + $0x2d8] sm:$0xf] }
 0x1fb   : > { %v5563_v51 = vld [vmem:[#allocation7 + $0x2f4] sm:$0xf0] }
 0x1fd   : > { %v1955_v27 = vpop.f32.mrf.mxu0 }
 0x1fe   : > { %v2130_v59 = vpop.f32.mrf.mxu2  ;;  %v1956_v35 = vadd.f32 %v1955_v27, %v8002_v38 }
 0x1ff   : > { %v2131_v16 = vadd.f32 %v2130_v59, %v2042_v54  ;;  %v2044_v3 = vpop.f32.mrf.mxu1  ;;  %v4399_v54 = vld [vmem:[#allocation7 + $0x298] sm:$0xf]  ;;  %v8004_v59 = vld [vmem:[#allocation40_spill] sm:$0xff] }
 0x200   : > { %v2219_v25 = vpop.f32.mrf.mxu3  ;;  %v2045_v40 = vadd.f32 %v2044_v3, %v1956_v35  ;;  %1994 = vmatmul.bf16.gmra.mxu0 %v4360_v55  ;;  %v4396_v55 = vor.u32 %v5550_v15, %v4393_v37  ;;  %v5559_v37 = vld [vmem:[#allocation7 + $0x2dc] sm:$0xf] }
 0x201   : > { %v7070_v44 = vadd.f32 %v2219_v25, %v2131_v16  ;;  %v4400_v16 = vor.u32 %v5555_v28, %v4399_v54  ;;  %v4404_v25 = vor.u32 %v5551_v7, %v4401_v14  ;;  %v4433_v54 = vld [vmem:[#allocation7 + $0x2f8] sm:$0xf0] }
 0x202   : > { %2083 = vmatmul.bf16.gmra.mxu1 %v4364_v10 }
 0x203   : > { %2172 = vmatmul.bf16.gmra.mxu2 %v4368_v23 }
 0x205   : > { %2261 = vmatmul.bf16.gmra.mxu3 %v4372_v33  ;;  %v1957_v31 = vpop.f32.mrf.mxu0 }
 0x206   : > { %v2133_v9 = vpop.f32.mrf.mxu2  ;;  %v1958_v42 = vadd.f32 %v1957_v31, %v8003_v56  ;;  %v4423_v56 = vld [vmem:[#allocation7 + $0x2d0] sm:$0xf] }
 0x207   : > { %v2134_v43 = vadd.f32 %v2133_v9, %v2045_v40  ;;  %v2046_v52 = vpop.f32.mrf.mxu1 }
 0x208   : > { %v2222_v47 = vpop.f32.mrf.mxu3  ;;  %v2047_v1 = vadd.f32 %v2046_v52, %v1958_v42  ;;  %v5562_v42 = vld [vmem:[#allocation7 + $0x2ec] sm:$0xf0]  ;;  %v5558_v52 = vld [vmem:[#allocation7 + $0x2d4] sm:$0xf] }
 0x209   : > { %v7073_v24 = vadd.f32 %v2222_v47, %v2134_v43  ;;  %v4424_v15 = vor.u32 %v5562_v42, %v4423_v56  ;;  %v5571_v56 = vld [vmem:[#allocation7 + $0x334] sm:$0xf0] }
 0x20d   : > { %v1960_v61 = vpop.f32.mrf.mxu0 }
 0x20e   : > { %v2135_v11 = vpop.f32.mrf.mxu2  ;;  %v1961_v27 = vadd.f32 %v1960_v61, %v8004_v59 }
 0x20f   : > { %v2136_v22 = vadd.f32 %v2135_v11, %v2047_v1  ;;  %v2049_v10 = vpop.f32.mrf.mxu1  ;;  %v4425_v1 = vld [vmem:[#allocation7 + $0x2f0] sm:$0xf0] }
 0x210   : > { %v2224_v5 = vpop.f32.mrf.mxu3  ;;  %v2050_v35 = vadd.f32 %v2049_v10, %v1961_v27  ;;  %1999 = vmatmul.bf16.gmra.mxu0 %v4392_v48  ;;  %v4428_v7 = vor.u32 %v5558_v52, %v4425_v1  ;;  %v5567_v52 = vld [vmem:[#allocation7 + $0x31c] sm:$0xf] }
 0x211   : > { %v7076_v38 = vadd.f32 %v2224_v5, %v2136_v22  ;;  %v4436_v22 = vor.u32 %v5559_v37, %v4433_v54  ;;  %v4465_v1 = vld [vmem:[#allocation7 + $0x338] sm:$0xf0] }
 0x212   : > { %2088 = vmatmul.bf16.gmra.mxu1 %v4396_v55  ;;  %v4432_v55 = vor.u32 %v5563_v51, %v4431_v50 }
 0x213   : > { %2177 = vmatmul.bf16.gmra.mxu2 %v4400_v16 }
 0x215   : > { %2266 = vmatmul.bf16.gmra.mxu3 %v4404_v25  ;;  %v1962_v23 = vpop.f32.mrf.mxu0 }
 0x216   : > { %v2138_v3 = vpop.f32.mrf.mxu2  ;;  %v1963_v9 = vadd.f32 %v1962_v23, %v6775_v6 }
 0x217   : > { %v2139_v33 = vadd.f32 %v2138_v3, %v2050_v35  ;;  %v2051_v31 = vpop.f32.mrf.mxu1 }
 0x218   : > { %v2227_v40 = vpop.f32.mrf.mxu3  ;;  %v2052_v47 = vadd.f32 %v2051_v31, %v1963_v9  ;;  %v5566_v9 = vld [vmem:[#allocation7 + $0x314] sm:$0xf] }
 0x219   : > { %v7079_v43 = vadd.f32 %v2227_v40, %v2139_v33  ;;  %v4455_v33 = vld [vmem:[#allocation7 + $0x310] sm:$0xf]  ;;  %v4457_v31 = vld [vmem:[#allocation7 + $0x330] sm:$0xf0] }
 0x21a   : > { %v5570_v40 = vld [vmem:[#allocation7 + $0x32c] sm:$0xf0] }
 0x21b   : > { %v4456_v42 = vor.u32 %v5570_v40, %v4455_v33  ;;  %v5579_v33 = vld [vmem:[#allocation7 + $0x374] sm:$0xf0] }
 0x21d   : > { %v1965_v48 = vpop.f32.mrf.mxu0 }
 0x21e   : > { %v2140_v28 = vpop.f32.mrf.mxu2  ;;  %v1966_v6 = vadd.f32 %v1965_v48, %v6777_v21 }
 0x21f   : > { %v2141_v14 = vadd.f32 %v2140_v28, %v2052_v47  ;;  %v2054_v61 = vpop.f32.mrf.mxu1  ;;  %v4463_v47 = vld [vmem:[#allocation7 + $0x318] sm:$0xf] }
 0x220   : > { %v2229_v11 = vpop.f32.mrf.mxu3  ;;  %v2055_v59 = vadd.f32 %v2054_v61, %v1966_v6  ;;  %2004 = vmatmul.bf16.gmra.mxu0 %v4424_v15  ;;  %v4460_v15 = vor.u32 %v5566_v9, %v4457_v31  ;;  %v4464_v48 = vor.u32 %v5571_v56, %v4463_v47  ;;  %v5575_v9 = vld [vmem:[#allocation7 + $0x35c] sm:$0xf] }
 0x221   : > { %v7082_v5 = vadd.f32 %v2229_v11, %v2141_v14  ;;  %v4497_v31 = vld [vmem:[#allocation7 + $0x378] sm:$0xf0] }
 0x222   : > { %2093 = vmatmul.bf16.gmra.mxu1 %v4428_v7  ;;  %v4468_v7 = vor.u32 %v5567_v52, %v4465_v1 }
 0x223   : > { %2182 = vmatmul.bf16.gmra.mxu2 %v4432_v55 }
 0x225   : > { %2271 = vmatmul.bf16.gmra.mxu3 %v4436_v22  ;;  %v1967_v10 = vpop.f32.mrf.mxu0 }
 0x226   : > { %v2143_v27 = vpop.f32.mrf.mxu2  ;;  %v1968_v35 = vadd.f32 %v1967_v10, %v6779_v29 }
 0x227   : > { %v2144_v16 = vadd.f32 %v2143_v27, %v2055_v59  ;;  %v2056_v3 = vpop.f32.mrf.mxu1 }
 0x228   : > { %v2232_v25 = vpop.f32.mrf.mxu3  ;;  %v2057_v21 = vadd.f32 %v2056_v3, %v1968_v35  ;;  %v5574_v35 = vld [vmem:[#allocation7 + $0x354] sm:$0xf] }
 0x229   : > { %v7085_v23 = vadd.f32 %v2232_v25, %v2144_v16  ;;  %v4487_v16 = vld [vmem:[#allocation7 + $0x350] sm:$0xf]  ;;  %v4489_v3 = vld [vmem:[#allocation7 + $0x370] sm:$0xf0] }
 0x22a   : > { %v5578_v25 = vld [vmem:[#allocation7 + $0x36c] sm:$0xf0] }
 0x22b   : > { %v4488_v40 = vor.u32 %v5578_v25, %v4487_v16  ;;  %v5587_v16 = vld [vmem:[#allocation7 + $0x3b4] sm:$0xf0] }
 0x22d   : > { %v1970_v51 = vpop.f32.mrf.mxu0 }
 0x22e   : > { %v2145_v50 = vpop.f32.mrf.mxu2  ;;  %v1971_v29 = vadd.f32 %v1970_v51, %v6804_v62 }
 0x22f   : > { %v2146_v37 = vadd.f32 %v2145_v50, %v2057_v21  ;;  %v2059_v28 = vpop.f32.mrf.mxu1  ;;  %v4495_v21 = vld [vmem:[#allocation7 + $0x358] sm:$0xf] }
 0x230   : > { %v2234_v54 = vpop.f32.mrf.mxu3  ;;  %v2060_v11 = vadd.f32 %v2059_v28, %v1971_v29  ;;  %2009 = vmatmul.bf16.gmra.mxu0 %v4456_v42  ;;  %v4492_v42 = vor.u32 %v5574_v35, %v4489_v3  ;;  %v4496_v51 = vor.u32 %v5579_v33, %v4495_v21  ;;  %v5583_v35 = vld [vmem:[#allocation7 + $0x39c] sm:$0xf] }
 0x231   : > { %v7088_v14 = vadd.f32 %v2234_v54, %v2146_v37  ;;  %v4529_v3 = vld [vmem:[#allocation7 + $0x3b8] sm:$0xf0] }
 0x232   : > { %2098 = vmatmul.bf16.gmra.mxu1 %v4460_v15  ;;  %v4500_v15 = vor.u32 %v5575_v9, %v4497_v31 }
 0x233   : > { %2187 = vmatmul.bf16.gmra.mxu2 %v4464_v48 }
 0x235   : > { %2276 = vmatmul.bf16.gmra.mxu3 %v4468_v7  ;;  %v1972_v61 = vpop.f32.mrf.mxu0 }
 0x236   : > { %v2148_v6 = vpop.f32.mrf.mxu2  ;;  %v1973_v59 = vadd.f32 %v1972_v61, %v6848_v58 }
 0x237   : > { %v2149_v55 = vadd.f32 %v2148_v6, %v2060_v11  ;;  %v2061_v27 = vpop.f32.mrf.mxu1 }
 0x238   : > { %v2237_v22 = vpop.f32.mrf.mxu3  ;;  %v2062_v62 = vadd.f32 %v2061_v27, %v1973_v59  ;;  %v5582_v59 = vld [vmem:[#allocation7 + $0x394] sm:$0xf] }
 0x239   : > { %v7091_v10 = vadd.f32 %v2237_v22, %v2149_v55  ;;  %v4519_v55 = vld [vmem:[#allocation7 + $0x390] sm:$0xf]  ;;  %v4521_v27 = vld [vmem:[#allocation7 + $0x3b0] sm:$0xf0] }
 0x23a   : > { %v5586_v22 = vld [vmem:[#allocation7 + $0x3ac] sm:$0xf0] }
 0x23b   : > { %v4520_v25 = vor.u32 %v5586_v22, %v4519_v55  ;;  %v5595_v55 = vld [vmem:[#allocation7 + $0x3f4] sm:$0xf0] }
 0x23d   : > { %v1975_v56 = vpop.f32.mrf.mxu0 }
 0x23e   : > { %v2150_v47 = vpop.f32.mrf.mxu2  ;;  %v1976_v58 = vadd.f32 %v1975_v56, %v6871_v4 }
 0x23f   : > { %v2151_v52 = vadd.f32 %v2150_v47, %v2062_v62  ;;  %v2064_v50 = vpop.f32.mrf.mxu1  ;;  %v4527_v62 = vld [vmem:[#allocation7 + $0x398] sm:$0xf] }
 0x240   : > { %v2239_v1 = vpop.f32.mrf.mxu3  ;;  %v2065_v54 = vadd.f32 %v2064_v50, %v1976_v58  ;;  %2014 = vmatmul.bf16.gmra.mxu0 %v4488_v40  ;;  %v4524_v40 = vor.u32 %v5582_v59, %v4521_v27  ;;  %v4528_v56 = vor.u32 %v5587_v16, %v4527_v62  ;;  %v5591_v59 = vld [vmem:[#allocation7 + $0x3dc] sm:$0xf] }
 0x241   : > { %v7094_v37 = vadd.f32 %v2239_v1, %v2151_v52  ;;  %v4561_v27 = vld [vmem:[#allocation7 + $0x3f8] sm:$0xf0] }
 0x242   : > { %2103 = vmatmul.bf16.gmra.mxu1 %v4492_v42  ;;  %v4532_v42 = vor.u32 %v5583_v35, %v4529_v3 }
 0x243   : > { %2192 = vmatmul.bf16.gmra.mxu2 %v4496_v51 }
 0x245   : > { %2281 = vmatmul.bf16.gmra.mxu3 %v4500_v15  ;;  %v1977_v28 = vpop.f32.mrf.mxu0 }
 0x246   : > { %v2153_v29 = vpop.f32.mrf.mxu2  ;;  %v1978_v11 = vadd.f32 %v1977_v28, %v6897_v13 }
 0x247   : > { %v2154_v48 = vadd.f32 %v2153_v29, %v2065_v54  ;;  %v2066_v6 = vpop.f32.mrf.mxu1 }
 0x248   : > { %v2242_v7 = vpop.f32.mrf.mxu3  ;;  %v2067_v4 = vadd.f32 %v2066_v6, %v1978_v11  ;;  %v5590_v11 = vld [vmem:[#allocation7 + $0x3d4] sm:$0xf] }
 0x249   : > { %v7097_v61 = vadd.f32 %v2242_v7, %v2154_v48  ;;  %v4551_v48 = vld [vmem:[#allocation7 + $0x3d0] sm:$0xf]  ;;  %v4553_v6 = vld [vmem:[#allocation7 + $0x3f0] sm:$0xf0] }
 0x24a   : > { %v5594_v7 = vld [vmem:[#allocation7 + $0x3ec] sm:$0xf0] }
 0x24b   : > { %v4552_v22 = vor.u32 %v5594_v7, %v4551_v48  ;;  %v5345_v48 = vld [vmem:[#allocation5 + $0x24] sm:$0xf0] }
 0x24d   : > { %v1980_v33 = vpop.f32.mrf.mxu0 }
 0x24e   : > { %v2155_v21 = vpop.f32.mrf.mxu2  ;;  %v1981_v13 = vadd.f32 %v1980_v33, %v6923_v53 }
 0x24f   : > { %v2156_v9 = vadd.f32 %v2155_v21, %v2067_v4  ;;  %v2069_v47 = vpop.f32.mrf.mxu1  ;;  %v4559_v4 = vld [vmem:[#allocation7 + $0x3d8] sm:$0xf] }
 0x250   : > { %v2244_v31 = vpop.f32.mrf.mxu3  ;;  %v2070_v1 = vadd.f32 %v2069_v47, %v1981_v13  ;;  %2019 = vmatmul.bf16.gmra.mxu0 %v4520_v25  ;;  %v4556_v25 = vor.u32 %v5590_v11, %v4553_v6  ;;  %v4560_v33 = vor.u32 %v5595_v55, %v4559_v4  ;;  %v5341_v11 = vld [vmem:[#allocation5 + $0xc] sm:$0xf] }
 0x251   : > { %v7100_v52 = vadd.f32 %v2244_v31, %v2156_v9  ;;  %v4705_v6 = vld [vmem:[#allocation5 + $0x28] sm:$0xf0] }
 0x252   : > { %2108 = vmatmul.bf16.gmra.mxu1 %v4524_v40  ;;  %v4564_v40 = vor.u32 %v5591_v59, %v4561_v27 }
 0x253   : > { %2197 = vmatmul.bf16.gmra.mxu2 %v4528_v56 }
 0x255   : > { %2286 = vmatmul.bf16.gmra.mxu3 %v4532_v42  ;;  %v1982_v50 = vpop.f32.mrf.mxu0 }
 0x256   : > { %v2158_v58 = vpop.f32.mrf.mxu2  ;;  %v1983_v54 = vadd.f32 %v1982_v50, %v6931_v57 }
 0x257   : > { %v2159_v51 = vadd.f32 %v2158_v58, %v2070_v1  ;;  %v2071_v29 = vpop.f32.mrf.mxu1 }
 0x258   : > { %v2247_v15 = vpop.f32.mrf.mxu3  ;;  %v2072_v53 = vadd.f32 %v2071_v29, %v1983_v54  ;;  %v5340_v54 = vld [vmem:[#allocation5 + $0x4] sm:$0xf] }
 0x259   : > { %v7103_v28 = vadd.f32 %v2247_v15, %v2159_v51  ;;  %v4695_v51 = vld [vmem:[#allocation5] sm:$0xf]  ;;  %v4697_v29 = vld [vmem:[#allocation5 + $0x20] sm:$0xf0] }
 0x25a   : > { %v5344_v15 = vld [vmem:[#allocation5 + $0x1c] sm:$0xf0] }
 0x25b   : > { %v4696_v7 = vor.u32 %v5344_v15, %v4695_v51  ;;  %v5353_v51 = vld [vmem:[#allocation5 + $0x64] sm:$0xf0] }
 0x25d   : > { %v1985_v16 = vpop.f32.mrf.mxu0 }
 0x25e   : > { %v2160_v62 = vpop.f32.mrf.mxu2  ;;  %v1986_v57 = vadd.f32 %v1985_v16, %v6933_v60 }
 0x25f   : > { %v2161_v35 = vadd.f32 %v2160_v62, %v2072_v53  ;;  %v2074_v21 = vpop.f32.mrf.mxu1  ;;  %v4703_v53 = vld [vmem:[#allocation5 + $0x8] sm:$0xf] }
 0x260   : > { %v2249_v3 = vpop.f32.mrf.mxu3  ;;  %v2075_v31 = vadd.f32 %v2074_v21, %v1986_v57  ;;  %2024 = vmatmul.bf16.gmra.mxu0 %v4552_v22  ;;  %v4700_v22 = vor.u32 %v5340_v54, %v4697_v29  ;;  %v4704_v16 = vor.u32 %v5345_v48, %v4703_v53  ;;  %v5349_v54 = vld [vmem:[#allocation5 + $0x4c] sm:$0xf] }
 0x261   : > { %v7106_v9 = vadd.f32 %v2249_v3, %v2161_v35  ;;  %v4737_v29 = vld [vmem:[#allocation5 + $0x68] sm:$0xf0] }
 0x262   : > { %2113 = vmatmul.bf16.gmra.mxu1 %v4556_v25  ;;  %v4708_v25 = vor.u32 %v5341_v11, %v4705_v6 }
 0x263   : > { %2202 = vmatmul.bf16.gmra.mxu2 %v4560_v33 }
 0x265   : > { %2291 = vmatmul.bf16.gmra.mxu3 %v4564_v40  ;;  %v1987_v47 = vpop.f32.mrf.mxu0 }
 0x266   : > { %v2163_v13 = vpop.f32.mrf.mxu2  ;;  %v1988_v1 = vadd.f32 %v1987_v47, %v6935_v0 }
 0x267   : > { %v2164_v56 = vadd.f32 %v2163_v13, %v2075_v31  ;;  %v2076_v58 = vpop.f32.mrf.mxu1 }
 0x268   : > { %v2252_v42 = vpop.f32.mrf.mxu3  ;;  %v2077_v60 = vadd.f32 %v2076_v58, %v1988_v1  ;;  %v5348_v1 = vld [vmem:[#allocation5 + $0x44] sm:$0xf] }
 0x269   : > { %v7109_v50 = vadd.f32 %v2252_v42, %v2164_v56  ;;  %v4727_v56 = vld [vmem:[#allocation5 + $0x40] sm:$0xf]  ;;  %v4729_v58 = vld [vmem:[#allocation5 + $0x60] sm:$0xf0] }
 0x26a   : > { %v5352_v42 = vld [vmem:[#allocation5 + $0x5c] sm:$0xf0] }
 0x26b   : > { %v4728_v15 = vor.u32 %v5352_v42, %v4727_v56  ;;  %v5361_v56 = vld [vmem:[#allocation5 + $0xa4] sm:$0xf0] }
 0x26d   : > { %v1990_v55 = vpop.f32.mrf.mxu0 }
 0x26e   : > { %v2165_v4 = vpop.f32.mrf.mxu2  ;;  %v1991_v0 = vadd.f32 %v1990_v55, %v6958_v46 }
 0x26f   : > { %v2166_v59 = vadd.f32 %v2165_v4, %v2077_v60  ;;  %v2079_v62 = vpop.f32.mrf.mxu1  ;;  %v4735_v60 = vld [vmem:[#allocation5 + $0x48] sm:$0xf] }
 0x270   : > { %v2254_v27 = vpop.f32.mrf.mxu3  ;;  %v2080_v3 = vadd.f32 %v2079_v62, %v1991_v0  ;;  %2945 = vmatmul.bf16.vlgmr.msra.gmra.mxu0 %v4696_v7  ;;  %v4732_v7 = vor.u32 %v5348_v1, %v4729_v58  ;;  %v4736_v55 = vor.u32 %v5353_v51, %v4735_v60  ;;  %v5357_v1 = vld [vmem:[#allocation5 + $0x8c] sm:$0xf] }
 0x271   : > { %v7112_v35 = vadd.f32 %v2254_v27, %v2166_v59  ;;  %v4769_v58 = vld [vmem:[#allocation5 + $0xa8] sm:$0xf0] }
 0x272   : > { %3034 = vmatmul.bf16.vlgmr.msra.gmra.mxu1 %v4700_v22  ;;  %v4740_v22 = vor.u32 %v5349_v54, %v4737_v29 }
 0x273   : > { %3123 = vmatmul.bf16.vlgmr.msra.gmra.mxu2 %v4704_v16 }
 0x275   : > { %3212 = vmatmul.bf16.vlgmr.msra.gmra.mxu3 %v4708_v25  ;;  %v1992_v21 = vpop.f32.mrf.mxu0 }
 0x276   : > { %v2168_v57 = vpop.f32.mrf.mxu2  ;;  %v1993_v31 = vadd.f32 %v1992_v21, %v6984_v8 }
 0x277   : > { %v2169_v33 = vadd.f32 %v2168_v57, %v2080_v3  ;;  %v2081_v13 = vpop.f32.mrf.mxu1 }
 0x278   : > { %v2257_v40 = vpop.f32.mrf.mxu3  ;;  %v2082_v46 = vadd.f32 %v2081_v13, %v1993_v31  ;;  %v5356_v31 = vld [vmem:[#allocation5 + $0x84] sm:$0xf] }
 0x279   : > { %v7115_v47 = vadd.f32 %v2257_v40, %v2169_v33  ;;  %v4759_v33 = vld [vmem:[#allocation5 + $0x80] sm:$0xf]  ;;  %v4761_v13 = vld [vmem:[#allocation5 + $0xa0] sm:$0xf0] }
 0x27a   : > { %v5360_v40 = vld [vmem:[#allocation5 + $0x9c] sm:$0xf0] }
 0x27b   : > { %v4760_v42 = vor.u32 %v5360_v40, %v4759_v33  ;;  %v5369_v33 = vld [vmem:[#allocation5 + $0xe4] sm:$0xf0] }
 0x27d   : > { %v1995_v48 = vpop.f32.mrf.mxu0 }
 0x27e   : > { %v2170_v53 = vpop.f32.mrf.mxu2  ;;  %v1996_v8 = vadd.f32 %v1995_v48, %v7010_v34 }
 0x27f   : > { %v2171_v11 = vadd.f32 %v2170_v53, %v2082_v46  ;;  %v2084_v4 = vpop.f32.mrf.mxu1  ;;  %v4767_v46 = vld [vmem:[#allocation5 + $0x88] sm:$0xf] }
 0x280   : > { %v2259_v6 = vpop.f32.mrf.mxu3  ;;  %v2085_v27 = vadd.f32 %v2084_v4, %v1996_v8  ;;  %2950 = vmatmul.bf16.gmra.mxu0 %v4728_v15  ;;  %v4764_v15 = vor.u32 %v5356_v31, %v4761_v13  ;;  %v4768_v48 = vor.u32 %v5361_v56, %v4767_v46  ;;  %v5365_v31 = vld [vmem:[#allocation5 + $0xcc] sm:$0xf] }
 0x281   : > { %v7118_v59 = vadd.f32 %v2259_v6, %v2171_v11  ;;  %v4801_v13 = vld [vmem:[#allocation5 + $0xe8] sm:$0xf0] }
 0x282   : > { %3039 = vmatmul.bf16.gmra.mxu1 %v4732_v7  ;;  %v4772_v7 = vor.u32 %v5357_v1, %v4769_v58 }
 0x283   : > { %3128 = vmatmul.bf16.gmra.mxu2 %v4736_v55 }
 0x285   : > { %3217 = vmatmul.bf16.gmra.mxu3 %v4740_v22  ;;  %v1997_v62 = vpop.f32.mrf.mxu0 }
 0x286   : > { %v2173_v0 = vpop.f32.mrf.mxu2  ;;  %v1998_v3 = vadd.f32 %v1997_v62, %v7036_v32 }
 0x287   : > { %v2174_v16 = vadd.f32 %v2173_v0, %v2085_v27  ;;  %v2086_v57 = vpop.f32.mrf.mxu1 }
 0x288   : > { %v2262_v25 = vpop.f32.mrf.mxu3  ;;  %v2087_v34 = vadd.f32 %v2086_v57, %v1998_v3  ;;  %v5364_v3 = vld [vmem:[#allocation5 + $0xc4] sm:$0xf] }
 0x289   : > { %v7121_v21 = vadd.f32 %v2262_v25, %v2174_v16  ;;  %v4791_v16 = vld [vmem:[#allocation5 + $0xc0] sm:$0xf]  ;;  %v4793_v57 = vld [vmem:[#allocation5 + $0xe0] sm:$0xf0] }
 0x28a   : > { %v5368_v25 = vld [vmem:[#allocation5 + $0xdc] sm:$0xf0] }
 0x28b   : > { %v4792_v40 = vor.u32 %v5368_v25, %v4791_v16  ;;  %v5377_v16 = vld [vmem:[#allocation5 + $0x124] sm:$0xf0] }
 0x28d   : > { %v2000_v51 = vpop.f32.mrf.mxu0 }
 0x28e   : > { %v2175_v60 = vpop.f32.mrf.mxu2  ;;  %v2001_v32 = vadd.f32 %v2000_v51, %v7041_v20 }
 0x28f   : > { %v2176_v54 = vadd.f32 %v2175_v60, %v2087_v34  ;;  %v2089_v53 = vpop.f32.mrf.mxu1  ;;  %v4799_v34 = vld [vmem:[#allocation5 + $0xc8] sm:$0xf] }
 0x290   : > { %v2264_v29 = vpop.f32.mrf.mxu3  ;;  %v2090_v6 = vadd.f32 %v2089_v53, %v2001_v32  ;;  %2955 = vmatmul.bf16.gmra.mxu0 %v4760_v42  ;;  %v4796_v42 = vor.u32 %v5364_v3, %v4793_v57  ;;  %v4800_v51 = vor.u32 %v5369_v33, %v4799_v34  ;;  %v5373_v3 = vld [vmem:[#allocation5 + $0x10c] sm:$0xf] }
 0x291   : > { %v7124_v11 = vadd.f32 %v2264_v29, %v2176_v54  ;;  %v4833_v57 = vld [vmem:[#allocation5 + $0x128] sm:$0xf0] }
 0x292   : > { %3044 = vmatmul.bf16.gmra.mxu1 %v4764_v15  ;;  %v4804_v15 = vor.u32 %v5365_v31, %v4801_v13 }
 0x293   : > { %3133 = vmatmul.bf16.gmra.mxu2 %v4768_v48 }
 0x295   : > { %3222 = vmatmul.bf16.gmra.mxu3 %v4772_v7  ;;  %v2002_v4 = vpop.f32.mrf.mxu0 }
 0x296   : > { %v2178_v8 = vpop.f32.mrf.mxu2  ;;  %v2003_v27 = vadd.f32 %v2002_v4, %v7043_v26 }
 0x297   : > { %v2179_v55 = vadd.f32 %v2178_v8, %v2090_v6  ;;  %v2091_v0 = vpop.f32.mrf.mxu1 }
 0x298   : > { %v2267_v22 = vpop.f32.mrf.mxu3  ;;  %v2092_v20 = vadd.f32 %v2091_v0, %v2003_v27  ;;  %v5372_v27 = vld [vmem:[#allocation5 + $0x104] sm:$0xf] }
 0x299   : > { %v7127_v62 = vadd.f32 %v2267_v22, %v2179_v55  ;;  %v4823_v55 = vld [vmem:[#allocation5 + $0x100] sm:$0xf]  ;;  %v4825_v0 = vld [vmem:[#allocation5 + $0x120] sm:$0xf0] }
 0x29a   : > { %v5376_v22 = vld [vmem:[#allocation5 + $0x11c] sm:$0xf0] }
 0x29b   : > { %v4824_v25 = vor.u32 %v5376_v22, %v4823_v55  ;;  %v5385_v55 = vld [vmem:[#allocation5 + $0x164] sm:$0xf0] }
 0x29d   : > { %v2005_v56 = vpop.f32.mrf.mxu0 }
 0x29e   : > { %v2180_v46 = vpop.f32.mrf.mxu2  ;;  %v2006_v26 = vadd.f32 %v2005_v56, %v7045_v18 }
 0x29f   : > { %v2181_v1 = vadd.f32 %v2180_v46, %v2092_v20  ;;  %v2094_v60 = vpop.f32.mrf.mxu1  ;;  %v4831_v20 = vld [vmem:[#allocation5 + $0x108] sm:$0xf] }
 0x2a0   : > { %v2269_v58 = vpop.f32.mrf.mxu3  ;;  %v2095_v29 = vadd.f32 %v2094_v60, %v2006_v26  ;;  %2960 = vmatmul.bf16.gmra.mxu0 %v4792_v40  ;;  %v4828_v40 = vor.u32 %v5372_v27, %v4825_v0  ;;  %v4832_v56 = vor.u32 %v5377_v16, %v4831_v20  ;;  %v5381_v27 = vld [vmem:[#allocation5 + $0x14c] sm:$0xf] }
 0x2a1   : > { %v7130_v54 = vadd.f32 %v2269_v58, %v2181_v1  ;;  %v4865_v0 = vld [vmem:[#allocation5 + $0x168] sm:$0xf0] }
 0x2a2   : > { %3049 = vmatmul.bf16.gmra.mxu1 %v4796_v42  ;;  %v4836_v42 = vor.u32 %v5373_v3, %v4833_v57 }
 0x2a3   : > { %3138 = vmatmul.bf16.gmra.mxu2 %v4800_v51 }
 0x2a5   : > { %3227 = vmatmul.bf16.gmra.mxu3 %v4804_v15  ;;  %v2007_v53 = vpop.f32.mrf.mxu0 }
 0x2a6   : > { %v2183_v32 = vpop.f32.mrf.mxu2  ;;  %v2008_v6 = vadd.f32 %v2007_v53, %v7047_v17 }
 0x2a7   : > { %v2184_v48 = vadd.f32 %v2183_v32, %v2095_v29  ;;  %v2096_v8 = vpop.f32.mrf.mxu1 }
 0x2a8   : > { %v2272_v7 = vpop.f32.mrf.mxu3  ;;  %v2097_v18 = vadd.f32 %v2096_v8, %v2008_v6  ;;  %v5380_v6 = vld [vmem:[#allocation5 + $0x144] sm:$0xf] }
 0x2a9   : > { %v7133_v4 = vadd.f32 %v2272_v7, %v2184_v48  ;;  %v4855_v48 = vld [vmem:[#allocation5 + $0x140] sm:$0xf]  ;;  %v4857_v8 = vld [vmem:[#allocation5 + $0x160] sm:$0xf0] }
 0x2aa   : > { %v5384_v7 = vld [vmem:[#allocation5 + $0x15c] sm:$0xf0] }
 0x2ab   : > { %v4856_v22 = vor.u32 %v5384_v7, %v4855_v48  ;;  %v5393_v48 = vld [vmem:[#allocation5 + $0x1a4] sm:$0xf0] }
 0x2ad   : > { %v2010_v33 = vpop.f32.mrf.mxu0 }
 0x2ae   : > { %v2185_v34 = vpop.f32.mrf.mxu2  ;;  %v2011_v17 = vadd.f32 %v2010_v33, %v7049_v39 }
 0x2af   : > { %v2186_v31 = vadd.f32 %v2185_v34, %v2097_v18  ;;  %v2099_v46 = vpop.f32.mrf.mxu1  ;;  %v4863_v18 = vld [vmem:[#allocation5 + $0x148] sm:$0xf] }
 0x2b0   : > { %v2274_v13 = vpop.f32.mrf.mxu3  ;;  %v2100_v58 = vadd.f32 %v2099_v46, %v2011_v17  ;;  %2965 = vmatmul.bf16.gmra.mxu0 %v4824_v25  ;;  %v4860_v25 = vor.u32 %v5380_v6, %v4857_v8  ;;  %v4864_v33 = vor.u32 %v5385_v55, %v4863_v18  ;;  %v5389_v6 = vld [vmem:[#allocation5 + $0x18c] sm:$0xf] }
 0x2b1   : > { %v7136_v1 = vadd.f32 %v2274_v13, %v2186_v31  ;;  %v4897_v8 = vld [vmem:[#allocation5 + $0x1a8] sm:$0xf0] }
 0x2b2   : > { %3054 = vmatmul.bf16.gmra.mxu1 %v4828_v40  ;;  %v4868_v40 = vor.u32 %v5381_v27, %v4865_v0 }
 0x2b3   : > { %3143 = vmatmul.bf16.gmra.mxu2 %v4832_v56 }
 0x2b5   : > { %3232 = vmatmul.bf16.gmra.mxu3 %v4836_v42  ;;  %v2012_v60 = vpop.f32.mrf.mxu0 }
 0x2b6   : > { %v2188_v26 = vpop.f32.mrf.mxu2  ;;  %v2013_v29 = vadd.f32 %v2012_v60, %v7051_v19 }
 0x2b7   : > { %v2189_v51 = vadd.f32 %v2188_v26, %v2100_v58  ;;  %v2101_v32 = vpop.f32.mrf.mxu1 }
 0x2b8   : > { %v2277_v15 = vpop.f32.mrf.mxu3  ;;  %v2102_v39 = vadd.f32 %v2101_v32, %v2013_v29  ;;  %v5388_v29 = vld [vmem:[#allocation5 + $0x184] sm:$0xf] }
 0x2b9   : > { %v7139_v53 = vadd.f32 %v2277_v15, %v2189_v51  ;;  %v4887_v51 = vld [vmem:[#allocation5 + $0x180] sm:$0xf]  ;;  %v4889_v32 = vld [vmem:[#allocation5 + $0x1a0] sm:$0xf0] }
 0x2ba   : > { %v5392_v15 = vld [vmem:[#allocation5 + $0x19c] sm:$0xf0] }
 0x2bb   : > { %v4888_v7 = vor.u32 %v5392_v15, %v4887_v51  ;;  %v5401_v51 = vld [vmem:[#allocation5 + $0x1e4] sm:$0xf0] }
 0x2bd   : > { %v2015_v16 = vpop.f32.mrf.mxu0 }
 0x2be   : > { %v2190_v20 = vpop.f32.mrf.mxu2  ;;  %v2016_v19 = vadd.f32 %v2015_v16, %v7053_v36 }
 0x2bf   : > { %v2191_v3 = vadd.f32 %v2190_v20, %v2102_v39  ;;  %v2104_v34 = vpop.f32.mrf.mxu1  ;;  %v4895_v39 = vld [vmem:[#allocation5 + $0x188] sm:$0xf] }
 0x2c0   : > { %v2279_v57 = vpop.f32.mrf.mxu3  ;;  %v2105_v13 = vadd.f32 %v2104_v34, %v2016_v19  ;;  %2970 = vmatmul.bf16.gmra.mxu0 %v4856_v22  ;;  %v4892_v22 = vor.u32 %v5388_v29, %v4889_v32  ;;  %v4896_v16 = vor.u32 %v5393_v48, %v4895_v39  ;;  %v5397_v29 = vld [vmem:[#allocation5 + $0x1cc] sm:$0xf] }
 0x2c1   : > { %v7142_v31 = vadd.f32 %v2279_v57, %v2191_v3  ;;  %v4929_v32 = vld [vmem:[#allocation5 + $0x1e8] sm:$0xf0] }
 0x2c2   : > { %3059 = vmatmul.bf16.gmra.mxu1 %v4860_v25  ;;  %v4900_v25 = vor.u32 %v5389_v6, %v4897_v8 }
 0x2c3   : > { %3148 = vmatmul.bf16.gmra.mxu2 %v4864_v33 }
 0x2c5   : > { %3237 = vmatmul.bf16.gmra.mxu3 %v4868_v40  ;;  %v2017_v46 = vpop.f32.mrf.mxu0 }
 0x2c6   : > { %v2193_v17 = vpop.f32.mrf.mxu2  ;;  %v2018_v58 = vadd.f32 %v2017_v46, %v7055_v30 }
 0x2c7   : > { %v2194_v56 = vadd.f32 %v2193_v17, %v2105_v13  ;;  %v2106_v26 = vpop.f32.mrf.mxu1 }
 0x2c8   : > { %v2282_v42 = vpop.f32.mrf.mxu3  ;;  %v2107_v36 = vadd.f32 %v2106_v26, %v2018_v58  ;;  %v5396_v58 = vld [vmem:[#allocation5 + $0x1c4] sm:$0xf] }
 0x2c9   : > { %v7145_v60 = vadd.f32 %v2282_v42, %v2194_v56  ;;  %v4919_v56 = vld [vmem:[#allocation5 + $0x1c0] sm:$0xf]  ;;  %v4921_v26 = vld [vmem:[#allocation5 + $0x1e0] sm:$0xf0] }
 0x2ca   : > { %v5400_v42 = vld [vmem:[#allocation5 + $0x1dc] sm:$0xf0] }
 0x2cb   : > { %v4920_v15 = vor.u32 %v5400_v42, %v4919_v56  ;;  %v5409_v56 = vld [vmem:[#allocation5 + $0x224] sm:$0xf0] }
 0x2cd   : > { %v2020_v55 = vpop.f32.mrf.mxu0 }
 0x2ce   : > { %v2195_v18 = vpop.f32.mrf.mxu2  ;;  %v2021_v30 = vadd.f32 %v2020_v55, %v7057_v49 }
 0x2cf   : > { %v2196_v27 = vadd.f32 %v2195_v18, %v2107_v36  ;;  %v2109_v20 = vpop.f32.mrf.mxu1  ;;  %v4927_v36 = vld [vmem:[#allocation5 + $0x1c8] sm:$0xf] }
 0x2d0   : > { %v2284_v0 = vpop.f32.mrf.mxu3  ;;  %v2110_v57 = vadd.f32 %v2109_v20, %v2021_v30  ;;  %2975 = vmatmul.bf16.gmra.mxu0 %v4888_v7  ;;  %v4924_v7 = vor.u32 %v5396_v58, %v4921_v26  ;;  %v4928_v55 = vor.u32 %v5401_v51, %v4927_v36  ;;  %v5405_v58 = vld [vmem:[#allocation5 + $0x20c] sm:$0xf] }
 0x2d1   : > { %v7148_v3 = vadd.f32 %v2284_v0, %v2196_v27  ;;  %v4961_v26 = vld [vmem:[#allocation5 + $0x228] sm:$0xf0] }
 0x2d2   : > { %3064 = vmatmul.bf16.gmra.mxu1 %v4892_v22  ;;  %v4932_v22 = vor.u32 %v5397_v29, %v4929_v32 }
 0x2d3   : > { %3153 = vmatmul.bf16.gmra.mxu2 %v4896_v16 }
 0x2d5   : > { %3242 = vmatmul.bf16.gmra.mxu3 %v4900_v25  ;;  %v2022_v34 = vpop.f32.mrf.mxu0 }
 0x2d6   : > { %v2198_v19 = vpop.f32.mrf.mxu2  ;;  %v2023_v13 = vadd.f32 %v2022_v34, %v7059_v63 }
 0x2d7   : > { %v2199_v33 = vadd.f32 %v2198_v19, %v2110_v57  ;;  %v2111_v17 = vpop.f32.mrf.mxu1 }
 0x2d8   : > { %v2287_v40 = vpop.f32.mrf.mxu3  ;;  %v2112_v49 = vadd.f32 %v2111_v17, %v2023_v13  ;;  %v5404_v13 = vld [vmem:[#allocation5 + $0x204] sm:$0xf] }
 0x2d9   : > { %v7151_v46 = vadd.f32 %v2287_v40, %v2199_v33  ;;  %v4951_v33 = vld [vmem:[#allocation5 + $0x200] sm:$0xf]  ;;  %v4953_v17 = vld [vmem:[#allocation5 + $0x220] sm:$0xf0] }
 0x2da   : > { %v5408_v40 = vld [vmem:[#allocation5 + $0x21c] sm:$0xf0] }
 0x2db   : > { %v4952_v42 = vor.u32 %v5408_v40, %v4951_v33  ;;  %v5417_v33 = vld [vmem:[#allocation5 + $0x264] sm:$0xf0] }
 0x2dd   : > { %v2025_v48 = vpop.f32.mrf.mxu0 }
 0x2de   : > { %v2200_v39 = vpop.f32.mrf.mxu2  ;;  %v2026_v63 = vadd.f32 %v2025_v48, %v7061_v2 }
 0x2df   : > { %v2201_v6 = vadd.f32 %v2200_v39, %v2112_v49  ;;  %v2114_v18 = vpop.f32.mrf.mxu1  ;;  %v4959_v49 = vld [vmem:[#allocation5 + $0x208] sm:$0xf] }
 0x2e0   : > { %v2289_v8 = vpop.f32.mrf.mxu3  ;;  %v2115_v0 = vadd.f32 %v2114_v18, %v2026_v63  ;;  %2980 = vmatmul.bf16.gmra.mxu0 %v4920_v15  ;;  %v4956_v15 = vor.u32 %v5404_v13, %v4953_v17  ;;  %v4960_v48 = vor.u32 %v5409_v56, %v4959_v49  ;;  %v5413_v13 = vld [vmem:[#allocation5 + $0x24c] sm:$0xf] }
 0x2e1   : > { %v7154_v27 = vadd.f32 %v2289_v8, %v2201_v6  ;;  %v4993_v17 = vld [vmem:[#allocation5 + $0x268] sm:$0xf0] }
 0x2e2   : > { %3069 = vmatmul.bf16.gmra.mxu1 %v4924_v7  ;;  %v4964_v7 = vor.u32 %v5405_v58, %v4961_v26 }
 0x2e3   : > { %3158 = vmatmul.bf16.gmra.mxu2 %v4928_v55 }
 0x2e5   : > { %3247 = vmatmul.bf16.gmra.mxu3 %v4932_v22  ;;  %v2027_v20 = vpop.f32.mrf.mxu0 }
 0x2e6   : > { %v2203_v30 = vpop.f32.mrf.mxu2  ;;  %v2028_v57 = vadd.f32 %v2027_v20, %v7064_v41 }
 0x2e7   : > { %v2204_v16 = vadd.f32 %v2203_v30, %v2115_v0  ;;  %v2116_v19 = vpop.f32.mrf.mxu1 }
 0x2e8   : > { %v2292_v25 = vpop.f32.mrf.mxu3  ;;  %v2117_v2 = vadd.f32 %v2116_v19, %v2028_v57  ;;  %v5412_v57 = vld [vmem:[#allocation5 + $0x244] sm:$0xf] }
 0x2e9   : > { %v7157_v34 = vadd.f32 %v2292_v25, %v2204_v16  ;;  %v4983_v16 = vld [vmem:[#allocation5 + $0x240] sm:$0xf]  ;;  %v4985_v19 = vld [vmem:[#allocation5 + $0x260] sm:$0xf0] }
 0x2ea   : > { %v5416_v25 = vld [vmem:[#allocation5 + $0x25c] sm:$0xf0] }
 0x2eb   : > { %v4984_v40 = vor.u32 %v5416_v25, %v4983_v16  ;;  %v5425_v16 = vld [vmem:[#allocation5 + $0x2a4] sm:$0xf0] }
 0x2ed   : > { %v2946_v51 = vpop.f32.mrf.mxu0 }
 0x2ee   : > { %v2205_v36 = vpop.f32.mrf.mxu2  ;;  %v2947_v41 = vadd.f32 %v2946_v51, %v7067_v45 }
 0x2ef   : > { %v2206_v29 = vadd.f32 %v2205_v36, %v2117_v2  ;;  %v3035_v39 = vpop.f32.mrf.mxu1  ;;  %v4991_v2 = vld [vmem:[#allocation5 + $0x248] sm:$0xf] }
 0x2f0   : > { %v2294_v32 = vpop.f32.mrf.mxu3  ;;  %v3036_v8 = vadd.f32 %v3035_v39, %v2947_v41  ;;  %2985 = vmatmul.bf16.gmra.mxu0 %v4952_v42  ;;  %v4988_v42 = vor.u32 %v5412_v57, %v4985_v19  ;;  %v4992_v51 = vor.u32 %v5417_v33, %v4991_v2  ;;  %v5421_v57 = vld [vmem:[#allocation5 + $0x28c] sm:$0xf] }
 0x2f1   : > { %v7160_v6 = vadd.f32 %v2294_v32, %v2206_v29  ;;  %v5025_v19 = vld [vmem:[#allocation5 + $0x2a8] sm:$0xf0] }
 0x2f2   : > { %3074 = vmatmul.bf16.gmra.mxu1 %v4956_v15  ;;  %v4996_v15 = vor.u32 %v5413_v13, %v4993_v17 }
 0x2f3   : > { %3163 = vmatmul.bf16.gmra.mxu2 %v4960_v48 }
 0x2f5   : > { %3252 = vmatmul.bf16.gmra.mxu3 %v4964_v7  ;;  %v2948_v18 = vpop.f32.mrf.mxu0 }
 0x2f6   : > { %v3124_v63 = vpop.f32.mrf.mxu2  ;;  %v2949_v0 = vadd.f32 %v2948_v18, %v7070_v44 }
 0x2f7   : > { %v3125_v55 = vadd.f32 %v3124_v63, %v3036_v8  ;;  %v3037_v30 = vpop.f32.mrf.mxu1 }
 0x2f8   : > { %v3213_v22 = vpop.f32.mrf.mxu3  ;;  %v3038_v45 = vadd.f32 %v3037_v30, %v2949_v0  ;;  %v5420_v0 = vld [vmem:[#allocation5 + $0x284] sm:$0xf] }
 0x2f9   : > { %v7163_v20 = vadd.f32 %v3213_v22, %v3125_v55  ;;  %v5015_v55 = vld [vmem:[#allocation5 + $0x280] sm:$0xf]  ;;  %v5017_v30 = vld [vmem:[#allocation5 + $0x2a0] sm:$0xf0] }
 0x2fa   : > { %v5424_v22 = vld [vmem:[#allocation5 + $0x29c] sm:$0xf0] }
 0x2fb   : > { %v5016_v25 = vor.u32 %v5424_v22, %v5015_v55  ;;  %v5433_v55 = vld [vmem:[#allocation5 + $0x2e4] sm:$0xf0] }
 0x2fd   : > { %v2951_v56 = vpop.f32.mrf.mxu0 }
 0x2fe   : > { %v3126_v49 = vpop.f32.mrf.mxu2  ;;  %v2952_v44 = vadd.f32 %v2951_v56, %v7073_v24 }
 0x2ff   : > { %v3127_v58 = vadd.f32 %v3126_v49, %v3038_v45  ;;  %v3040_v36 = vpop.f32.mrf.mxu1  ;;  %v5023_v45 = vld [vmem:[#allocation5 + $0x288] sm:$0xf] }
 0x300   : > { %v3215_v26 = vpop.f32.mrf.mxu3  ;;  %v3041_v32 = vadd.f32 %v3040_v36, %v2952_v44  ;;  %2990 = vmatmul.bf16.gmra.mxu0 %v4984_v40  ;;  %v5020_v40 = vor.u32 %v5420_v0, %v5017_v30  ;;  %v5024_v56 = vor.u32 %v5425_v16, %v5023_v45  ;;  %v5429_v0 = vld [vmem:[#allocation5 + $0x2cc] sm:$0xf] }
 0x301   : > { %v7166_v29 = vadd.f32 %v3215_v26, %v3127_v58  ;;  %v5057_v30 = vld [vmem:[#allocation5 + $0x2e8] sm:$0xf0] }
 0x302   : > { %3079 = vmatmul.bf16.gmra.mxu1 %v4988_v42  ;;  %v5028_v42 = vor.u32 %v5421_v57, %v5025_v19 }
 0x303   : > { %3168 = vmatmul.bf16.gmra.mxu2 %v4992_v51 }
 0x305   : > { %3257 = vmatmul.bf16.gmra.mxu3 %v4996_v15  ;;  %v2953_v39 = vpop.f32.mrf.mxu0 }
 0x306   : > { %v3129_v41 = vpop.f32.mrf.mxu2  ;;  %v2954_v8 = vadd.f32 %v2953_v39, %v7076_v38 }
 0x307   : > { %v3130_v48 = vadd.f32 %v3129_v41, %v3041_v32  ;;  %v3042_v63 = vpop.f32.mrf.mxu1 }
 0x308   : > { %v3218_v7 = vpop.f32.mrf.mxu3  ;;  %v3043_v24 = vadd.f32 %v3042_v63, %v2954_v8  ;;  %v5428_v8 = vld [vmem:[#allocation5 + $0x2c4] sm:$0xf] }
 0x309   : > { %v7169_v18 = vadd.f32 %v3218_v7, %v3130_v48  ;;  %v5047_v48 = vld [vmem:[#allocation5 + $0x2c0] sm:$0xf]  ;;  %v5049_v63 = vld [vmem:[#allocation5 + $0x2e0] sm:$0xf0] }
 0x30a   : > { %v5432_v7 = vld [vmem:[#allocation5 + $0x2dc] sm:$0xf0] }
 0x30b   : > { %v5048_v22 = vor.u32 %v5432_v7, %v5047_v48  ;;  %v5441_v48 = vld [vmem:[#allocation5 + $0x324] sm:$0xf0] }
 0x30d   : > { %v2956_v33 = vpop.f32.mrf.mxu0 }
 0x30e   : > { %v3131_v2 = vpop.f32.mrf.mxu2  ;;  %v2957_v38 = vadd.f32 %v2956_v33, %v7079_v43 }
 0x30f   : > { %v3132_v13 = vadd.f32 %v3131_v2, %v3043_v24  ;;  %v3045_v49 = vpop.f32.mrf.mxu1  ;;  %v5055_v24 = vld [vmem:[#allocation5 + $0x2c8] sm:$0xf] }
 0x310   : > { %v3220_v17 = vpop.f32.mrf.mxu3  ;;  %v3046_v26 = vadd.f32 %v3045_v49, %v2957_v38  ;;  %2995 = vmatmul.bf16.gmra.mxu0 %v5016_v25  ;;  %v5052_v25 = vor.u32 %v5428_v8, %v5049_v63  ;;  %v5056_v33 = vor.u32 %v5433_v55, %v5055_v24  ;;  %v5437_v8 = vld [vmem:[#allocation5 + $0x30c] sm:$0xf] }
 0x311   : > { %v7172_v58 = vadd.f32 %v3220_v17, %v3132_v13  ;;  %v5089_v63 = vld [vmem:[#allocation5 + $0x328] sm:$0xf0] }
 0x312   : > { %3084 = vmatmul.bf16.gmra.mxu1 %v5020_v40  ;;  %v5060_v40 = vor.u32 %v5429_v0, %v5057_v30 }
 0x313   : > { %3173 = vmatmul.bf16.gmra.mxu2 %v5024_v56 }
 0x315   : > { %3262 = vmatmul.bf16.gmra.mxu3 %v5028_v42  ;;  %v2958_v36 = vpop.f32.mrf.mxu0 }
 0x316   : > { %v3134_v44 = vpop.f32.mrf.mxu2  ;;  %v2959_v32 = vadd.f32 %v2958_v36, %v7082_v5 }
 0x317   : > { %v3135_v51 = vadd.f32 %v3134_v44, %v3046_v26  ;;  %v3047_v41 = vpop.f32.mrf.mxu1 }
 0x318   : > { %v3223_v15 = vpop.f32.mrf.mxu3  ;;  %v3048_v43 = vadd.f32 %v3047_v41, %v2959_v32  ;;  %v5436_v32 = vld [vmem:[#allocation5 + $0x304] sm:$0xf] }
 0x319   : > { %v7175_v39 = vadd.f32 %v3223_v15, %v3135_v51  ;;  %v5079_v51 = vld [vmem:[#allocation5 + $0x300] sm:$0xf]  ;;  %v5081_v41 = vld [vmem:[#allocation5 + $0x320] sm:$0xf0] }
 0x31a   : > { %v5440_v15 = vld [vmem:[#allocation5 + $0x31c] sm:$0xf0] }
 0x31b   : > { %v5080_v7 = vor.u32 %v5440_v15, %v5079_v51  ;;  %v5449_v51 = vld [vmem:[#allocation5 + $0x364] sm:$0xf0] }
 0x31d   : > { %v2961_v16 = vpop.f32.mrf.mxu0 }
 0x31e   : > { %v3136_v45 = vpop.f32.mrf.mxu2  ;;  %v2962_v5 = vadd.f32 %v2961_v16, %v7085_v23 }
 0x31f   : > { %v3137_v57 = vadd.f32 %v3136_v45, %v3048_v43  ;;  %v3050_v2 = vpop.f32.mrf.mxu1  ;;  %v5087_v43 = vld [vmem:[#allocation5 + $0x308] sm:$0xf] }
 0x320   : > { %v3225_v19 = vpop.f32.mrf.mxu3  ;;  %v3051_v17 = vadd.f32 %v3050_v2, %v2962_v5  ;;  %3000 = vmatmul.bf16.gmra.mxu0 %v5048_v22  ;;  %v5084_v22 = vor.u32 %v5436_v32, %v5081_v41  ;;  %v5088_v16 = vor.u32 %v5441_v48, %v5087_v43  ;;  %v5445_v32 = vld [vmem:[#allocation5 + $0x34c] sm:$0xf] }
 0x321   : > { %v7178_v13 = vadd.f32 %v3225_v19, %v3137_v57  ;;  %v5121_v41 = vld [vmem:[#allocation5 + $0x368] sm:$0xf0] }
 0x322   : > { %3089 = vmatmul.bf16.gmra.mxu1 %v5052_v25  ;;  %v5092_v25 = vor.u32 %v5437_v8, %v5089_v63 }
 0x323   : > { %3178 = vmatmul.bf16.gmra.mxu2 %v5056_v33 }
 0x325   : > { %3267 = vmatmul.bf16.gmra.mxu3 %v5060_v40  ;;  %v2963_v49 = vpop.f32.mrf.mxu0 }
 0x326   : > { %v3139_v38 = vpop.f32.mrf.mxu2  ;;  %v2964_v26 = vadd.f32 %v2963_v49, %v7088_v14 }
 0x327   : > { %v3140_v56 = vadd.f32 %v3139_v38, %v3051_v17  ;;  %v3052_v44 = vpop.f32.mrf.mxu1 }
 0x328   : > { %v3228_v42 = vpop.f32.mrf.mxu3  ;;  %v3053_v23 = vadd.f32 %v3052_v44, %v2964_v26  ;;  %v5444_v26 = vld [vmem:[#allocation5 + $0x344] sm:$0xf] }
 0x329   : > { %v7181_v36 = vadd.f32 %v3228_v42, %v3140_v56  ;;  %v5111_v56 = vld [vmem:[#allocation5 + $0x340] sm:$0xf]  ;;  %v5113_v44 = vld [vmem:[#allocation5 + $0x360] sm:$0xf0] }
 0x32a   : > { %v5448_v42 = vld [vmem:[#allocation5 + $0x35c] sm:$0xf0] }
 0x32b   : > { %v5112_v15 = vor.u32 %v5448_v42, %v5111_v56  ;;  %v5457_v56 = vld [vmem:[#allocation5 + $0x3a4] sm:$0xf0] }
 0x32d   : > { %v2966_v55 = vpop.f32.mrf.mxu0 }
 0x32e   : > { %v3141_v24 = vpop.f32.mrf.mxu2  ;;  %v2967_v14 = vadd.f32 %v2966_v55, %v7091_v10 }
 0x32f   : > { %v3142_v0 = vadd.f32 %v3141_v24, %v3053_v23  ;;  %v3055_v45 = vpop.f32.mrf.mxu1  ;;  %v5119_v23 = vld [vmem:[#allocation5 + $0x348] sm:$0xf] }
 0x330   : > { %v3230_v30 = vpop.f32.mrf.mxu3  ;;  %v3056_v19 = vadd.f32 %v3055_v45, %v2967_v14  ;;  %3005 = vmatmul.bf16.gmra.mxu0 %v5080_v7  ;;  %v5116_v7 = vor.u32 %v5444_v26, %v5113_v44  ;;  %v5120_v55 = vor.u32 %v5449_v51, %v5119_v23  ;;  %v5453_v26 = vld [vmem:[#allocation5 + $0x38c] sm:$0xf] }
 0x331   : > { %v7184_v57 = vadd.f32 %v3230_v30, %v3142_v0  ;;  %v5153_v44 = vld [vmem:[#allocation5 + $0x3a8] sm:$0xf0] }
 0x332   : > { %3094 = vmatmul.bf16.gmra.mxu1 %v5084_v22  ;;  %v5124_v22 = vor.u32 %v5445_v32, %v5121_v41 }
 0x333   : > { %3183 = vmatmul.bf16.gmra.mxu2 %v5088_v16 }
 0x335   : > { %3272 = vmatmul.bf16.gmra.mxu3 %v5092_v25  ;;  %v2968_v2 = vpop.f32.mrf.mxu0 }
 0x336   : > { %v3144_v5 = vpop.f32.mrf.mxu2  ;;  %v2969_v17 = vadd.f32 %v2968_v2, %v7094_v37 }
 0x337   : > { %v3145_v33 = vadd.f32 %v3144_v5, %v3056_v19  ;;  %v3057_v38 = vpop.f32.mrf.mxu1 }
 0x338   : > { %v3233_v40 = vpop.f32.mrf.mxu3  ;;  %v3058_v10 = vadd.f32 %v3057_v38, %v2969_v17  ;;  %v5452_v17 = vld [vmem:[#allocation5 + $0x384] sm:$0xf] }
 0x339   : > { %v7187_v49 = vadd.f32 %v3233_v40, %v3145_v33  ;;  %v5143_v33 = vld [vmem:[#allocation5 + $0x380] sm:$0xf]  ;;  %v5145_v38 = vld [vmem:[#allocation5 + $0x3a0] sm:$0xf0] }
 0x33a   : > { %v5456_v40 = vld [vmem:[#allocation5 + $0x39c] sm:$0xf0] }
 0x33b   : > { %v5144_v42 = vor.u32 %v5456_v40, %v5143_v33  ;;  %v5465_v33 = vld [vmem:[#allocation5 + $0x3e4] sm:$0xf0] }
 0x33d   : > { %v2971_v48 = vpop.f32.mrf.mxu0 }
 0x33e   : > { %v3146_v43 = vpop.f32.mrf.mxu2  ;;  %v2972_v37 = vadd.f32 %v2971_v48, %v7097_v61 }
 0x33f   : > { %v3147_v8 = vadd.f32 %v3146_v43, %v3058_v10  ;;  %v3060_v24 = vpop.f32.mrf.mxu1  ;;  %v5151_v10 = vld [vmem:[#allocation5 + $0x388] sm:$0xf] }
 0x340   : > { %v3235_v63 = vpop.f32.mrf.mxu3  ;;  %v3061_v30 = vadd.f32 %v3060_v24, %v2972_v37  ;;  %3010 = vmatmul.bf16.gmra.mxu0 %v5112_v15  ;;  %v5148_v15 = vor.u32 %v5452_v17, %v5145_v38  ;;  %v5152_v48 = vor.u32 %v5457_v56, %v5151_v10  ;;  %v5461_v17 = vld [vmem:[#allocation5 + $0x3cc] sm:$0xf] }
 0x341   : > { %v7190_v0 = vadd.f32 %v3235_v63, %v3147_v8  ;;  %v5185_v38 = vld [vmem:[#allocation5 + $0x3e8] sm:$0xf0] }
 0x342   : > { %3099 = vmatmul.bf16.gmra.mxu1 %v5116_v7  ;;  %v5156_v7 = vor.u32 %v5453_v26, %v5153_v44 }
 0x343   : > { %3188 = vmatmul.bf16.gmra.mxu2 %v5120_v55 }
 0x345   : > { %3277 = vmatmul.bf16.gmra.mxu3 %v5124_v22  ;;  %v2973_v45 = vpop.f32.mrf.mxu0 }
 0x346   : > { %v3149_v14 = vpop.f32.mrf.mxu2  ;;  %v2974_v19 = vadd.f32 %v2973_v45, %v7100_v52 }
 0x347   : > { %v3150_v16 = vadd.f32 %v3149_v14, %v3061_v30  ;;  %v3062_v5 = vpop.f32.mrf.mxu1 }
 0x348   : > { %v3238_v25 = vpop.f32.mrf.mxu3  ;;  %v3063_v61 = vadd.f32 %v3062_v5, %v2974_v19  ;;  %v5460_v19 = vld [vmem:[#allocation5 + $0x3c4] sm:$0xf] }
 0x349   : > { %v7193_v2 = vadd.f32 %v3238_v25, %v3150_v16  ;;  %v5175_v16 = vld [vmem:[#allocation5 + $0x3c0] sm:$0xf]  ;;  %v5177_v5 = vld [vmem:[#allocation5 + $0x3e0] sm:$0xf0] }
 0x34a   : > { %v5464_v25 = vld [vmem:[#allocation5 + $0x3dc] sm:$0xf0] }
 0x34b   : > { %v5176_v40 = vor.u32 %v5464_v25, %v5175_v16  ;;  %v5347_v16 = vld [vmem:[#allocation5 + $0x34] sm:$0xf0] }
 0x34d   : > { %v2976_v51 = vpop.f32.mrf.mxu0 }
 0x34e   : > { %v3151_v23 = vpop.f32.mrf.mxu2  ;;  %v2977_v52 = vadd.f32 %v2976_v51, %v7103_v28 }
 0x34f   : > { %v3152_v32 = vadd.f32 %v3151_v23, %v3063_v61  ;;  %v3065_v43 = vpop.f32.mrf.mxu1  ;;  %v5183_v61 = vld [vmem:[#allocation5 + $0x3c8] sm:$0xf] }
 0x350   : > { %v3240_v41 = vpop.f32.mrf.mxu3  ;;  %v3066_v63 = vadd.f32 %v3065_v43, %v2977_v52  ;;  %3015 = vmatmul.bf16.gmra.mxu0 %v5144_v42  ;;  %v5180_v42 = vor.u32 %v5460_v19, %v5177_v5  ;;  %v5184_v51 = vor.u32 %v5465_v33, %v5183_v61  ;;  %v5343_v19 = vld [vmem:[#allocation5 + $0x1c] sm:$0xf] }
 0x351   : > { %v7196_v8 = vadd.f32 %v3240_v41, %v3152_v32  ;;  %v4721_v5 = vld [vmem:[#allocation5 + $0x38] sm:$0xf0] }
 0x352   : > { %3104 = vmatmul.bf16.gmra.mxu1 %v5148_v15  ;;  %v5188_v15 = vor.u32 %v5461_v17, %v5185_v38 }
 0x353   : > { %3193 = vmatmul.bf16.gmra.mxu2 %v5152_v48 }
 0x355   : > { %3282 = vmatmul.bf16.gmra.mxu3 %v5156_v7  ;;  %v2978_v24 = vpop.f32.mrf.mxu0 }
 0x356   : > { %v3154_v37 = vpop.f32.mrf.mxu2  ;;  %v2979_v30 = vadd.f32 %v2978_v24, %v7106_v9 }
 0x357   : > { %v3155_v55 = vadd.f32 %v3154_v37, %v3066_v63  ;;  %v3067_v14 = vpop.f32.mrf.mxu1 }
 0x358   : > { %v3243_v22 = vpop.f32.mrf.mxu3  ;;  %v3068_v28 = vadd.f32 %v3067_v14, %v2979_v30  ;;  %v5342_v30 = vld [vmem:[#allocation5 + $0x14] sm:$0xf] }
 0x359   : > { %v7199_v45 = vadd.f32 %v3243_v22, %v3155_v55  ;;  %v4711_v55 = vld [vmem:[#allocation5 + $0x10] sm:$0xf]  ;;  %v4713_v14 = vld [vmem:[#allocation5 + $0x30] sm:$0xf0] }
 0x35a   : > { %v5346_v22 = vld [vmem:[#allocation5 + $0x2c] sm:$0xf0] }
 0x35b   : > { %v4712_v25 = vor.u32 %v5346_v22, %v4711_v55  ;;  %v5355_v55 = vld [vmem:[#allocation5 + $0x74] sm:$0xf0] }
 0x35d   : > { %v2981_v56 = vpop.f32.mrf.mxu0 }
 0x35e   : > { %v3156_v10 = vpop.f32.mrf.mxu2  ;;  %v2982_v9 = vadd.f32 %v2981_v56, %v7109_v50 }
 0x35f   : > { %v3157_v26 = vadd.f32 %v3156_v10, %v3068_v28  ;;  %v3070_v23 = vpop.f32.mrf.mxu1  ;;  %v4719_v28 = vld [vmem:[#allocation5 + $0x18] sm:$0xf] }
 0x360   : > { %v3245_v44 = vpop.f32.mrf.mxu3  ;;  %v3071_v41 = vadd.f32 %v3070_v23, %v2982_v9  ;;  %3020 = vmatmul.bf16.gmra.mxu0 %v5176_v40  ;;  %v4716_v40 = vor.u32 %v5342_v30, %v4713_v14  ;;  %v4720_v56 = vor.u32 %v5347_v16, %v4719_v28  ;;  %v5351_v30 = vld [vmem:[#allocation5 + $0x5c] sm:$0xf] }
 0x361   : > { %v7202_v32 = vadd.f32 %v3245_v44, %v3157_v26  ;;  %v4753_v14 = vld [vmem:[#allocation5 + $0x78] sm:$0xf0] }
 0x362   : > { %3109 = vmatmul.bf16.gmra.mxu1 %v5180_v42  ;;  %v4724_v42 = vor.u32 %v5343_v19, %v4721_v5 }
 0x363   : > { %3198 = vmatmul.bf16.gmra.mxu2 %v5184_v51 }
 0x365   : > { %3287 = vmatmul.bf16.gmra.mxu3 %v5188_v15  ;;  %v2983_v43 = vpop.f32.mrf.mxu0 }
 0x366   : > { %v3159_v52 = vpop.f32.mrf.mxu2  ;;  %v2984_v63 = vadd.f32 %v2983_v43, %v7112_v35 }
 0x367   : > { %v3160_v48 = vadd.f32 %v3159_v52, %v3071_v41  ;;  %v3072_v37 = vpop.f32.mrf.mxu1 }
 0x368   : > { %v3248_v7 = vpop.f32.mrf.mxu3  ;;  %v3073_v50 = vadd.f32 %v3072_v37, %v2984_v63  ;;  %v5350_v63 = vld [vmem:[#allocation5 + $0x54] sm:$0xf] }
 0x369   : > { %v7205_v24 = vadd.f32 %v3248_v7, %v3160_v48  ;;  %v4743_v48 = vld [vmem:[#allocation5 + $0x50] sm:$0xf]  ;;  %v4745_v37 = vld [vmem:[#allocation5 + $0x70] sm:$0xf0] }
 0x36a   : > { %v5354_v7 = vld [vmem:[#allocation5 + $0x6c] sm:$0xf0] }
 0x36b   : > { %v4744_v22 = vor.u32 %v5354_v7, %v4743_v48  ;;  %v5363_v48 = vld [vmem:[#allocation5 + $0xb4] sm:$0xf0] }
 0x36d   : > { %v2986_v33 = vpop.f32.mrf.mxu0 }
 0x36e   : > { %v3161_v61 = vpop.f32.mrf.mxu2  ;;  %v2987_v35 = vadd.f32 %v2986_v33, %v7115_v47 }
 0x36f   : > { %v3162_v17 = vadd.f32 %v3161_v61, %v3073_v50  ;;  %v3075_v10 = vpop.f32.mrf.mxu1  ;;  %v4751_v50 = vld [vmem:[#allocation5 + $0x58] sm:$0xf] }
 0x370   : > { %v3250_v38 = vpop.f32.mrf.mxu3  ;;  %v3076_v44 = vadd.f32 %v3075_v10, %v2987_v35  ;;  %3301 = vmatmul.bf16.vlgmr.msrb.gmra.mxu0 %v4712_v25  ;;  %v4748_v25 = vor.u32 %v5350_v63, %v4745_v37  ;;  %v4752_v33 = vor.u32 %v5355_v55, %v4751_v50  ;;  %v5359_v63 = vld [vmem:[#allocation5 + $0x9c] sm:$0xf] }
 0x371   : > { %v7208_v26 = vadd.f32 %v3250_v38, %v3162_v17  ;;  %v4785_v37 = vld [vmem:[#allocation5 + $0xb8] sm:$0xf0] }
 0x372   : > { %3390 = vmatmul.bf16.vlgmr.msrb.gmra.mxu1 %v4716_v40  ;;  %v4756_v40 = vor.u32 %v5351_v30, %v4753_v14 }
 0x373   : > { %3479 = vmatmul.bf16.vlgmr.msrb.gmra.mxu2 %v4720_v56 }
 0x375   : > { %3568 = vmatmul.bf16.vlgmr.msrb.gmra.mxu3 %v4724_v42  ;;  %v2988_v23 = vpop.f32.mrf.mxu0 }
 0x376   : > { %v3164_v9 = vpop.f32.mrf.mxu2  ;;  %v2989_v41 = vadd.f32 %v2988_v23, %v7118_v59 }
 0x377   : > { %v3165_v51 = vadd.f32 %v3164_v9, %v3076_v44  ;;  %v3077_v52 = vpop.f32.mrf.mxu1 }
 0x378   : > { %v3253_v15 = vpop.f32.mrf.mxu3  ;;  %v3078_v47 = vadd.f32 %v3077_v52, %v2989_v41  ;;  %v5358_v41 = vld [vmem:[#allocation5 + $0x94] sm:$0xf] }
 0x379   : > { %v7211_v43 = vadd.f32 %v3253_v15, %v3165_v51  ;;  %v4775_v51 = vld [vmem:[#allocation5 + $0x90] sm:$0xf]  ;;  %v4777_v52 = vld [vmem:[#allocation5 + $0xb0] sm:$0xf0] }
 0x37a   : > { %v5362_v15 = vld [vmem:[#allocation5 + $0xac] sm:$0xf0] }
 0x37b   : > { %v4776_v7 = vor.u32 %v5362_v15, %v4775_v51  ;;  %v5371_v51 = vld [vmem:[#allocation5 + $0xf4] sm:$0xf0] }
 0x37d   : > { %v2991_v16 = vpop.f32.mrf.mxu0 }
 0x37e   : > { %v3166_v28 = vpop.f32.mrf.mxu2  ;;  %v2992_v59 = vadd.f32 %v2991_v16, %v7121_v21 }
 0x37f   : > { %v3167_v19 = vadd.f32 %v3166_v28, %v3078_v47  ;;  %v3080_v61 = vpop.f32.mrf.mxu1  ;;  %v4783_v47 = vld [vmem:[#allocation5 + $0x98] sm:$0xf] }
 0x380   : > { %v3255_v5 = vpop.f32.mrf.mxu3  ;;  %v3081_v38 = vadd.f32 %v3080_v61, %v2992_v59  ;;  %3306 = vmatmul.bf16.gmra.mxu0 %v4744_v22  ;;  %v4780_v22 = vor.u32 %v5358_v41, %v4777_v52  ;;  %v4784_v16 = vor.u32 %v5363_v48, %v4783_v47  ;;  %v5367_v41 = vld [vmem:[#allocation5 + $0xdc] sm:$0xf] }
 0x381   : > { %v7214_v17 = vadd.f32 %v3255_v5, %v3167_v19  ;;  %v4817_v52 = vld [vmem:[#allocation5 + $0xf8] sm:$0xf0] }
 0x382   : > { %3395 = vmatmul.bf16.gmra.mxu1 %v4748_v25  ;;  %v4788_v25 = vor.u32 %v5359_v63, %v4785_v37 }
 0x383   : > { %3484 = vmatmul.bf16.gmra.mxu2 %v4752_v33 }
 0x385   : > { %3573 = vmatmul.bf16.gmra.mxu3 %v4756_v40  ;;  %v2993_v10 = vpop.f32.mrf.mxu0 }
 0x386   : > { %v3169_v35 = vpop.f32.mrf.mxu2  ;;  %v2994_v44 = vadd.f32 %v2993_v10, %v7124_v11 }
 0x387   : > { %v3170_v56 = vadd.f32 %v3169_v35, %v3081_v38  ;;  %v3082_v9 = vpop.f32.mrf.mxu1 }
 0x388   : > { %v3258_v42 = vpop.f32.mrf.mxu3  ;;  %v3083_v21 = vadd.f32 %v3082_v9, %v2994_v44  ;;  %v5366_v44 = vld [vmem:[#allocation5 + $0xd4] sm:$0xf] }
 0x389   : > { %v7217_v23 = vadd.f32 %v3258_v42, %v3170_v56  ;;  %v4807_v56 = vld [vmem:[#allocation5 + $0xd0] sm:$0xf]  ;;  %v4809_v9 = vld [vmem:[#allocation5 + $0xf0] sm:$0xf0] }
 0x38a   : > { %v5370_v42 = vld [vmem:[#allocation5 + $0xec] sm:$0xf0] }
 0x38b   : > { %v4808_v15 = vor.u32 %v5370_v42, %v4807_v56  ;;  %v5379_v56 = vld [vmem:[#allocation5 + $0x134] sm:$0xf0] }
 0x38d   : > { %v2996_v55 = vpop.f32.mrf.mxu0 }
 0x38e   : > { %v3171_v50 = vpop.f32.mrf.mxu2  ;;  %v2997_v11 = vadd.f32 %v2996_v55, %v7127_v62 }
 0x38f   : > { %v3172_v30 = vadd.f32 %v3171_v50, %v3083_v21  ;;  %v3085_v28 = vpop.f32.mrf.mxu1  ;;  %v4815_v21 = vld [vmem:[#allocation5 + $0xd8] sm:$0xf] }
 0x390   : > { %v3260_v14 = vpop.f32.mrf.mxu3  ;;  %v3086_v5 = vadd.f32 %v3085_v28, %v2997_v11  ;;  %3311 = vmatmul.bf16.gmra.mxu0 %v4776_v7  ;;  %v4812_v7 = vor.u32 %v5366_v44, %v4809_v9  ;;  %v4816_v55 = vor.u32 %v5371_v51, %v4815_v21  ;;  %v5375_v44 = vld [vmem:[#allocation5 + $0x11c] sm:$0xf] }
 0x391   : > { %v7220_v19 = vadd.f32 %v3260_v14, %v3172_v30  ;;  %v4849_v9 = vld [vmem:[#allocation5 + $0x138] sm:$0xf0] }
 0x392   : > { %3400 = vmatmul.bf16.gmra.mxu1 %v4780_v22  ;;  %v4820_v22 = vor.u32 %v5367_v41, %v4817_v52 }
 0x393   : > { %3489 = vmatmul.bf16.gmra.mxu2 %v4784_v16 }
 0x395   : > { %3578 = vmatmul.bf16.gmra.mxu3 %v4788_v25  ;;  %v2998_v61 = vpop.f32.mrf.mxu0 }
 0x396   : > { %v3174_v59 = vpop.f32.mrf.mxu2  ;;  %v2999_v38 = vadd.f32 %v2998_v61, %v7130_v54 }
 0x397   : > { %v3175_v33 = vadd.f32 %v3174_v59, %v3086_v5  ;;  %v3087_v35 = vpop.f32.mrf.mxu1 }
 0x398   : > { %v3263_v40 = vpop.f32.mrf.mxu3  ;;  %v3088_v62 = vadd.f32 %v3087_v35, %v2999_v38  ;;  %v5374_v38 = vld [vmem:[#allocation5 + $0x114] sm:$0xf] }
 0x399   : > { %v7223_v10 = vadd.f32 %v3263_v40, %v3175_v33  ;;  %v4839_v33 = vld [vmem:[#allocation5 + $0x110] sm:$0xf]  ;;  %v4841_v35 = vld [vmem:[#allocation5 + $0x130] sm:$0xf0] }
 0x39a   : > { %v5378_v40 = vld [vmem:[#allocation5 + $0x12c] sm:$0xf0] }
 0x39b   : > { %v4840_v42 = vor.u32 %v5378_v40, %v4839_v33  ;;  %v5387_v33 = vld [vmem:[#allocation5 + $0x174] sm:$0xf0] }
 0x39d   : > { %v3001_v48 = vpop.f32.mrf.mxu0 }
 0x39e   : > { %v3176_v47 = vpop.f32.mrf.mxu2  ;;  %v3002_v54 = vadd.f32 %v3001_v48, %v7133_v4 }
 0x39f   : > { %v3177_v63 = vadd.f32 %v3176_v47, %v3088_v62  ;;  %v3090_v50 = vpop.f32.mrf.mxu1  ;;  %v4847_v62 = vld [vmem:[#allocation5 + $0x118] sm:$0xf] }
 0x3a0   : > { %v3265_v37 = vpop.f32.mrf.mxu3  ;;  %v3091_v14 = vadd.f32 %v3090_v50, %v3002_v54  ;;  %3316 = vmatmul.bf16.gmra.mxu0 %v4808_v15  ;;  %v4844_v15 = vor.u32 %v5374_v38, %v4841_v35  ;;  %v4848_v48 = vor.u32 %v5379_v56, %v4847_v62  ;;  %v5383_v38 = vld [vmem:[#allocation5 + $0x15c] sm:$0xf] }
 0x3a1   : > { %v7226_v30 = vadd.f32 %v3265_v37, %v3177_v63  ;;  %v4881_v35 = vld [vmem:[#allocation5 + $0x178] sm:$0xf0] }
 0x3a2   : > { %3405 = vmatmul.bf16.gmra.mxu1 %v4812_v7  ;;  %v4852_v7 = vor.u32 %v5375_v44, %v4849_v9 }
 0x3a3   : > { %3494 = vmatmul.bf16.gmra.mxu2 %v4816_v55 }
 0x3a5   : > { %3583 = vmatmul.bf16.gmra.mxu3 %v4820_v22  ;;  %v3003_v28 = vpop.f32.mrf.mxu0 }
 0x3a6   : > { %v3179_v11 = vpop.f32.mrf.mxu2  ;;  %v3004_v5 = vadd.f32 %v3003_v28, %v7136_v1 }
 0x3a7   : > { %v3180_v16 = vadd.f32 %v3179_v11, %v3091_v14  ;;  %v3092_v59 = vpop.f32.mrf.mxu1 }
 0x3a8   : > { %v3268_v25 = vpop.f32.mrf.mxu3  ;;  %v3093_v4 = vadd.f32 %v3092_v59, %v3004_v5  ;;  %v5382_v5 = vld [vmem:[#allocation5 + $0x154] sm:$0xf] }
 0x3a9   : > { %v7229_v61 = vadd.f32 %v3268_v25, %v3180_v16  ;;  %v4871_v16 = vld [vmem:[#allocation5 + $0x150] sm:$0xf]  ;;  %v4873_v59 = vld [vmem:[#allocation5 + $0x170] sm:$0xf0] }
 0x3aa   : > { %v5386_v25 = vld [vmem:[#allocation5 + $0x16c] sm:$0xf0] }
 0x3ab   : > { %v4872_v40 = vor.u32 %v5386_v25, %v4871_v16  ;;  %v5395_v16 = vld [vmem:[#allocation5 + $0x1b4] sm:$0xf0] }
 0x3ad   : > { %v3006_v51 = vpop.f32.mrf.mxu0 }
 0x3ae   : > { %v3181_v21 = vpop.f32.mrf.mxu2  ;;  %v3007_v1 = vadd.f32 %v3006_v51, %v7139_v53 }
 0x3af   : > { %v3182_v41 = vadd.f32 %v3181_v21, %v3093_v4  ;;  %v3095_v47 = vpop.f32.mrf.mxu1  ;;  %v4879_v4 = vld [vmem:[#allocation5 + $0x158] sm:$0xf] }
 0x3b0   : > { %v3270_v52 = vpop.f32.mrf.mxu3  ;;  %v3096_v37 = vadd.f32 %v3095_v47, %v3007_v1  ;;  %3321 = vmatmul.bf16.gmra.mxu0 %v4840_v42  ;;  %v4876_v42 = vor.u32 %v5382_v5, %v4873_v59  ;;  %v4880_v51 = vor.u32 %v5387_v33, %v4879_v4  ;;  %v5391_v5 = vld [vmem:[#allocation5 + $0x19c] sm:$0xf] }
 0x3b1   : > { %v7232_v63 = vadd.f32 %v3270_v52, %v3182_v41  ;;  %v4913_v59 = vld [vmem:[#allocation5 + $0x1b8] sm:$0xf0] }
 0x3b2   : > { %3410 = vmatmul.bf16.gmra.mxu1 %v4844_v15  ;;  %v4884_v15 = vor.u32 %v5383_v38, %v4881_v35 }
 0x3b3   : > { %3499 = vmatmul.bf16.gmra.mxu2 %v4848_v48 }
 0x3b5   : > { %3588 = vmatmul.bf16.gmra.mxu3 %v4852_v7  ;;  %v3008_v50 = vpop.f32.mrf.mxu0 }
 0x3b6   : > { %v3184_v54 = vpop.f32.mrf.mxu2  ;;  %v3009_v14 = vadd.f32 %v3008_v50, %v7142_v31 }
 0x3b7   : > { %v3185_v55 = vadd.f32 %v3184_v54, %v3096_v37  ;;  %v3097_v11 = vpop.f32.mrf.mxu1 }
 0x3b8   : > { %v3273_v22 = vpop.f32.mrf.mxu3  ;;  %v3098_v53 = vadd.f32 %v3097_v11, %v3009_v14  ;;  %v5390_v14 = vld [vmem:[#allocation5 + $0x194] sm:$0xf] }
 0x3b9   : > { %v7235_v28 = vadd.f32 %v3273_v22, %v3185_v55  ;;  %v4903_v55 = vld [vmem:[#allocation5 + $0x190] sm:$0xf]  ;;  %v4905_v11 = vld [vmem:[#allocation5 + $0x1b0] sm:$0xf0] }
 0x3ba   : > { %v5394_v22 = vld [vmem:[#allocation5 + $0x1ac] sm:$0xf0] }
 0x3bb   : > { %v4904_v25 = vor.u32 %v5394_v22, %v4903_v55  ;;  %v5403_v55 = vld [vmem:[#allocation5 + $0x1f4] sm:$0xf0] }
 0x3bd   : > { %v3011_v56 = vpop.f32.mrf.mxu0 }
 0x3be   : > { %v3186_v62 = vpop.f32.mrf.mxu2  ;;  %v3012_v31 = vadd.f32 %v3011_v56, %v7145_v60 }
 0x3bf   : > { %v3187_v44 = vadd.f32 %v3186_v62, %v3098_v53  ;;  %v3100_v21 = vpop.f32.mrf.mxu1  ;;  %v4911_v53 = vld [vmem:[#allocation5 + $0x198] sm:$0xf] }
 0x3c0   : > { %v3275_v9 = vpop.f32.mrf.mxu3  ;;  %v3101_v52 = vadd.f32 %v3100_v21, %v3012_v31  ;;  %3326 = vmatmul.bf16.gmra.mxu0 %v4872_v40  ;;  %v4908_v40 = vor.u32 %v5390_v14, %v4905_v11  ;;  %v4912_v56 = vor.u32 %v5395_v16, %v4911_v53  ;;  %v5399_v14 = vld [vmem:[#allocation5 + $0x1dc] sm:$0xf] }
 0x3c1   : > { %v7238_v41 = vadd.f32 %v3275_v9, %v3187_v44  ;;  %v4945_v11 = vld [vmem:[#allocation5 + $0x1f8] sm:$0xf0] }
 0x3c2   : > { %3415 = vmatmul.bf16.gmra.mxu1 %v4876_v42  ;;  %v4916_v42 = vor.u32 %v5391_v5, %v4913_v59 }
 0x3c3   : > { %3504 = vmatmul.bf16.gmra.mxu2 %v4880_v51 }
 0x3c5   : > { %3593 = vmatmul.bf16.gmra.mxu3 %v4884_v15  ;;  %v3013_v47 = vpop.f32.mrf.mxu0 }
 0x3c6   : > { %v3189_v1 = vpop.f32.mrf.mxu2  ;;  %v3014_v37 = vadd.f32 %v3013_v47, %v7148_v3 }
 0x3c7   : > { %v3190_v48 = vadd.f32 %v3189_v1, %v3101_v52  ;;  %v3102_v54 = vpop.f32.mrf.mxu1 }
 0x3c8   : > { %v3278_v7 = vpop.f32.mrf.mxu3  ;;  %v3103_v60 = vadd.f32 %v3102_v54, %v3014_v37  ;;  %v5398_v37 = vld [vmem:[#allocation5 + $0x1d4] sm:$0xf] }
 0x3c9   : > { %v7241_v50 = vadd.f32 %v3278_v7, %v3190_v48  ;;  %v4935_v48 = vld [vmem:[#allocation5 + $0x1d0] sm:$0xf]  ;;  %v4937_v54 = vld [vmem:[#allocation5 + $0x1f0] sm:$0xf0] }
 0x3ca   : > { %v5402_v7 = vld [vmem:[#allocation5 + $0x1ec] sm:$0xf0] }
 0x3cb   : > { %v4936_v22 = vor.u32 %v5402_v7, %v4935_v48  ;;  %v5411_v48 = vld [vmem:[#allocation5 + $0x234] sm:$0xf0] }
 0x3cd   : > { %v3016_v33 = vpop.f32.mrf.mxu0 }
 0x3ce   : > { %v3191_v4 = vpop.f32.mrf.mxu2  ;;  %v3017_v3 = vadd.f32 %v3016_v33, %v7151_v46 }
 0x3cf   : > { %v3192_v38 = vadd.f32 %v3191_v4, %v3103_v60  ;;  %v3105_v62 = vpop.f32.mrf.mxu1  ;;  %v4943_v60 = vld [vmem:[#allocation5 + $0x1d8] sm:$0xf] }
 0x3d0   : > { %v3280_v35 = vpop.f32.mrf.mxu3  ;;  %v3106_v9 = vadd.f32 %v3105_v62, %v3017_v3  ;;  %3331 = vmatmul.bf16.gmra.mxu0 %v4904_v25  ;;  %v4940_v25 = vor.u32 %v5398_v37, %v4937_v54  ;;  %v4944_v33 = vor.u32 %v5403_v55, %v4943_v60  ;;  %v5407_v37 = vld [vmem:[#allocation5 + $0x21c] sm:$0xf] }
 0x3d1   : > { %v7244_v44 = vadd.f32 %v3280_v35, %v3192_v38  ;;  %v4977_v54 = vld [vmem:[#allocation5 + $0x238] sm:$0xf0] }
 0x3d2   : > { %3420 = vmatmul.bf16.gmra.mxu1 %v4908_v40  ;;  %v4948_v40 = vor.u32 %v5399_v14, %v4945_v11 }
 0x3d3   : > { %3509 = vmatmul.bf16.gmra.mxu2 %v4912_v56 }
 0x3d5   : > { %3598 = vmatmul.bf16.gmra.mxu3 %v4916_v42  ;;  %v3018_v21 = vpop.f32.mrf.mxu0 }
 0x3d6   : > { %v3194_v31 = vpop.f32.mrf.mxu2  ;;  %v3019_v52 = vadd.f32 %v3018_v21, %v7154_v27 }
 0x3d7   : > { %v3195_v51 = vadd.f32 %v3194_v31, %v3106_v9  ;;  %v3107_v1 = vpop.f32.mrf.mxu1 }
 0x3d8   : > { %v3283_v15 = vpop.f32.mrf.mxu3  ;;  %v3108_v46 = vadd.f32 %v3107_v1, %v3019_v52  ;;  %v5406_v52 = vld [vmem:[#allocation5 + $0x214] sm:$0xf] }
 0x3d9   : > { %v7247_v47 = vadd.f32 %v3283_v15, %v3195_v51  ;;  %v4967_v51 = vld [vmem:[#allocation5 + $0x210] sm:$0xf]  ;;  %v4969_v1 = vld [vmem:[#allocation5 + $0x230] sm:$0xf0] }
 0x3da   : > { %v5410_v15 = vld [vmem:[#allocation5 + $0x22c] sm:$0xf0] }
 0x3db   : > { %8005 = vst [vmem:[#allocation15_spill] sm:$0xff] %v7247_v47  ;;  %v4968_v7 = vor.u32 %v5410_v15, %v4967_v51  ;;  %v5419_v51 = vld [vmem:[#allocation5 + $0x274] sm:$0xf0] }
 0x3dd   : > { %v3021_v16 = vpop.f32.mrf.mxu0 }
 0x3de   : > { %v3196_v53 = vpop.f32.mrf.mxu2  ;;  %v3022_v27 = vadd.f32 %v3021_v16, %v7157_v34 }
 0x3df   : > { %v3197_v5 = vadd.f32 %v3196_v53, %v3108_v46  ;;  %v3110_v4 = vpop.f32.mrf.mxu1  ;;  %v4975_v46 = vld [vmem:[#allocation5 + $0x218] sm:$0xf] }
 0x3e0   : > { %v3285_v59 = vpop.f32.mrf.mxu3  ;;  %v3111_v35 = vadd.f32 %v3110_v4, %v3022_v27  ;;  %3336 = vmatmul.bf16.gmra.mxu0 %v4936_v22  ;;  %v4972_v22 = vor.u32 %v5406_v52, %v4969_v1  ;;  %v4976_v16 = vor.u32 %v5411_v48, %v4975_v46  ;;  %v5415_v52 = vld [vmem:[#allocation5 + $0x25c] sm:$0xf] }
 0x3e1   : > { %v7250_v38 = vadd.f32 %v3285_v59, %v3197_v5  ;;  %v5009_v1 = vld [vmem:[#allocation5 + $0x278] sm:$0xf0] }
 0x3e2   : > { %3425 = vmatmul.bf16.gmra.mxu1 %v4940_v25  ;;  %v4980_v25 = vor.u32 %v5407_v37, %v4977_v54 }
 0x3e3   : > { %8006 = vst [vmem:[#allocation17_spill] sm:$0xff] %v7250_v38  ;;  %3514 = vmatmul.bf16.gmra.mxu2 %v4944_v33 }
 0x3e5   : > { %3603 = vmatmul.bf16.gmra.mxu3 %v4948_v40  ;;  %v3023_v62 = vpop.f32.mrf.mxu0 }
 0x3e6   : > { %v3199_v3 = vpop.f32.mrf.mxu2  ;;  %v3024_v9 = vadd.f32 %v3023_v62, %v7160_v6 }
 0x3e7   : > { %v3200_v56 = vadd.f32 %v3199_v3, %v3111_v35  ;;  %v3112_v31 = vpop.f32.mrf.mxu1 }
 0x3e8   : > { %v3288_v42 = vpop.f32.mrf.mxu3  ;;  %v3113_v34 = vadd.f32 %v3112_v31, %v3024_v9  ;;  %v5414_v9 = vld [vmem:[#allocation5 + $0x254] sm:$0xf] }
 0x3e9   : > { %v7253_v21 = vadd.f32 %v3288_v42, %v3200_v56  ;;  %v4999_v56 = vld [vmem:[#allocation5 + $0x250] sm:$0xf]  ;;  %v5001_v31 = vld [vmem:[#allocation5 + $0x270] sm:$0xf0] }
 0x3ea   : > { %v5418_v42 = vld [vmem:[#allocation5 + $0x26c] sm:$0xf0] }
 0x3eb   : > { %8007 = vst [vmem:[#allocation14_spill] sm:$0xff] %v7253_v21  ;;  %v5000_v15 = vor.u32 %v5418_v42, %v4999_v56  ;;  %v5427_v56 = vld [vmem:[#allocation5 + $0x2b4] sm:$0xf0] }
 0x3ed   : > { %v3302_v55 = vpop.f32.mrf.mxu0 }
 0x3ee   : > { %v3201_v60 = vpop.f32.mrf.mxu2  ;;  %v3303_v6 = vadd.f32 %v3302_v55, %v7163_v20 }
 0x3ef   : > { %v3202_v14 = vadd.f32 %v3201_v60, %v3113_v34  ;;  %v3391_v53 = vpop.f32.mrf.mxu1  ;;  %v5007_v34 = vld [vmem:[#allocation5 + $0x258] sm:$0xf] }
 0x3f0   : > { %v3290_v11 = vpop.f32.mrf.mxu3  ;;  %v3392_v59 = vadd.f32 %v3391_v53, %v3303_v6  ;;  %3341 = vmatmul.bf16.gmra.mxu0 %v4968_v7  ;;  %v5004_v7 = vor.u32 %v5414_v9, %v5001_v31  ;;  %v5008_v55 = vor.u32 %v5419_v51, %v5007_v34  ;;  %v5423_v9 = vld [vmem:[#allocation5 + $0x29c] sm:$0xf] }
 0x3f1   : > { %v7256_v5 = vadd.f32 %v3290_v11, %v3202_v14  ;;  %v5041_v31 = vld [vmem:[#allocation5 + $0x2b8] sm:$0xf0] }
 0x3f2   : > { %3430 = vmatmul.bf16.gmra.mxu1 %v4972_v22  ;;  %v5012_v22 = vor.u32 %v5415_v52, %v5009_v1 }
 0x3f3   : > { %8008 = vst [vmem:[#allocation16_spill] sm:$0xff] %v7256_v5  ;;  %3519 = vmatmul.bf16.gmra.mxu2 %v4976_v16 }
 0x3f5   : > { %3608 = vmatmul.bf16.gmra.mxu3 %v4980_v25  ;;  %v3304_v4 = vpop.f32.mrf.mxu0 }
 0x3f6   : > { %v3480_v27 = vpop.f32.mrf.mxu2  ;;  %v3305_v35 = vadd.f32 %v3304_v4, %v7166_v29 }
 0x3f7   : > { %v3481_v33 = vadd.f32 %v3480_v27, %v3392_v59  ;;  %v3393_v3 = vpop.f32.mrf.mxu1 }
 0x3f8   : > { %v3569_v40 = vpop.f32.mrf.mxu3  ;;  %v3394_v20 = vadd.f32 %v3393_v3, %v3305_v35  ;;  %v5422_v35 = vld [vmem:[#allocation5 + $0x294] sm:$0xf] }
 0x3f9   : > { %v7259_v62 = vadd.f32 %v3569_v40, %v3481_v33  ;;  %v5031_v33 = vld [vmem:[#allocation5 + $0x290] sm:$0xf]  ;;  %v5033_v3 = vld [vmem:[#allocation5 + $0x2b0] sm:$0xf0] }
 0x3fa   : > { %v5426_v40 = vld [vmem:[#allocation5 + $0x2ac] sm:$0xf0] }
 0x3fb   : > { %v5032_v42 = vor.u32 %v5426_v40, %v5031_v33  ;;  %v5065_v33 = vld [vmem:[#allocation5 + $0x2f0] sm:$0xf0]  ;;  %v5071_v40 = vld [vmem:[#allocation5 + $0x2d8] sm:$0xf] }
 0x3fd   : > { %v3307_v48 = vpop.f32.mrf.mxu0 }
 0x3fe   : > { %v3482_v46 = vpop.f32.mrf.mxu2  ;;  %v3308_v29 = vadd.f32 %v3307_v48, %v7169_v18 }
 0x3ff   : > { %v3483_v37 = vadd.f32 %v3482_v46, %v3394_v20  ;;  %v3396_v60 = vpop.f32.mrf.mxu1  ;;  %v5039_v20 = vld [vmem:[#allocation5 + $0x298] sm:$0xf] }
 0x400   : > { %v3571_v54 = vpop.f32.mrf.mxu3  ;;  %v3397_v11 = vadd.f32 %v3396_v60, %v3308_v29  ;;  %3346 = vmatmul.bf16.gmra.mxu0 %v5000_v15  ;;  %v5036_v15 = vor.u32 %v5422_v35, %v5033_v3  ;;  %v5040_v48 = vor.u32 %v5427_v56, %v5039_v20  ;;  %v5842_v29 = vmov 6.0   ;;  %v5435_v35 = vld [vmem:[#allocation5 + $0x2f4] sm:$0xf0]  ;;  %v8009_v3 = vld [vmem:[#allocation12_spill] sm:$0xff] }
 0x401   : > { %v7262_v14 = vadd.f32 %v3571_v54, %v3483_v37  ;;  %5673 = vrcp.f32 %v5842_v29  ;;  %v8010_v20 = vfloor.f32 %v8009_v3 }
 0x402   : > { %3435 = vmatmul.bf16.gmra.mxu1 %v5004_v7  ;;  %v5044_v7 = vor.u32 %v5423_v9, %v5041_v31  ;;  %v5431_v9 = vld [vmem:[#allocation5 + $0x2dc] sm:$0xf] }
 0x403   : > { %3524 = vmatmul.bf16.gmra.mxu2 %v5008_v55  ;;  %v225_v56 = vsub.f32 %v8009_v3, %v8010_v20  ;;  %v5073_v31 = vld [vmem:[#allocation5 + $0x2f8] sm:$0xf0] }
 0x405   : > { %3613 = vmatmul.bf16.gmra.mxu3 %v5012_v22  ;;  %v3309_v53 = vpop.f32.mrf.mxu0  ;;  %v7277_v29 = vmul.f32 3.0, %v225_v56 }
 0x406   : > { %v3485_v6 = vpop.f32.mrf.mxu2  ;;  %v3310_v59 = vadd.f32 %v3309_v53, %v7172_v58 }
 0x407   : > { %v3486_v16 = vadd.f32 %v3485_v6, %v3397_v11  ;;  %v3398_v27 = vpop.f32.mrf.mxu1 }
 0x408   : > { %v3574_v25 = vpop.f32.mrf.mxu3  ;;  %v3399_v18 = vadd.f32 %v3398_v27, %v3310_v59  ;;  %v5434_v59 = vld [vmem:[#allocation5 + $0x2ec] sm:$0xf0]  ;;  %v5674_v27 = vpop.eup %5673 }
 0x409   : > { %v7265_v4 = vadd.f32 %v3574_v25, %v3486_v16  ;;  %v5063_v25 = vld [vmem:[#allocation5 + $0x2d0] sm:$0xf]  ;;  %vm3661_vm8 = vweird.f32 %v5674_v27 }
 0x40d   : > { %v3312_v51 = vpop.f32.mrf.mxu0 }
 0x40e   : > { %v3487_v34 = vpop.f32.mrf.mxu2  ;;  %v3313_v58 = vadd.f32 %v3312_v51, %v7175_v39 }
 0x40f   : > { %v3488_v52 = vadd.f32 %v3487_v34, %v3399_v18  ;;  %v3401_v46 = vpop.f32.mrf.mxu1  ;;  %v5430_v18 = vld [vmem:[#allocation5 + $0x2d4] sm:$0xf]  ;;  %v3657_v34 = vmul.f32 6.0, %v5674_v27 }
 0x410   : > { %v3576_v1 = vpop.f32.mrf.mxu3  ;;  %v3402_v54 = vadd.f32 %v3401_v46, %v3313_v58  ;;  %3351 = vmatmul.bf16.gmra.mxu0 %v5032_v42  ;;  %v5064_v42 = vor.u32 %v5434_v59, %v5063_v25 }
 0x411   : > { %v7268_v37 = vadd.f32 %v3576_v1, %v3488_v52 }
 0x412   : > { %3440 = vmatmul.bf16.gmra.mxu1 %v5036_v15  ;;  %v5068_v15 = vor.u32 %v5430_v18, %v5065_v33 }
 0x413   : > { %3529 = vmatmul.bf16.gmra.mxu2 %v5040_v48  ;;  %v5072_v48 = vor.u32 %v5435_v35, %v5071_v40 }
 0x415   : > { %3618 = vmatmul.bf16.gmra.mxu3 %v5044_v7  ;;  %v3314_v55 = vpop.f32.mrf.mxu0  ;;  %v5076_v7 = vor.u32 %v5431_v9, %v5073_v31 }
 0x416   : > { %v3490_v60 = vpop.f32.mrf.mxu2  ;;  %v3315_v6 = vadd.f32 %v3314_v55, %v7178_v13 }
 0x417   : > { %v3491_v22 = vadd.f32 %v3490_v60, %v3402_v54  ;;  %v3403_v53 = vpop.f32.mrf.mxu1  ;;  %v3649_v54 = vmul.f32 %v225_v56, %v225_v56 }
 0x418   : > { %v3579_v11 = vpop.f32.mrf.mxu3  ;;  %v3404_v16 = vadd.f32 %v3403_v53, %v3315_v6  ;;  %v7284_v53 = vmul.f32 6.0, %v225_v56 }
 0x419   : > { %v7271_v39 = vadd.f32 %v3579_v11, %v3491_v22  ;;  %v3658_v22 = vsub.f32 1.0, %v3657_v34  ;;  %v3652_v11 = vsub.f32 1.0, %v7277_v29  ;;  %v7282_v6 = vmul.f32 3.0, %v3649_v54  ;;  %v5095_v34 = vld [vmem:[#allocation5 + $0x310] sm:$0xf] }
 0x41a   : > { %v3664_v35 = vmul.f32 6.0, %v3649_v54  ;;  %v7287_v3 = vmul.f32 %v3649_v54, %v225_v56 }
 0x41b   : > { %v3654_v20 = vadd.f32 %v7282_v6, %v3652_v11  ;;  %v5439_v11 = vld [vmem:[#allocation5 + $0x31c] sm:$0xf] }
 0x41d   : > { %v3317_v51 = vpop.f32.mrf.mxu0 }
 0x41e   : > { %v3492_v13 = vpop.f32.mrf.mxu2  ;;  %v3318_v58 = vadd.f32 %v3317_v51, %v7181_v36  ;;  %v3659_v36 = vmul.f32 %v5674_v27, %v3658_v22 }
 0x41f   : > { %v3493_v52 = vadd.f32 %v3492_v13, %v3404_v16  ;;  %v3406_v46 = vpop.f32.mrf.mxu1  ;;  %v5442_v13 = vld [vmem:[#allocation5 + $0x32c] sm:$0xf0] }
 0x420   : > { %v3581_v1 = vpop.f32.mrf.mxu3  ;;  %v3407_v55 = vadd.f32 %v3406_v46, %v3318_v58  ;;  %3356 = vmatmul.bf16.gmra.mxu0 %v5064_v42  ;;  %v3675_v42 = vadd.f32 -3.0, %v7284_v53  ;;  %v3660_v51 = vadd.f32 %v5674_v27, %v3659_v36  ;;  %v5443_v58 = vld [vmem:[#allocation5 + $0x334] sm:$0xf0]  ;;  %v7294_v46 = vmul.f32 3.0, %v7287_v3 }
 0x421   : > { %v7279_v60 = vadd.f32 %v3581_v1, %v3493_v52  ;;  %v5097_v52 = vld [vmem:[#allocation5 + $0x330] sm:$0xf0]  ;;  %v5103_v1 = vld [vmem:[#allocation5 + $0x318] sm:$0xf]  ;;  %v5096_v22 = vor.u32 %v5442_v13, %v5095_v34 }
 0x422   : > { %3445 = vmatmul.bf16.gmra.mxu1 %v5068_v15  ;;  %v5438_v15 = vld [vmem:[#allocation5 + $0x314] sm:$0xf]  ;;  %v3676_v36 = vsub.f32 %v3675_v42, %v7282_v6 }
 0x423   : > { %3534 = vmatmul.bf16.gmra.mxu2 %v5072_v48  ;;  %v7296_v48 = vmul.f32 9.0, %v3649_v54 }
 0x425   : > { %3623 = vmatmul.bf16.gmra.mxu3 %v5076_v7  ;;  %v3319_v25 = vpop.f32.mrf.mxu0  ;;  %v3679_v7 = vmul.f32 12.0, %v225_v56 }
 0x426   : > { %v3495_v16 = vpop.f32.mrf.mxu2  ;;  %v3320_v33 = vadd.f32 %v3319_v25, %v7184_v57  ;;  %v3665_v57 = vsub.f32 4.0, %v3664_v35  ;;  %v7299_v25 = vsel %vm3661_vm8, %v5674_v27, %v3660_v51 }
 0x427   : > { %v3496_v59 = vadd.f32 %v3495_v16, %v3407_v55  ;;  %v3408_v40 = vpop.f32.mrf.mxu1  ;;  %v3655_v55 = vsub.f32 %v3654_v20, %v7287_v3  ;;  %v5105_v16 = vld [vmem:[#allocation5 + $0x338] sm:$0xf0]  ;;  %v3680_v20 = vsub.f32 %v7296_v48, %v3679_v7  ;;  %v7311_v51 = vmul.f32 %v3676_v36, %v7299_v25  ;;  %v5127_v36 = vld [vmem:[#allocation5 + $0x350] sm:$0xf] }
 0x428   : > { %v3584_v18 = vpop.f32.mrf.mxu3  ;;  %v3409_v31 = vadd.f32 %v3408_v40, %v3320_v33  ;;  %v5100_v33 = vor.u32 %v5438_v15, %v5097_v52  ;;  %v5104_v40 = vor.u32 %v5443_v58, %v5103_v1  ;;  %v3667_v56 = vadd.f32 %v7294_v46, %v3665_v57 }
 0x429   : > { %v7291_v9 = vadd.f32 %v3584_v18, %v3496_v59  ;;  %v5108_v34 = vor.u32 %v5439_v11, %v5105_v16  ;;  %v7308_v42 = vmul.f32 %v7299_v25, %v3655_v55  ;;  %8011 = vst [vmem:[#allocation19_spill] sm:$0xff] %v7311_v51 }
 0x42d   : > { %v3322_v18 = vpop.f32.mrf.mxu0 }
 0x42e   : > { %v3497_v59 = vpop.f32.mrf.mxu2  ;;  %v3323_v5 = vadd.f32 %v3322_v18, %v7187_v49  ;;  %v7314_v49 = vmul.f32 %v3667_v56, %v7299_v25  ;;  %v5129_v56 = vld [vmem:[#allocation5 + $0x370] sm:$0xf0] }
 0x42f   : > { %v3498_v35 = vadd.f32 %v3497_v59, %v3409_v31  ;;  %v3411_v54 = vpop.f32.mrf.mxu1  ;;  %v7317_v31 = vmul.f32 %v3680_v20, %v7299_v25  ;;  %v5450_v59 = vld [vmem:[#allocation5 + $0x36c] sm:$0xf0]  ;;  %v5135_v20 = vld [vmem:[#allocation5 + $0x358] sm:$0xf] }
 0x430   : > { %v3586_v12 = vpop.f32.mrf.mxu3  ;;  %v3412_v27 = vadd.f32 %v3411_v54, %v3323_v5  ;;  %3361 = vmatmul.bf16.gmra.mxu0 %v5096_v22  ;;  %8012 = vst [vmem:[#allocation21_spill] sm:$0xff] %v7314_v49  ;;  %v7323_v5 = vperm.slane %v7311_v51, 2  ;;  %v7326_v57 = vperm.slane %v7314_v49, 2  ;;  %v5446_v54 = vld [vmem:[#allocation5 + $0x354] sm:$0xf] }
 0x431   : > { %v7305_v13 = vadd.f32 %v3586_v12, %v3498_v35  ;;  %8013 = vst [vmem:[#allocation18_spill] sm:$0xff] %v7317_v31  ;;  %v7320_v12 = vperm.slane %v7308_v42, 2  ;;  %v7329_v7 = vperm.slane %v7317_v31, 2 }
 0x432   : > { %3450 = vmatmul.bf16.gmra.mxu1 %v5100_v33  ;;  %v3696_v33 = vmul.f32 %v7323_v5, %v7259_v62 }
 0x433   : > { %3539 = vmatmul.bf16.gmra.mxu2 %v5104_v40  ;;  %v3687_v18 = vmul.f32 %v7320_v12, %v7259_v62 }
 0x435   : > { %3628 = vmatmul.bf16.gmra.mxu3 %v5108_v34  ;;  %v3324_v52 = vpop.f32.mrf.mxu0  ;;  %v5451_v34 = vld [vmem:[#allocation5 + $0x374] sm:$0xf0] }
 0x436   : > { %v3500_v15 = vpop.f32.mrf.mxu2  ;;  %v3325_v55 = vadd.f32 %v3324_v52, %v7190_v0  ;;  %v5447_v52 = vld [vmem:[#allocation5 + $0x35c] sm:$0xf] }
 0x437   : > { %v3501_v1 = vadd.f32 %v3500_v15, %v3412_v27  ;;  %v3413_v22 = vpop.f32.mrf.mxu1  ;;  %v5128_v15 = vor.u32 %v5450_v59, %v5127_v36  ;;  %v3697_v36 = vmul.f32 %v7323_v5, %v7262_v14 }
 0x438   : > { %v3589_v58 = vpop.f32.mrf.mxu3  ;;  %v3414_v16 = vadd.f32 %v3413_v22, %v3325_v55  ;;  %v5132_v22 = vor.u32 %v5446_v54, %v5129_v56 }
 0x439   : > { %v3590_v11 = vadd.f32 %v3589_v58, %v3501_v1  ;;  %v5137_v1 = vld [vmem:[#allocation5 + $0x378] sm:$0xf0] }
 0x43a   : > { %v5140_v31 = vor.u32 %v5447_v52, %v5137_v1  ;;  %v5454_v1 = vld [vmem:[#allocation5 + $0x394] sm:$0xf] }
 0x43b   : > { %v3705_v40 = vmul.f32 %v7326_v57, %v3590_v11  ;;  %v3722_v35 = vmul.f32 %v7329_v7, %v3590_v11  ;;  %v5136_v11 = vor.u32 %v5451_v34, %v5135_v20  ;;  %v5458_v34 = vld [vmem:[#allocation5 + $0x3ac] sm:$0xf0] }
 0x43d   : > { %v7338_v0 = vadd.f32 %v3705_v40, %v3687_v18  ;;  %v7340_v27 = vadd.f32 %v3722_v35, %v3696_v33  ;;  %v3327_v55 = vpop.f32.mrf.mxu0  ;;  %v3688_v18 = vmul.f32 %v7320_v12, %v7262_v14  ;;  %v5159_v14 = vld [vmem:[#allocation5 + $0x390] sm:$0xf] }
 0x43e   : > { %v3502_v58 = vpop.f32.mrf.mxu2  ;;  %v3328_v38 = vadd.f32 %v3327_v55, %v7193_v2  ;;  %v5459_v55 = vld [vmem:[#allocation5 + $0x3b4] sm:$0xf0] }
 0x43f   : > { %v3503_v21 = vadd.f32 %v3502_v58, %v3414_v16  ;;  %v3416_v47 = vpop.f32.mrf.mxu1  ;;  %v5167_v58 = vld [vmem:[#allocation5 + $0x398] sm:$0xf] }
 0x440   : > { %v3591_v62 = vpop.f32.mrf.mxu3  ;;  %v3417_v51 = vadd.f32 %v3416_v47, %v3328_v38  ;;  %3366 = vmatmul.bf16.gmra.mxu0 %v5128_v15 }
 0x441   : > { %v3592_v49 = vadd.f32 %v3591_v62, %v3503_v21  ;;  %v5160_v62 = vor.u32 %v5458_v34, %v5159_v14  ;;  %v3699_v14 = vmul.f32 %v7323_v5, %v7268_v37 }
 0x442   : > { %3455 = vmatmul.bf16.gmra.mxu1 %v5132_v22 }
 0x443   : > { %v3706_v59 = vmul.f32 %v7326_v57, %v3592_v49  ;;  %v3723_v16 = vmul.f32 %v7329_v7, %v3592_v49  ;;  %3544 = vmatmul.bf16.gmra.mxu2 %v5136_v11  ;;  %v3689_v49 = vmul.f32 %v7320_v12, %v7265_v4  ;;  %v5455_v11 = vld [vmem:[#allocation5 + $0x39c] sm:$0xf] }
 0x445   : > { %3633 = vmatmul.bf16.gmra.mxu3 %v5140_v31  ;;  %v7349_v2 = vadd.f32 %v3706_v59, %v3688_v18  ;;  %v7351_v33 = vadd.f32 %v3723_v16, %v3697_v36  ;;  %v3329_v47 = vpop.f32.mrf.mxu0  ;;  %v3698_v31 = vmul.f32 %v7323_v5, %v7265_v4  ;;  %v5169_v18 = vld [vmem:[#allocation5 + $0x3b8] sm:$0xf0] }
 0x446   : > { %v3505_v21 = vpop.f32.mrf.mxu2  ;;  %v3330_v35 = vadd.f32 %v3329_v47, %v7196_v8 }
 0x447   : > { %v3506_v38 = vadd.f32 %v3505_v21, %v3417_v51  ;;  %v3418_v54 = vpop.f32.mrf.mxu1  ;;  %v5161_v51 = vld [vmem:[#allocation5 + $0x3b0] sm:$0xf0] }
 0x448   : > { %v3594_v40 = vpop.f32.mrf.mxu3  ;;  %v3419_v20 = vadd.f32 %v3418_v54, %v3330_v35  ;;  %v5164_v16 = vor.u32 %v5454_v1, %v5161_v51  ;;  %v5172_v35 = vor.u32 %v5455_v11, %v5169_v18  ;;  %v5466_v18 = vld [vmem:[#allocation5 + $0x3ec] sm:$0xf0] }
 0x449   : > { %v3595_v56 = vadd.f32 %v3594_v40, %v3506_v38  ;;  %v5168_v40 = vor.u32 %v5459_v55, %v5167_v58 }
 0x44b   : > { %v3707_v15 = vmul.f32 %v7326_v57, %v3595_v56  ;;  %v3724_v52 = vmul.f32 %v7329_v7, %v3595_v56 }
 0x44d   : > { %v7360_v8 = vadd.f32 %v3707_v15, %v3689_v49  ;;  %v7362_v22 = vadd.f32 %v3724_v52, %v3698_v31  ;;  %v3332_v59 = vpop.f32.mrf.mxu0  ;;  %v3690_v49 = vmul.f32 %v7320_v12, %v7268_v37  ;;  %v5191_v37 = vld [vmem:[#allocation5 + $0x3d0] sm:$0xf] }
 0x44e   : > { %v3507_v36 = vpop.f32.mrf.mxu2  ;;  %v3333_v47 = vadd.f32 %v3332_v59, %v7199_v45  ;;  %v3700_v59 = vmul.f32 %v7323_v5, %v7271_v39 }
 0x44f   : > { %v3508_v21 = vadd.f32 %v3507_v36, %v3419_v20  ;;  %v3421_v38 = vpop.f32.mrf.mxu1  ;;  %v3691_v36 = vmul.f32 %v7320_v12, %v7271_v39 }
 0x450   : > { %v3596_v4 = vpop.f32.mrf.mxu3  ;;  %v3422_v56 = vadd.f32 %v3421_v38, %v3333_v47  ;;  %3371 = vmatmul.bf16.gmra.mxu0 %v5160_v62  ;;  %v5193_v47 = vld [vmem:[#allocation5 + $0x3f0] sm:$0xf0]  ;;  %v5199_v38 = vld [vmem:[#allocation5 + $0x3d8] sm:$0xf] }
 0x451   : > { %v3597_v54 = vadd.f32 %v3596_v4, %v3508_v21  ;;  %v5462_v4 = vld [vmem:[#allocation5 + $0x3d4] sm:$0xf] }
 0x452   : > { %3460 = vmatmul.bf16.gmra.mxu1 %v5164_v16 }
 0x453   : > { %v3708_v34 = vmul.f32 %v7326_v57, %v3597_v54  ;;  %v3725_v20 = vmul.f32 %v7329_v7, %v3597_v54  ;;  %3549 = vmatmul.bf16.gmra.mxu2 %v5168_v40  ;;  %v5467_v40 = vld [vmem:[#allocation5 + $0x3f4] sm:$0xf0]  ;;  %v5192_v54 = vor.u32 %v5466_v18, %v5191_v37  ;;  %v3701_v37 = vmul.f32 %v7323_v5, %v7279_v60 }
 0x455   : > { %3638 = vmatmul.bf16.gmra.mxu3 %v5172_v35  ;;  %v7371_v45 = vadd.f32 %v3708_v34, %v3690_v49  ;;  %v7373_v31 = vadd.f32 %v3725_v20, %v3699_v14  ;;  %v3334_v52 = vpop.f32.mrf.mxu0  ;;  %v5201_v49 = vld [vmem:[#allocation5 + $0x3f8] sm:$0xf0]  ;;  %v5196_v20 = vor.u32 %v5462_v4, %v5193_v47 }
 0x456   : > { %v3510_v15 = vpop.f32.mrf.mxu2  ;;  %v3335_v58 = vadd.f32 %v3334_v52, %v7202_v32 }
 0x457   : > { %v3511_v1 = vadd.f32 %v3510_v15, %v3422_v56  ;;  %v3423_v55 = vpop.f32.mrf.mxu1  ;;  %v5463_v56 = vld [vmem:[#allocation5 + $0x3dc] sm:$0xf] }
 0x458   : > { %v3599_v51 = vpop.f32.mrf.mxu3  ;;  %v3424_v11 = vadd.f32 %v3423_v55, %v3335_v58  ;;  %v5204_v58 = vor.u32 %v5463_v56, %v5201_v49  ;;  %v3693_v49 = vmul.f32 %v7320_v12, %v7291_v9 }
 0x459   : > { %v3600_v62 = vadd.f32 %v3599_v51, %v3511_v1  ;;  %v5200_v51 = vor.u32 %v5467_v40, %v5199_v38 }
 0x45b   : > { %v3709_v16 = vmul.f32 %v7326_v57, %v3600_v62  ;;  %v3726_v21 = vmul.f32 %v7329_v7, %v3600_v62 }
 0x45d   : > { %v7382_v32 = vadd.f32 %v3709_v16, %v3691_v36  ;;  %v7384_v35 = vadd.f32 %v3726_v21, %v3700_v59  ;;  %v3337_v34 = vpop.f32.mrf.mxu0  ;;  %v3692_v36 = vmul.f32 %v7320_v12, %v7279_v60 }
 0x45e   : > { %v3512_v14 = vpop.f32.mrf.mxu2  ;;  %v3338_v52 = vadd.f32 %v3337_v34, %v7205_v24 }
 0x45f   : > { %v3513_v15 = vadd.f32 %v3512_v14, %v3424_v11  ;;  %v3426_v1 = vpop.f32.mrf.mxu1  ;;  %v3702_v14 = vmul.f32 %v7323_v5, %v7291_v9 }
 0x460   : > { %v3601_v39 = vpop.f32.mrf.mxu3  ;;  %v3427_v62 = vadd.f32 %v3426_v1, %v3338_v52  ;;  %3376 = vmatmul.bf16.gmra.mxu0 %v5192_v54  ;;  %v3669_v54 = vadd.f32 1.0, %v7277_v29 }
 0x461   : > { %v3602_v55 = vadd.f32 %v3601_v39, %v3513_v15  ;;  %v3682_v39 = vadd.f32 3.0, %v7284_v53  ;;  %v3694_v53 = vmul.f32 %v7320_v12, %v7305_v13 }
 0x462   : > { %3465 = vmatmul.bf16.gmra.mxu1 %v5196_v20  ;;  %v3670_v15 = vadd.f32 %v3669_v54, %v7282_v6 }
 0x463   : > { %v3710_v18 = vmul.f32 %v7326_v57, %v3602_v55  ;;  %v3727_v11 = vmul.f32 %v7329_v7, %v3602_v55  ;;  %3554 = vmatmul.bf16.gmra.mxu2 %v5200_v51 }
 0x464   : > { %v3671_v9 = vsub.f32 %v3670_v15, %v7294_v46 }
 0x465   : > { %3643 = vmatmul.bf16.gmra.mxu3 %v5204_v58  ;;  %v7393_v24 = vadd.f32 %v3710_v18, %v3692_v36  ;;  %v7395_v59 = vadd.f32 %v3727_v11, %v3701_v37  ;;  %v3339_v21 = vpop.f32.mrf.mxu0  ;;  %v3683_v36 = vsub.f32 %v3682_v39, %v7296_v48  ;;  %v3703_v11 = vmul.f32 %v7323_v5, %v7305_v13 }
 0x466   : > { %v3515_v16 = vpop.f32.mrf.mxu2  ;;  %v3340_v38 = vadd.f32 %v3339_v21, %v7208_v26 }
 0x467   : > { %v3516_v4 = vadd.f32 %v3515_v16, %v3427_v62  ;;  %v3428_v40 = vpop.f32.mrf.mxu1 }
 0x468   : > { %v3604_v47 = vpop.f32.mrf.mxu3  ;;  %v3429_v56 = vadd.f32 %v3428_v40, %v3340_v38 }
 0x469   : > { %v3605_v60 = vadd.f32 %v3604_v47, %v3516_v4  ;;  %v7421_v4 = vmul.f32 %v3671_v9, %v7299_v25 }
 0x46b   : > { %v3711_v34 = vmul.f32 %v7326_v57, %v3605_v60  ;;  %v3728_v20 = vmul.f32 %v7329_v7, %v3605_v60  ;;  %v7431_v13 = vperm.slane %v7421_v4, 2 }
 0x46d   : > { %v7407_v26 = vadd.f32 %v3711_v34, %v3693_v49  ;;  %v7409_v52 = vadd.f32 %v3728_v20, %v3702_v14  ;;  %v3342_v1 = vpop.f32.mrf.mxu0 }
 0x46e   : > { %v3517_v29 = vpop.f32.mrf.mxu2  ;;  %v3343_v55 = vadd.f32 %v3342_v1, %v7211_v43  ;;  %v7424_v43 = vmul.f32 %v3683_v36, %v7299_v25 }
 0x46f   : > { %v3518_v51 = vadd.f32 %v3517_v29, %v3429_v56  ;;  %v3431_v62 = vpop.f32.mrf.mxu1 }
 0x470   : > { %v3606_v58 = vpop.f32.mrf.mxu3  ;;  %v3432_v18 = vadd.f32 %v3431_v62, %v3343_v55  ;;  %v7434_v5 = vperm.slane %v7424_v43, 2 }
 0x471   : > { %v3607_v37 = vadd.f32 %v3606_v58, %v3518_v51 }
 0x473   : > { %v3712_v16 = vmul.f32 %v7326_v57, %v3607_v37  ;;  %v3729_v21 = vmul.f32 %v7329_v7, %v3607_v37 }
 0x475   : > { %v7426_v46 = vadd.f32 %v3712_v16, %v3694_v53  ;;  %v7428_v48 = vadd.f32 %v3729_v21, %v3703_v11  ;;  %v3344_v38 = vpop.f32.mrf.mxu0 }
 0x476   : > { %v3520_v47 = vpop.f32.mrf.mxu2  ;;  %v3345_v57 = vadd.f32 %v3344_v38, %v7214_v17 }
 0x477   : > { %v3521_v12 = vadd.f32 %v3520_v47, %v3432_v18  ;;  %v3433_v7 = vpop.f32.mrf.mxu1 }
 0x478   : > { %v3609_v40 = vpop.f32.mrf.mxu3  ;;  %v3434_v60 = vadd.f32 %v3433_v7, %v3345_v57 }
 0x479   : > { %v3610_v54 = vadd.f32 %v3609_v40, %v3521_v12 }
 0x47b   : > { %v3739_v56 = vmul.f32 %v7431_v13, %v3610_v54  ;;  %v3756_v49 = vmul.f32 %v7434_v5, %v3610_v54 }
 0x47d   : > { %v7440_v14 = vadd.f32 %v3739_v56, %v7338_v0  ;;  %v7443_v34 = vadd.f32 %v3756_v49, %v7340_v27  ;;  %v3347_v15 = vpop.f32.mrf.mxu0 }
 0x47e   : > { %v3522_v20 = vpop.f32.mrf.mxu2  ;;  %v3348_v1 = vadd.f32 %v3347_v15, %v7217_v23 }
 0x47f   : > { %v3523_v39 = vadd.f32 %v3522_v20, %v3434_v60  ;;  %v3436_v17 = vpop.f32.mrf.mxu1 }
 0x480   : > { %v3611_v29 = vpop.f32.mrf.mxu3  ;;  %v3437_v58 = vadd.f32 %v3436_v17, %v3348_v1 }
 0x481   : > { %v3612_v51 = vadd.f32 %v3611_v29, %v3523_v39 }
 0x483   : > { %v3740_v55 = vmul.f32 %v7431_v13, %v3612_v51  ;;  %v3757_v62 = vmul.f32 %v7434_v5, %v3612_v51 }
 0x485   : > { %v7449_v9 = vadd.f32 %v3740_v55, %v7349_v2  ;;  %v7452_v0 = vadd.f32 %v3757_v62, %v7351_v33  ;;  %v3349_v36 = vpop.f32.mrf.mxu0 }
 0x486   : > { %v3525_v27 = vpop.f32.mrf.mxu2  ;;  %v3350_v53 = vadd.f32 %v3349_v36, %v7220_v19 }
 0x487   : > { %v3526_v37 = vadd.f32 %v3525_v27, %v3437_v58  ;;  %v3438_v23 = vpop.f32.mrf.mxu1 }
 0x488   : > { %v3614_v18 = vpop.f32.mrf.mxu3  ;;  %v3439_v16 = vadd.f32 %v3438_v23, %v3350_v53 }
 0x489   : > { %v3615_v11 = vadd.f32 %v3614_v18, %v3526_v37 }
 0x48b   : > { %v3741_v21 = vmul.f32 %v7431_v13, %v3615_v11  ;;  %v3758_v47 = vmul.f32 %v7434_v5, %v3615_v11 }
 0x48d   : > { %v7458_v38 = vadd.f32 %v3741_v21, %v7360_v8  ;;  %v7461_v2 = vadd.f32 %v3758_v47, %v7362_v22  ;;  %v3352_v12 = vpop.f32.mrf.mxu0 }
 0x48e   : > { %v3527_v33 = vpop.f32.mrf.mxu2  ;;  %v3353_v7 = vadd.f32 %v3352_v12, %v7223_v10 }
 0x48f   : > { %v3528_v40 = vadd.f32 %v3527_v33, %v3439_v16  ;;  %v3441_v19 = vpop.f32.mrf.mxu1 }
 0x490   : > { %v3616_v57 = vpop.f32.mrf.mxu3  ;;  %v3442_v60 = vadd.f32 %v3441_v19, %v3353_v7 }
 0x491   : > { %v3617_v54 = vadd.f32 %v3616_v57, %v3528_v40 }
 0x493   : > { %v3742_v56 = vmul.f32 %v7431_v13, %v3617_v54  ;;  %v3759_v49 = vmul.f32 %v7434_v5, %v3617_v54 }
 0x495   : > { %v7467_v20 = vadd.f32 %v3742_v56, %v7371_v45  ;;  %v7470_v8 = vadd.f32 %v3759_v49, %v7373_v31  ;;  %v3354_v15 = vpop.f32.mrf.mxu0 }
 0x496   : > { %v3530_v22 = vpop.f32.mrf.mxu2  ;;  %v3355_v1 = vadd.f32 %v3354_v15, %v7226_v30 }
 0x497   : > { %v3531_v39 = vadd.f32 %v3530_v22, %v3442_v60  ;;  %v3443_v10 = vpop.f32.mrf.mxu1 }
 0x498   : > { %v3619_v29 = vpop.f32.mrf.mxu3  ;;  %v3444_v51 = vadd.f32 %v3443_v10, %v3355_v1 }
 0x499   : > { %v3620_v17 = vadd.f32 %v3619_v29, %v3531_v39 }
 0x49b   : > { %v3743_v58 = vmul.f32 %v7431_v13, %v3620_v17  ;;  %v3760_v55 = vmul.f32 %v7434_v5, %v3620_v17 }
 0x49d   : > { %v7476_v62 = vadd.f32 %v3743_v58, %v7382_v32  ;;  %v7479_v45 = vadd.f32 %v3760_v55, %v7384_v35  ;;  %v3357_v27 = vpop.f32.mrf.mxu0 }
 0x49e   : > { %v3532_v31 = vpop.f32.mrf.mxu2  ;;  %v3358_v18 = vadd.f32 %v3357_v27, %v7229_v61 }
 0x49f   : > { %v3533_v36 = vadd.f32 %v3532_v31, %v3444_v51  ;;  %v3446_v30 = vpop.f32.mrf.mxu1 }
 0x4a0   : > { %v3621_v37 = vpop.f32.mrf.mxu3  ;;  %v3447_v23 = vadd.f32 %v3446_v30, %v3358_v18 }
 0x4a1   : > { %v3622_v53 = vadd.f32 %v3621_v37, %v3533_v36 }
 0x4a3   : > { %v3744_v11 = vmul.f32 %v7431_v13, %v3622_v53  ;;  %v3761_v16 = vmul.f32 %v7434_v5, %v3622_v53 }
 0x4a5   : > { %v7485_v21 = vadd.f32 %v3744_v11, %v7393_v24  ;;  %v7488_v32 = vadd.f32 %v3761_v16, %v7395_v59  ;;  %v3359_v47 = vpop.f32.mrf.mxu0 }
 0x4a6   : > { %v3535_v35 = vpop.f32.mrf.mxu2  ;;  %v3360_v61 = vadd.f32 %v3359_v47, %v7232_v63 }
 0x4a7   : > { %v3536_v33 = vadd.f32 %v3535_v35, %v3447_v23  ;;  %v3448_v40 = vpop.f32.mrf.mxu1 }
 0x4a8   : > { %v3624_v12 = vpop.f32.mrf.mxu3  ;;  %v3449_v59 = vadd.f32 %v3448_v40, %v3360_v61 }
 0x4a9   : > { %v3625_v57 = vadd.f32 %v3624_v12, %v3536_v33 }
 0x4ab   : > { %v3745_v7 = vmul.f32 %v7431_v13, %v3625_v57  ;;  %v3762_v19 = vmul.f32 %v7434_v5, %v3625_v57 }
 0x4ad   : > { %v7494_v54 = vadd.f32 %v3745_v7, %v7407_v26  ;;  %v7497_v24 = vadd.f32 %v3762_v19, %v7409_v52  ;;  %v3362_v56 = vpop.f32.mrf.mxu0  ;;  %v7504_v26 = vmul.f32 %v7299_v25, %v7287_v3  ;;  %v7508_v52 = vmul.f32 %v7299_v25, %v7282_v6 }
 0x4ae   : > { %v3537_v60 = vpop.f32.mrf.mxu2  ;;  %v3363_v29 = vadd.f32 %v3362_v56, %v7235_v28 }
 0x4af   : > { %v3538_v49 = vadd.f32 %v3537_v60, %v3449_v59  ;;  %v3451_v15 = vpop.f32.mrf.mxu1  ;;  %v7520_v3 = vperm.slane %v7508_v52, 2  ;;  %v3806_v60 = vperm.slane %v7308_v42, 1 }
 0x4b0   : > { %v3626_v22 = vpop.f32.mrf.mxu3  ;;  %v3452_v51 = vadd.f32 %v3451_v15, %v3363_v29 }
 0x4b1   : > { %v3627_v39 = vadd.f32 %v3626_v22, %v3538_v49 }
 0x4b3   : > { %v3746_v63 = vmul.f32 %v7431_v13, %v3627_v39  ;;  %v3763_v1 = vmul.f32 %v7434_v5, %v3627_v39  ;;  %v7517_v5 = vperm.slane %v7504_v26, 2 }
 0x4b5   : > { %v7511_v10 = vadd.f32 %v3746_v63, %v7426_v46  ;;  %v7514_v17 = vadd.f32 %v3763_v1, %v7428_v48  ;;  %v3364_v58 = vpop.f32.mrf.mxu0 }
 0x4b6   : > { %v3540_v28 = vpop.f32.mrf.mxu2  ;;  %v3365_v25 = vadd.f32 %v3364_v58, %v7238_v41 }
 0x4b7   : > { %v3541_v13 = vadd.f32 %v3540_v28, %v3452_v51  ;;  %v3453_v31 = vpop.f32.mrf.mxu1 }
 0x4b8   : > { %v3629_v55 = vpop.f32.mrf.mxu3  ;;  %v3454_v37 = vadd.f32 %v3453_v31, %v3365_v25 }
 0x4b9   : > { %v3630_v6 = vadd.f32 %v3629_v55, %v3541_v13 }
 0x4bb   : > { %v3773_v46 = vmul.f32 %v7517_v5, %v3630_v6  ;;  %v3790_v48 = vmul.f32 %v7520_v3, %v3630_v6 }
 0x4bd   : > { %v3781_v27 = vadd.f32 %v3773_v46, %v7440_v14  ;;  %v3798_v36 = vadd.f32 %v3790_v48, %v7443_v34  ;;  %v3367_v30 = vpop.f32.mrf.mxu0 }
 0x4be   : > { %v3542_v18 = vpop.f32.mrf.mxu2  ;;  %v3368_v35 = vadd.f32 %v3367_v30, %v7241_v50  ;;  %v8014_v50 = vld [vmem:[#allocation19_spill] sm:$0xff] }
 0x4bf   : > { %v3543_v53 = vadd.f32 %v3542_v18, %v3454_v37  ;;  %v3456_v11 = vpop.f32.mrf.mxu1  ;;  %v3809_v56 = vperm.slane %v8014_v50, 1  ;;  %v3807_v51 = vmul.f32 %v3806_v60, %v3781_v27  ;;  %v8017_v37 = vld [vmem:[#allocation15_spill] sm:$0xff] }
 0x4c0   : > { %v3631_v23 = vpop.f32.mrf.mxu3  ;;  %v3457_v14 = vadd.f32 %v3456_v11, %v3368_v35 }
 0x4c1   : > { %v3632_v16 = vadd.f32 %v3631_v23, %v3543_v53  ;;  %v3810_v28 = vmul.f32 %v3809_v56, %v3781_v27 }
 0x4c3   : > { %v3774_v47 = vmul.f32 %v7517_v5, %v3632_v16  ;;  %v3791_v41 = vmul.f32 %v7520_v3, %v3632_v16 }
 0x4c5   : > { %v3782_v33 = vadd.f32 %v3774_v47, %v7449_v9  ;;  %v3799_v12 = vadd.f32 %v3791_v41, %v7452_v0  ;;  %v3369_v34 = vpop.f32.mrf.mxu0  ;;  %v8015_v9 = vld [vmem:[#allocation21_spill] sm:$0xff]  ;;  %v8016_v0 = vld [vmem:[#allocation18_spill] sm:$0xff] }
 0x4c6   : > { %v3545_v40 = vpop.f32.mrf.mxu2  ;;  %v3370_v59 = vadd.f32 %v3369_v34, %v7244_v44  ;;  %v3814_v15 = vperm.slane %v8015_v9, 1  ;;  %v3819_v39 = vperm.slane %v8016_v0, 1  ;;  %v3812_v44 = vmul.f32 %v3806_v60, %v3798_v36 }
 0x4c7   : > { %v3546_v57 = vadd.f32 %v3545_v40, %v3457_v14  ;;  %v3458_v7 = vpop.f32.mrf.mxu1  ;;  %v3808_v35 = vmul.f32 %v3806_v60, %v3782_v33  ;;  %v3811_v47 = vmul.f32 %v3809_v56, %v3782_v33  ;;  %v3813_v41 = vmul.f32 %v3806_v60, %v3799_v12 }
 0x4c8   : > { %v3634_v61 = vpop.f32.mrf.mxu3  ;;  %v3459_v1 = vadd.f32 %v3458_v7, %v3370_v59  ;;  %v8018_v59 = vld [vmem:[#allocation17_spill] sm:$0xff]  ;;  %v3828_v33 = vperm.slane %v7421_v4, 1  ;;  %v3833_v12 = vperm.slane %v7424_v43, 1 }
 0x4c9   : > { %v3635_v19 = vadd.f32 %v3634_v61, %v3546_v57 }
 0x4cb   : > { %v3775_v49 = vmul.f32 %v7517_v5, %v3635_v19  ;;  %v3792_v22 = vmul.f32 %v7520_v3, %v3635_v19 }
 0x4cd   : > { %v3783_v29 = vadd.f32 %v3775_v49, %v7458_v38  ;;  %v3800_v63 = vadd.f32 %v3792_v22, %v7461_v2  ;;  %v3372_v13 = vpop.f32.mrf.mxu0 }
 0x4ce   : > { %v3547_v58 = vpop.f32.mrf.mxu2  ;;  %v3373_v18 = vadd.f32 %v3372_v13, %v8017_v37 }
 0x4cf   : > { %v3815_v55 = vmul.f32 %v3814_v15, %v3783_v29  ;;  %v3820_v31 = vmul.f32 %v3819_v39, %v3783_v29  ;;  %v3824_v6 = vmul.f32 %v3814_v15, %v3800_v63  ;;  %v3548_v25 = vadd.f32 %v3547_v58, %v3459_v1  ;;  %v3461_v48 = vpop.f32.mrf.mxu1 }
 0x4d0   : > { %v3636_v46 = vpop.f32.mrf.mxu3  ;;  %v3462_v16 = vadd.f32 %v3461_v48, %v3373_v18 }
 0x4d1   : > { %v3817_v30 = vadd.f32 %v3815_v55, %v3807_v51  ;;  %v3822_v53 = vadd.f32 %v3820_v31, %v3810_v28  ;;  %v3826_v23 = vadd.f32 %v3824_v6, %v3812_v44  ;;  %v3637_v38 = vadd.f32 %v3636_v46, %v3548_v25  ;;  %v8019_v6 = vld [vmem:[#allocation14_spill] sm:$0xff] }
 0x4d3   : > { %v3776_v2 = vmul.f32 %v7517_v5, %v3637_v38  ;;  %v3793_v11 = vmul.f32 %v7520_v3, %v3637_v38 }
 0x4d5   : > { %v3784_v27 = vadd.f32 %v3776_v2, %v7467_v20  ;;  %v3801_v36 = vadd.f32 %v3793_v11, %v7470_v8  ;;  %v3374_v40 = vpop.f32.mrf.mxu0 }
 0x4d6   : > { %v3550_v14 = vpop.f32.mrf.mxu2  ;;  %v3375_v49 = vadd.f32 %v3374_v40, %v8018_v59 }
 0x4d7   : > { %v3816_v34 = vmul.f32 %v3814_v15, %v3784_v27  ;;  %v3821_v57 = vmul.f32 %v3819_v39, %v3784_v27  ;;  %v3825_v61 = vmul.f32 %v3814_v15, %v3801_v36  ;;  %v3551_v7 = vadd.f32 %v3550_v14, %v3462_v16  ;;  %v3463_v22 = vpop.f32.mrf.mxu1 }
 0x4d8   : > { %v3639_v19 = vpop.f32.mrf.mxu3  ;;  %v3464_v15 = vadd.f32 %v3463_v22, %v3375_v49 }
 0x4d9   : > { %v3818_v29 = vadd.f32 %v3816_v34, %v3808_v35  ;;  %v3823_v63 = vadd.f32 %v3821_v57, %v3811_v47  ;;  %v3827_v1 = vadd.f32 %v3825_v61, %v3813_v41  ;;  %v3640_v20 = vadd.f32 %v3639_v19, %v3551_v7 }
 0x4da   : > { %v3847_v19 = vperm.slane %v7508_v52, 1 }
 0x4db   : > { %v3777_v8 = vmul.f32 %v7517_v5, %v3640_v20  ;;  %v3794_v51 = vmul.f32 %v7520_v3, %v3640_v20 }
 0x4dd   : > { %v3785_v60 = vadd.f32 %v3777_v8, %v7476_v62  ;;  %v3802_v56 = vadd.f32 %v3794_v51, %v7479_v45  ;;  %v3377_v28 = vpop.f32.mrf.mxu0 }
 0x4de   : > { %v3552_v39 = vpop.f32.mrf.mxu2  ;;  %v3378_v25 = vadd.f32 %v3377_v28, %v8019_v6 }
 0x4df   : > { %v3829_v44 = vmul.f32 %v3828_v33, %v3785_v60  ;;  %v3834_v58 = vmul.f32 %v3833_v12, %v3785_v60  ;;  %v3838_v13 = vmul.f32 %v3828_v33, %v3802_v56  ;;  %v3553_v55 = vadd.f32 %v3552_v39, %v3464_v15  ;;  %v3466_v38 = vpop.f32.mrf.mxu1 }
 0x4e0   : > { %v3641_v31 = vpop.f32.mrf.mxu3  ;;  %v3467_v27 = vadd.f32 %v3466_v38, %v3378_v25  ;;  %v3894_v25 = vperm.slane %v7504_v26, 0 }
 0x4e1   : > { %v3831_v46 = vadd.f32 %v3829_v44, %v3817_v30  ;;  %v3836_v48 = vadd.f32 %v3834_v58, %v3822_v53  ;;  %v3840_v37 = vadd.f32 %v3838_v13, %v3826_v23  ;;  %v3642_v18 = vadd.f32 %v3641_v31, %v3553_v55  ;;  %v8020_v53 = vld [vmem:[#allocation16_spill] sm:$0xff] }
 0x4e2   : > { %v3858_v55 = vperm.slane %v8014_v50, 0 }
 0x4e3   : > { %v3778_v2 = vmul.f32 %v7517_v5, %v3642_v18  ;;  %v3795_v62 = vmul.f32 %v7520_v3, %v3642_v18 }
 0x4e5   : > { %v3786_v45 = vadd.f32 %v3778_v2, %v7485_v21  ;;  %v3803_v11 = vadd.f32 %v3795_v62, %v7488_v32  ;;  %v3379_v16 = vpop.f32.mrf.mxu0  ;;  %v3842_v32 = vperm.slane %v7504_v26, 1 }
 0x4e6   : > { %v3555_v36 = vpop.f32.mrf.mxu2  ;;  %v3380_v23 = vadd.f32 %v3379_v16, %v8020_v53 }
 0x4e7   : > { %v3830_v35 = vmul.f32 %v3828_v33, %v3786_v45  ;;  %v3835_v47 = vmul.f32 %v3833_v12, %v3786_v45  ;;  %v3839_v41 = vmul.f32 %v3828_v33, %v3803_v11  ;;  %v3556_v14 = vadd.f32 %v3555_v36, %v3467_v27  ;;  %v3468_v59 = vpop.f32.mrf.mxu1 }
 0x4e8   : > { %v3644_v30 = vpop.f32.mrf.mxu3  ;;  %v3469_v20 = vadd.f32 %v3468_v59, %v3380_v23  ;;  %v3862_v33 = vperm.slane %v8015_v9, 0  ;;  %v3868_v12 = vperm.slane %v8016_v0, 0  ;;  %v3884_v9 = vperm.slane %v7421_v4, 0 }
 0x4e9   : > { %v3832_v40 = vadd.f32 %v3830_v35, %v3818_v29  ;;  %v3837_v34 = vadd.f32 %v3835_v47, %v3823_v63  ;;  %v3841_v57 = vadd.f32 %v3839_v41, %v3827_v1  ;;  %v3645_v61 = vadd.f32 %v3644_v30, %v3556_v14 }
 0x4ea   : > { %v3887_v0 = vperm.slane %v7424_v43, 0 }
 0x4eb   : > { %v3779_v7 = vmul.f32 %v7517_v5, %v3645_v61  ;;  %v3796_v21 = vmul.f32 %v7520_v3, %v3645_v61 }
 0x4ed   : > { %v3787_v49 = vadd.f32 %v3779_v7, %v7494_v54  ;;  %v3804_v22 = vadd.f32 %v3796_v21, %v7497_v24  ;;  %v3856_v24 = vperm.slane %v7308_v42, 0  ;;  %v8021_v42 = vld [vmem:[#allocation13_spill] sm:$0xff] }
 0x4ee   : > { %v3557_v8 = vpop.f32.mrf.mxu2  ;;  %vm3917_vm4 = vcmp.eq.s32.totalorder %v8021_v42, 0  ;;  %vm3922_vm15 = vcmp.eq.s32.totalorder %v8021_v42, 1  ;;  %vm3927_vm14 = vcmp.eq.s32.totalorder %v8021_v42, 2 }
 0x4ef   : > { %v3843_v51 = vmul.f32 %v3842_v32, %v3787_v49  ;;  %v3848_v29 = vmul.f32 %v3847_v19, %v3787_v49  ;;  %v3852_v63 = vmul.f32 %v3842_v32, %v3804_v22  ;;  %v3558_v1 = vadd.f32 %v3557_v8, %v3469_v20 }
 0x4f0   : > { %v3646_v60 = vpop.f32.mrf.mxu3  ;;  %v5843_v49 = vmov 0.0  }
 0x4f1   : > { %v3845_v56 = vadd.f32 %v3843_v51, %v3831_v46  ;;  %v3850_v15 = vadd.f32 %v3848_v29, %v3836_v48  ;;  %v3854_v39 = vadd.f32 %v3852_v63, %v3840_v37  ;;  %v3647_v28 = vadd.f32 %v3646_v60, %v3558_v1 }
 0x4f2   : > { %v3900_v46 = vperm.slane %v7508_v52, 0  ;;  %v5333_v22 = vsel %vm3917_vm4, 1.0, %v5843_v49  ;;  %v5334_v20 = vsel %vm3922_vm15, 1.0, %v5843_v49  ;;  %v5335_v8 = vsel %vm3927_vm14, 1.0, %v5843_v49 }
 0x4f3   : > { %v3863_v44 = vmul.f32 %v3862_v33, %v3845_v56  ;;  %v3869_v58 = vmul.f32 %v3868_v12, %v3845_v56  ;;  %v3874_v54 = vmul.f32 %v3862_v33, %v3850_v15  ;;  %v3879_v13 = vmul.f32 %v3862_v33, %v3854_v39 }
 0x4f4   : > { %v3780_v31 = vmul.f32 %v7517_v5, %v3647_v28  ;;  %v3797_v6 = vmul.f32 %v7520_v3, %v3647_v28  ;;  %v3857_v43 = vmul.f32 %v3856_v24, %v3845_v56  ;;  %v3859_v26 = vmul.f32 %v3858_v55, %v3845_v56 }
 0x4f5   : > { %v3865_v50 = vrot.slane %v3863_v44, 4  ;;  %v3871_v18 = vrot.slane %v3869_v58, 4  ;;  %v3876_v5 = vrot.slane %v3874_v54, 4  ;;  %v3881_v38 = vrot.slane %v3879_v13, 4 }
 0x4f6   : > { %v3788_v48 = vadd.f32 %v3780_v31, %v7511_v10  ;;  %v3805_v37 = vadd.f32 %v3797_v6, %v7514_v17  ;;  %v3860_v52 = vmul.f32 %v3856_v24, %v3850_v15  ;;  %v3861_v62 = vmul.f32 %v3856_v24, %v3854_v39 }
 0x4f7   : > { %v3867_v11 = vadd.f32 %v3865_v50, %v3857_v43  ;;  %v3873_v27 = vadd.f32 %v3871_v18, %v3859_v26 }
 0x4f8   : > { %v3844_v3 = vmul.f32 %v3842_v32, %v3788_v48  ;;  %v3849_v2 = vmul.f32 %v3847_v19, %v3788_v48  ;;  %v3853_v4 = vmul.f32 %v3842_v32, %v3805_v37  ;;  %v3878_v36 = vadd.f32 %v3876_v5, %v3860_v52 }
 0x4f9   : > { %v3883_v16 = vadd.f32 %v3881_v38, %v3861_v62 }
 0x4fa   : > { %v3846_v10 = vadd.f32 %v3844_v3, %v3832_v40  ;;  %v3851_v45 = vadd.f32 %v3849_v2, %v3837_v34  ;;  %v3855_v17 = vadd.f32 %v3853_v4, %v3841_v57 }
 0x4fc   : > { %v3885_v35 = vmul.f32 %v3884_v9, %v3846_v10  ;;  %v3888_v47 = vmul.f32 %v3887_v0, %v3846_v10  ;;  %v3890_v41 = vmul.f32 %v3884_v9, %v3851_v45  ;;  %v3892_v14 = vmul.f32 %v3884_v9, %v3855_v17 }
 0x4fd   : > { %v3895_v30 = vmul.f32 %v3894_v25, %v3846_v10  ;;  %v3901_v53 = vmul.f32 %v3900_v46, %v3846_v10  ;;  %v3906_v23 = vmul.f32 %v3894_v25, %v3851_v45  ;;  %v3911_v61 = vmul.f32 %v3894_v25, %v3855_v17 }
 0x4fe   : > { %v3886_v7 = vadd.f32 %v3885_v35, %v3867_v11  ;;  %v3889_v40 = vadd.f32 %v3888_v47, %v3873_v27  ;;  %v3891_v34 = vadd.f32 %v3890_v41, %v3878_v36  ;;  %v3893_v57 = vadd.f32 %v3892_v14, %v3883_v16 }
 0x4ff   : > { %v3897_v21 = vrot.slane %v3895_v30, 4  ;;  %v3903_v32 = vrot.slane %v3901_v53, 4  ;;  %v3908_v19 = vrot.slane %v3906_v23, 4  ;;  %v3913_v59 = vrot.slane %v3911_v61, 4 }
 0x501   : > { %v3899_v51 = vadd.f32 %v3897_v21, %v3886_v7  ;;  %v3905_v29 = vadd.f32 %v3903_v32, %v3889_v40  ;;  %v3910_v63 = vadd.f32 %v3908_v19, %v3891_v34  ;;  %v3915_v1 = vadd.f32 %v3913_v59, %v3893_v57 }
 0x503   : > { %3916 = vst [vmem:[%s220_s19] sm:$0xf] %v3899_v51  ;;  %v3920_v33 = vadd.f32 %v5333_v22, %v3905_v29  ;;  %v3925_v12 = vadd.f32 %v5334_v20, %v3910_v63  ;;  %v3930_v60 = vadd.f32 %v5335_v8, %v3915_v1 }
 0x505   : > { %3921 = vst [vmem:[%s220_s19 + $0x4] sm:$0xf] %v3920_v33 }
 0x506   : > { %3926 = vst [vmem:[%s220_s19 + $0x8] sm:$0xf] %v3925_v12 }
 0x507   : > { %3931 = vst [vmem:[%s220_s19 + $0xc] sm:$0xf] %v3930_v60 }
 0x508   : > { %5792 = shalt.err (!%p5789_p9)
}
 0x509   : > { %s5844_s10 = smov 128   ;;  %s5845_s22 = smov 256  }
 0x50a   : > { %s5846_s23 = smov 8  }
 0x50b   : > { %5608 = dma.vmem_to_hbm [thread:$0]  (%p5936_p4), %s3945_s27, 256, %s3947_s28, %s3933_s29, %s5844_s10, %s5845_s22, %s5846_s23  }
 0x50c PF: > { %s3961_s20 = sand.u32 1, %s5823_s12   ;;  %p8022_p10 = scmp.ge.s32.totalorder %s5835_s15, 2 }
 0x50d   : > { %s3962_s9 = scalar_lea.sflag [#allocation4], %s3961_s20 }
 0x50e   : > { %p5622_p13 = pnand %p8022_p10, %p5940_p6 }
 0x510   : > { %p5623_p11 = pneg %p5622_p13 }
 0x512   : > { %5818 = dma.done.wait (%p5623_p11), %s3962_s9, 256  }
 0x513   : > { %5820 = vsyncadd (%p5623_p11), %s3962_s9, 4294967040  ;;  %p17_p0 = scmp.ge.s32.totalorder %s5910_s4, 4   ;;  %s8023_s12 = smov %s5827_s13 }
 0x514   : > { %s8024_s13 = smov %s5831_s14  ;;  %s8025_s14 = smov %s5921_s7 }
 0x515   : > { %s8026_s15 = smov %s5910_s4  ;;  %19 = sbr.rel (!%p17_p0) target bundleno = 6 (0x6), region = 85 }
 0x51a   :  { %3968 = vsyncpa [#allocation3], 1 }
 0x51b   :  { %3970 = vsyncpa [#allocation3 + $0x1], 1 }
 0x51c   :  { %3971 = vsyncpa [#allocation6], 1 }
 0x51d   :  { %3972 = vsyncpa [#allocation4], 1 }
 0x51e   :  { %3974 = vsyncpa [#allocation4 + $0x1], 1 }

</bundles_post_ra>
